<compile_context>
chip_gen: v7x
topology: tpu7x:2x2x1
jax: 0.10.0
libtpu: 0.0.40
codegen_flags: <defaults>
</compile_context>

<pallas_src>
import functools

import jax
import jax.numpy as jnp
from jax.experimental import pallas as pl
from jax.experimental.pallas import tpu as pltpu


P = 256      # padded feature width (multiple of 128; covers the widest layer)
HALF = 128   # one vreg-lane-width; mean/logvar each get one 128-lane slab


# ----------------------------------------------------------------------------
# Fused whole-network Pallas kernel
# ----------------------------------------------------------------------------
def _vdvae_fused_kernel(x_ref, w_ref, b_ref, eps_ref,
                        recon_ref, mean_ref, logvar_ref, *, n_enc, n_dec):
    """Entire VAE forward.  All activations stay in VMEM/vregs.

    w_ref: (L, P, P) stacked, BN-folded, zero-padded weights
           layers [0, n_enc) encoder, layer n_enc = merged fc_mean/fc_logvar,
           layers [n_enc+1, n_enc+1+n_dec) decoder.
    b_ref: (L, 1, P) stacked, BN-folded, zero-padded biases.
    """
    f32 = jnp.float32
    h = x_ref[...]                                           # (B, P)

    # ---- encoder (BN folded into W/b; Dropout is identity in eval mode) ----
    for l in range(n_enc):
        h = jnp.dot(h, w_ref[l], preferred_element_type=f32) + b_ref[l]
        if l < n_enc - 1:
            h = jnp.maximum(h, 0.0)

    # ---- merged fc_mean / fc_logvar (one MXU matmul) ----
    # mean occupies lanes [0, HALF), logvar occupies lanes [HALF, 2*HALF).
    ml = jnp.dot(h, w_ref[n_enc], preferred_element_type=f32) + b_ref[n_enc]
    mean = ml[:, :HALF]                                      # (B, 128)
    logvar = ml[:, HALF:]                                    # (B, 128)
    mean_ref[...] = mean
    logvar_ref[...] = logvar

    # ---- reparameterize: z = mean + eps * exp(0.5 * logvar) ----
    std = jnp.exp(0.5 * jnp.clip(logvar, -30.0, 30.0))       # clamp: overflow insurance
    z = mean + eps_ref[...] * std                            # (B, 128)

    # ---- decoder ----
    base = n_enc + 1
    # First decoder layer consumes only the 128-wide z; the stored weight's
    # padded input rows beyond HALF are zero, so slicing the ref is exact.
    h = jnp.dot(z, w_ref[base, :HALF, :], preferred_element_type=f32) + b_ref[base]
    if n_dec > 1:
        h = jnp.maximum(h, 0.0)
    for i in range(1, n_dec):
        l = base + i
        h = jnp.dot(h, w_ref[l], preferred_element_type=f32) + b_ref[l]
        if i < n_dec - 1:
            h = jnp.maximum(h, 0.0)
    recon_ref[...] = h


def make_vdvae_forward(latent_dim, out_features):
    """Returns a jitted forward: (w_stack, b_stack, x, eps) -> (recon, mean, logvar)."""

    @jax.jit
    def fwd(w_stack, b_stack, x, eps):
        B, in_dim = x.shape
        L = w_stack.shape[0]
        n_enc = (L - 1) // 2
        n_dec = L - 1 - n_enc

        x_pad = jnp.zeros((B, P), jnp.float32).at[:, :in_dim].set(x)
        eps_pad = jnp.zeros((B, HALF), jnp.float32).at[:, :latent_dim].set(eps)

        kernel = functools.partial(_vdvae_fused_kernel, n_enc=n_enc, n_dec=n_dec)
        recon_pad, mean_pad, logvar_pad = pl.pallas_call(
            kernel,
            grid=(1,),
            in_specs=[
                pl.BlockSpec((B, P), lambda i: (0, 0)),          # x
                pl.BlockSpec((L, P, P), lambda i: (0, 0, 0)),    # stacked W
                pl.BlockSpec((L, 1, P), lambda i: (0, 0, 0)),    # stacked b
                pl.BlockSpec((B, HALF), lambda i: (0, 0)),       # eps
            ],
            out_specs=[
                pl.BlockSpec((B, P), lambda i: (0, 0)),          # recon (padded)
                pl.BlockSpec((B, HALF), lambda i: (0, 0)),       # mean  (padded)
                pl.BlockSpec((B, HALF), lambda i: (0, 0)),       # logvar(padded)
            ],
            out_shape=[
                jax.ShapeDtypeStruct((B, P), jnp.float32),
                jax.ShapeDtypeStruct((B, HALF), jnp.float32),
                jax.ShapeDtypeStruct((B, HALF), jnp.float32),
            ],
            compiler_params=pltpu.CompilerParams(
                dimension_semantics=("arbitrary",)),
        )(x_pad, w_stack, b_stack, eps_pad)

        return (recon_pad[:, :out_features],
                mean_pad[:, :latent_dim],
                logvar_pad[:, :latent_dim])

    return fwd


# ----------------------------------------------------------------------------
# Deterministic parameter construction (BN folded, padded, stacked — done once)
# ----------------------------------------------------------------------------
def _init_linear(key, in_dim, out_dim):
    k1, k2 = jax.random.split(key)
    bound = 1.0 / (in_dim ** 0.5)
    w = jax.random.uniform(k1, (in_dim, out_dim), jnp.float32, -bound, bound)
    b = jax.random.uniform(k2, (out_dim,), jnp.float32, -bound, bound)
    return w, b


def _init_bn_folded(key, dim, eps=1e-5):
    """(scale, shift) for eval-mode BatchNorm1d with synthetic running stats."""
    k1, k2, k3, k4 = jax.random.split(key, 4)
    gamma = 1.0 + 0.1 * jax.random.normal(k1, (dim,), jnp.float32)
    beta = 0.1 * jax.random.normal(k2, (dim,), jnp.float32)
    r_mean = 0.1 * jax.random.normal(k3, (dim,), jnp.float32)
    r_var = jnp.abs(1.0 + 0.1 * jax.random.normal(k4, (dim,), jnp.float32))
    scale = gamma * jax.lax.rsqrt(r_var + eps)
    shift = beta - r_mean * scale
    return scale, shift


def _pad_wb(w, b):
    in_d, out_d = w.shape
    wp = jnp.zeros((P, P), jnp.float32).at[:in_d, :out_d].set(w)
    bp = jnp.zeros((P,), jnp.float32).at[:out_d].set(b)
    return wp, bp


def build_params(key, input_dim, latent_dim, out_features):
    # Scaled-down consistent dimension chains (structure mirrors the original:
    # 6 Linear layers per stack, first 5 have BN+ReLU+Dropout, last is plain).
    enc_dims = [input_dim, 128, 64, 32, 16, 10, 10]
    dec_dims = [latent_dim, 10, 32, 64, 96, 128, out_features]
    assert max(enc_dims + dec_dims) <= P
    assert latent_dim <= HALF

    keys = jax.random.split(key, 2 * (len(enc_dims) + len(dec_dims)) + 4)
    ki = iter(range(len(keys)))

    def take():
        return keys[next(ki)]

    ref = {"encoder": [], "decoder": []}
    padded_w, padded_b = [], []

    def make_stack(dims, ref_list):
        n = len(dims) - 1
        for li in range(n):
            w, b = _init_linear(take(), dims[li], dims[li + 1])
            relu = li < n - 1
            if relu:
                # BatchNorm1d (eval mode) folded into W/b; Dropout == identity.
                scale, shift = _init_bn_folded(take(), dims[li + 1])
                w = w * scale[None, :]
                b = b * scale + shift
            ref_list.append((w, b, relu))
            wp, bp = _pad_wb(w, b)
            padded_w.append(wp)
            padded_b.append(bp)

    # encoder layers -> indices [0, 6)
    make_stack(enc_dims, ref["encoder"])

    # merged fc_mean / fc_logvar -> index 6
    # mean columns land in padded lanes [0, latent_dim),
    # logvar columns land in padded lanes [HALF, HALF + latent_dim).
    wm, bm = _init_linear(take(), enc_dims[-1], latent_dim)
    wl, bl = _init_linear(take(), enc_dims[-1], latent_dim)
    ref["fc_mean_w"], ref["fc_mean_b"] = wm, bm
    ref["fc_logvar_w"], ref["fc_logvar_b"] = wl, bl
    w_fc = jnp.zeros((P, P), jnp.float32)
    w_fc = w_fc.at[:enc_dims[-1], :latent_dim].set(wm)
    w_fc = w_fc.at[:enc_dims[-1], HALF:HALF + latent_dim].set(wl)
    b_fc = jnp.zeros((P,), jnp.float32)
    b_fc = b_fc.at[:latent_dim].set(bm)
    b_fc = b_fc.at[HALF:HALF + latent_dim].set(bl)
    padded_w.append(w_fc)
    padded_b.append(b_fc)

    # decoder layers -> indices [7, 13)
    make_stack(dec_dims, ref["decoder"])

    w_stack = jnp.stack(padded_w).astype(jnp.float32)                  # (13, P, P)
    b_stack = jnp.stack(padded_b).reshape(len(padded_b), 1, P)         # (13, 1, P)
    b_stack = b_stack.astype(jnp.float32)

    return {"w_stack": w_stack, "b_stack": b_stack, "ref": ref}


# ----------------------------------------------------------------------------
# Pure-JAX reference (unpadded math) for a correctness sanity check
# ----------------------------------------------------------------------------
def reference_forward(ref, x, eps):
    h = x
    for (w, b, relu) in ref["encoder"]:
        h = h @ w + b
        if relu:
            h = jnp.maximum(h, 0.0)
    mean = h @ ref["fc_mean_w"] + ref["fc_mean_b"]
    logvar = h @ ref["fc_logvar_w"] + ref["fc_logvar_b"]
    std = jnp.exp(0.5 * jnp.clip(logvar, -30.0, 30.0))
    h = mean + eps * std
    for (w, b, relu) in ref["decoder"]:
        h = h @ w + b
        if relu:
            h = jnp.maximum(h, 0.0)
    return h, mean, logvar


# ----------------------------------------------------------------------------
if __name__ == "__main__":
    key = jax.random.PRNGKey(0)
    k_params, k_x, k_eps = jax.random.split(key, 3)

    batch = 8                      # >= 8 so the (8,128) sublane tile is full
    input_dim = 64
    latent_dim = 16
    out_h, out_w = 8, 8
    out_features = 3 * out_h * out_w   # 192

    params = build_params(k_params, input_dim, latent_dim, out_features)
    x = jax.random.normal(k_x, (batch, input_dim), jnp.float32)
    eps = jax.random.normal(k_eps, (batch, latent_dim), jnp.float32)

    fwd = make_vdvae_forward(latent_dim, out_features)
    recon, mean, logvar = fwd(params["w_stack"], params["b_stack"], x, eps)
    jax.block_until_ready((recon, mean, logvar))

    # shape / sanity checks against a pure-JAX reference
    r_recon, r_mean, r_logvar = reference_forward(params["ref"], x, eps)
    assert recon.shape == (batch, out_features)
    assert mean.shape == (batch, latent_dim)
    assert logvar.shape == (batch, latent_dim)
    assert bool(jnp.all(jnp.isfinite(recon)))
    for got, want in ((recon, r_recon), (mean, r_mean), (logvar, r_logvar)):
        err = float(jnp.max(jnp.abs(got - want)))
        assert err < 5e-2, f"kernel/reference mismatch: max abs err {err}"

    print("KERNEL_OK")
</pallas_src>

<mosaic_0001>
module attributes {stable_mosaic.version = 11 : i64} {
  func.func @_vdvae_fused_kernel(%arg0: i32, %arg1: memref<8x256xf32, #tpu.memory_space<vmem>>, %arg2: memref<13x256x256xf32, #tpu.memory_space<vmem>>, %arg3: memref<13x1x256xf32, #tpu.memory_space<vmem>>, %arg4: memref<8x128xf32, #tpu.memory_space<vmem>>, %arg5: memref<8x256xf32, #tpu.memory_space<vmem>>, %arg6: memref<8x128xf32, #tpu.memory_space<vmem>>, %arg7: memref<8x128xf32, #tpu.memory_space<vmem>>) attributes {dimension_semantics = [#tpu.dimension_semantics<arbitrary>], iteration_bounds = array<i64: 1>, scalar_prefetch = 0 : i64, scratch_operands = 0 : i64, tpu.core_type = #tpu.core_type<tc>, window_params = [{pipeline_mode = #tpu.pipeline_mode<synchronous>, transform_indices = @transform_0, window_bounds = array<i64: 8, 256>}, {pipeline_mode = #tpu.pipeline_mode<synchronous>, transform_indices = @transform_1, window_bounds = array<i64: 13, 256, 256>}, {pipeline_mode = #tpu.pipeline_mode<synchronous>, transform_indices = @transform_2, window_bounds = array<i64: 13, 1, 256>}, {pipeline_mode = #tpu.pipeline_mode<synchronous>, transform_indices = @transform_3, window_bounds = array<i64: 8, 128>}, {pipeline_mode = #tpu.pipeline_mode<synchronous>, transform_indices = @transform_4, window_bounds = array<i64: 8, 256>}, {pipeline_mode = #tpu.pipeline_mode<synchronous>, transform_indices = @transform_5, window_bounds = array<i64: 8, 128>}, {pipeline_mode = #tpu.pipeline_mode<synchronous>, transform_indices = @transform_6, window_bounds = array<i64: 8, 128>}]} {
    %c0 = arith.constant 0 : index
    %c0_0 = arith.constant 0 : index
    %0 = vector.load %arg1[%c0, %c0_0] : memref<8x256xf32, #tpu.memory_space<vmem>>, vector<8x256xf32>
    %c0_1 = arith.constant 0 : index
    %c0_2 = arith.constant 0 : index
    %c0_3 = arith.constant 0 : index
    %1 = vector.load %arg2[%c0_1, %c0_2, %c0_3] : memref<13x256x256xf32, #tpu.memory_space<vmem>>, vector<1x256x256xf32>
    %2 = vector.shape_cast %1 : vector<1x256x256xf32> to vector<256x256xf32>
    %cst = arith.constant dense<0.000000e+00> : vector<8x256xf32>
    %3 = tpu.matmul %0, %2, %cst {dimension_numbers = #tpu.dot_dimension_numbers<[1], [0], [0], [1], [0, 0, 1, 1], [], []>} : vector<8x256xf32>, vector<256x256xf32>, vector<8x256xf32> -> vector<8x256xf32>
    %c0_4 = arith.constant 0 : index
    %c0_5 = arith.constant 0 : index
    %c0_6 = arith.constant 0 : index
    %4 = vector.load %arg3[%c0_4, %c0_5, %c0_6] : memref<13x1x256xf32, #tpu.memory_space<vmem>>, vector<1x1x256xf32>
    %5 = vector.shape_cast %4 : vector<1x1x256xf32> to vector<1x256xf32>
    %6 = vector.broadcast %5 : vector<1x256xf32> to vector<8x256xf32>
    %7 = arith.addf %3, %6 : vector<8x256xf32>
    %cst_7 = arith.constant 0.000000e+00 : f32
    %8 = vector.broadcast %cst_7 : f32 to vector<8x256xf32>
    %9 = arith.maximumf %7, %8 : vector<8x256xf32>
    %c1 = arith.constant 1 : index
    %c0_8 = arith.constant 0 : index
    %c0_9 = arith.constant 0 : index
    %10 = vector.load %arg2[%c1, %c0_8, %c0_9] : memref<13x256x256xf32, #tpu.memory_space<vmem>>, vector<1x256x256xf32>
    %11 = vector.shape_cast %10 : vector<1x256x256xf32> to vector<256x256xf32>
    %cst_10 = arith.constant dense<0.000000e+00> : vector<8x256xf32>
    %12 = tpu.matmul %9, %11, %cst_10 {dimension_numbers = #tpu.dot_dimension_numbers<[1], [0], [0], [1], [0, 0, 1, 1], [], []>} : vector<8x256xf32>, vector<256x256xf32>, vector<8x256xf32> -> vector<8x256xf32>
    %c1_11 = arith.constant 1 : index
    %c0_12 = arith.constant 0 : index
    %c0_13 = arith.constant 0 : index
    %13 = vector.load %arg3[%c1_11, %c0_12, %c0_13] : memref<13x1x256xf32, #tpu.memory_space<vmem>>, vector<1x1x256xf32>
    %14 = vector.shape_cast %13 : vector<1x1x256xf32> to vector<1x256xf32>
    %15 = vector.broadcast %14 : vector<1x256xf32> to vector<8x256xf32>
    %16 = arith.addf %12, %15 : vector<8x256xf32>
    %cst_14 = arith.constant 0.000000e+00 : f32
    %17 = vector.broadcast %cst_14 : f32 to vector<8x256xf32>
    %18 = arith.maximumf %16, %17 : vector<8x256xf32>
    %c2 = arith.constant 2 : index
    %c0_15 = arith.constant 0 : index
    %c0_16 = arith.constant 0 : index
    %19 = vector.load %arg2[%c2, %c0_15, %c0_16] : memref<13x256x256xf32, #tpu.memory_space<vmem>>, vector<1x256x256xf32>
    %20 = vector.shape_cast %19 : vector<1x256x256xf32> to vector<256x256xf32>
    %cst_17 = arith.constant dense<0.000000e+00> : vector<8x256xf32>
    %21 = tpu.matmul %18, %20, %cst_17 {dimension_numbers = #tpu.dot_dimension_numbers<[1], [0], [0], [1], [0, 0, 1, 1], [], []>} : vector<8x256xf32>, vector<256x256xf32>, vector<8x256xf32> -> vector<8x256xf32>
    %c2_18 = arith.constant 2 : index
    %c0_19 = arith.constant 0 : index
    %c0_20 = arith.constant 0 : index
    %22 = vector.load %arg3[%c2_18, %c0_19, %c0_20] : memref<13x1x256xf32, #tpu.memory_space<vmem>>, vector<1x1x256xf32>
    %23 = vector.shape_cast %22 : vector<1x1x256xf32> to vector<1x256xf32>
    %24 = vector.broadcast %23 : vector<1x256xf32> to vector<8x256xf32>
    %25 = arith.addf %21, %24 : vector<8x256xf32>
    %cst_21 = arith.constant 0.000000e+00 : f32
    %26 = vector.broadcast %cst_21 : f32 to vector<8x256xf32>
    %27 = arith.maximumf %25, %26 : vector<8x256xf32>
    %c3 = arith.constant 3 : index
    %c0_22 = arith.constant 0 : index
    %c0_23 = arith.constant 0 : index
    %28 = vector.load %arg2[%c3, %c0_22, %c0_23] : memref<13x256x256xf32, #tpu.memory_space<vmem>>, vector<1x256x256xf32>
    %29 = vector.shape_cast %28 : vector<1x256x256xf32> to vector<256x256xf32>
    %cst_24 = arith.constant dense<0.000000e+00> : vector<8x256xf32>
    %30 = tpu.matmul %27, %29, %cst_24 {dimension_numbers = #tpu.dot_dimension_numbers<[1], [0], [0], [1], [0, 0, 1, 1], [], []>} : vector<8x256xf32>, vector<256x256xf32>, vector<8x256xf32> -> vector<8x256xf32>
    %c3_25 = arith.constant 3 : index
    %c0_26 = arith.constant 0 : index
    %c0_27 = arith.constant 0 : index
    %31 = vector.load %arg3[%c3_25, %c0_26, %c0_27] : memref<13x1x256xf32, #tpu.memory_space<vmem>>, vector<1x1x256xf32>
    %32 = vector.shape_cast %31 : vector<1x1x256xf32> to vector<1x256xf32>
    %33 = vector.broadcast %32 : vector<1x256xf32> to vector<8x256xf32>
    %34 = arith.addf %30, %33 : vector<8x256xf32>
    %cst_28 = arith.constant 0.000000e+00 : f32
    %35 = vector.broadcast %cst_28 : f32 to vector<8x256xf32>
    %36 = arith.maximumf %34, %35 : vector<8x256xf32>
    %c4 = arith.constant 4 : index
    %c0_29 = arith.constant 0 : index
    %c0_30 = arith.constant 0 : index
    %37 = vector.load %arg2[%c4, %c0_29, %c0_30] : memref<13x256x256xf32, #tpu.memory_space<vmem>>, vector<1x256x256xf32>
    %38 = vector.shape_cast %37 : vector<1x256x256xf32> to vector<256x256xf32>
    %cst_31 = arith.constant dense<0.000000e+00> : vector<8x256xf32>
    %39 = tpu.matmul %36, %38, %cst_31 {dimension_numbers = #tpu.dot_dimension_numbers<[1], [0], [0], [1], [0, 0, 1, 1], [], []>} : vector<8x256xf32>, vector<256x256xf32>, vector<8x256xf32> -> vector<8x256xf32>
    %c4_32 = arith.constant 4 : index
    %c0_33 = arith.constant 0 : index
    %c0_34 = arith.constant 0 : index
    %40 = vector.load %arg3[%c4_32, %c0_33, %c0_34] : memref<13x1x256xf32, #tpu.memory_space<vmem>>, vector<1x1x256xf32>
    %41 = vector.shape_cast %40 : vector<1x1x256xf32> to vector<1x256xf32>
    %42 = vector.broadcast %41 : vector<1x256xf32> to vector<8x256xf32>
    %43 = arith.addf %39, %42 : vector<8x256xf32>
    %cst_35 = arith.constant 0.000000e+00 : f32
    %44 = vector.broadcast %cst_35 : f32 to vector<8x256xf32>
    %45 = arith.maximumf %43, %44 : vector<8x256xf32>
    %c5 = arith.constant 5 : index
    %c0_36 = arith.constant 0 : index
    %c0_37 = arith.constant 0 : index
    %46 = vector.load %arg2[%c5, %c0_36, %c0_37] : memref<13x256x256xf32, #tpu.memory_space<vmem>>, vector<1x256x256xf32>
    %47 = vector.shape_cast %46 : vector<1x256x256xf32> to vector<256x256xf32>
    %cst_38 = arith.constant dense<0.000000e+00> : vector<8x256xf32>
    %48 = tpu.matmul %45, %47, %cst_38 {dimension_numbers = #tpu.dot_dimension_numbers<[1], [0], [0], [1], [0, 0, 1, 1], [], []>} : vector<8x256xf32>, vector<256x256xf32>, vector<8x256xf32> -> vector<8x256xf32>
    %c5_39 = arith.constant 5 : index
    %c0_40 = arith.constant 0 : index
    %c0_41 = arith.constant 0 : index
    %49 = vector.load %arg3[%c5_39, %c0_40, %c0_41] : memref<13x1x256xf32, #tpu.memory_space<vmem>>, vector<1x1x256xf32>
    %50 = vector.shape_cast %49 : vector<1x1x256xf32> to vector<1x256xf32>
    %51 = vector.broadcast %50 : vector<1x256xf32> to vector<8x256xf32>
    %52 = arith.addf %48, %51 : vector<8x256xf32>
    %c6 = arith.constant 6 : index
    %c0_42 = arith.constant 0 : index
    %c0_43 = arith.constant 0 : index
    %53 = vector.load %arg2[%c6, %c0_42, %c0_43] : memref<13x256x256xf32, #tpu.memory_space<vmem>>, vector<1x256x256xf32>
    %54 = vector.shape_cast %53 : vector<1x256x256xf32> to vector<256x256xf32>
    %cst_44 = arith.constant dense<0.000000e+00> : vector<8x256xf32>
    %55 = tpu.matmul %52, %54, %cst_44 {dimension_numbers = #tpu.dot_dimension_numbers<[1], [0], [0], [1], [0, 0, 1, 1], [], []>} : vector<8x256xf32>, vector<256x256xf32>, vector<8x256xf32> -> vector<8x256xf32>
    %c6_45 = arith.constant 6 : index
    %c0_46 = arith.constant 0 : index
    %c0_47 = arith.constant 0 : index
    %56 = vector.load %arg3[%c6_45, %c0_46, %c0_47] : memref<13x1x256xf32, #tpu.memory_space<vmem>>, vector<1x1x256xf32>
    %57 = vector.shape_cast %56 : vector<1x1x256xf32> to vector<1x256xf32>
    %58 = vector.broadcast %57 : vector<1x256xf32> to vector<8x256xf32>
    %59 = arith.addf %55, %58 : vector<8x256xf32>
    %60 = vector.extract_strided_slice %59 {offsets = [0, 0], sizes = [8, 128], strides = [1, 1]} : vector<8x256xf32> to vector<8x128xf32>
    %61 = vector.extract_strided_slice %59 {offsets = [0, 128], sizes = [8, 128], strides = [1, 1]} : vector<8x256xf32> to vector<8x128xf32>
    %c0_48 = arith.constant 0 : index
    %c0_49 = arith.constant 0 : index
    %62 = vector.load %arg6[%c0_48, %c0_49] : memref<8x128xf32, #tpu.memory_space<vmem>>, vector<8x128xf32>
    tpu.vector_store %arg6[%c0_48, %c0_49], %60 {strides = array<i32>} : memref<8x128xf32, #tpu.memory_space<vmem>>, vector<8x128xf32>,
    %c0_50 = arith.constant 0 : index
    %c0_51 = arith.constant 0 : index
    %63 = vector.load %arg7[%c0_50, %c0_51] : memref<8x128xf32, #tpu.memory_space<vmem>>, vector<8x128xf32>
    tpu.vector_store %arg7[%c0_50, %c0_51], %61 {strides = array<i32>} : memref<8x128xf32, #tpu.memory_space<vmem>>, vector<8x128xf32>,
    %cst_52 = arith.constant -3.000000e+01 : f32
    %cst_53 = arith.constant 3.000000e+01 : f32
    %64 = vector.broadcast %cst_52 : f32 to vector<8x128xf32>
    %65 = arith.maximumf %64, %61 : vector<8x128xf32>
    %66 = vector.broadcast %cst_53 : f32 to vector<8x128xf32>
    %67 = arith.minimumf %66, %65 : vector<8x128xf32>
    %cst_54 = arith.constant 5.000000e-01 : f32
    %68 = vector.broadcast %cst_54 : f32 to vector<8x128xf32>
    %69 = arith.mulf %68, %67 : vector<8x128xf32>
    %70 = math.exp %69 : vector<8x128xf32>
    %c0_55 = arith.constant 0 : index
    %c0_56 = arith.constant 0 : index
    %71 = vector.load %arg4[%c0_55, %c0_56] : memref<8x128xf32, #tpu.memory_space<vmem>>, vector<8x128xf32>
    %72 = arith.mulf %71, %70 : vector<8x128xf32>
    %73 = arith.addf %60, %72 : vector<8x128xf32>
    %c7 = arith.constant 7 : index
    %c0_57 = arith.constant 0 : index
    %c0_58 = arith.constant 0 : index
    %74 = vector.load %arg2[%c7, %c0_57, %c0_58] : memref<13x256x256xf32, #tpu.memory_space<vmem>>, vector<1x128x256xf32>
    %75 = vector.shape_cast %74 : vector<1x128x256xf32> to vector<128x256xf32>
    %cst_59 = arith.constant dense<0.000000e+00> : vector<8x256xf32>
    %76 = tpu.matmul %73, %75, %cst_59 {dimension_numbers = #tpu.dot_dimension_numbers<[1], [0], [0], [1], [0, 0, 1, 1], [], []>} : vector<8x128xf32>, vector<128x256xf32>, vector<8x256xf32> -> vector<8x256xf32>
    %c7_60 = arith.constant 7 : index
    %c0_61 = arith.constant 0 : index
    %c0_62 = arith.constant 0 : index
    %77 = vector.load %arg3[%c7_60, %c0_61, %c0_62] : memref<13x1x256xf32, #tpu.memory_space<vmem>>, vector<1x1x256xf32>
    %78 = vector.shape_cast %77 : vector<1x1x256xf32> to vector<1x256xf32>
    %79 = vector.broadcast %78 : vector<1x256xf32> to vector<8x256xf32>
    %80 = arith.addf %76, %79 : vector<8x256xf32>
    %cst_63 = arith.constant 0.000000e+00 : f32
    %81 = vector.broadcast %cst_63 : f32 to vector<8x256xf32>
    %82 = arith.maximumf %80, %81 : vector<8x256xf32>
    %c8 = arith.constant 8 : index
    %c0_64 = arith.constant 0 : index
    %c0_65 = arith.constant 0 : index
    %83 = vector.load %arg2[%c8, %c0_64, %c0_65] : memref<13x256x256xf32, #tpu.memory_space<vmem>>, vector<1x256x256xf32>
    %84 = vector.shape_cast %83 : vector<1x256x256xf32> to vector<256x256xf32>
    %cst_66 = arith.constant dense<0.000000e+00> : vector<8x256xf32>
    %85 = tpu.matmul %82, %84, %cst_66 {dimension_numbers = #tpu.dot_dimension_numbers<[1], [0], [0], [1], [0, 0, 1, 1], [], []>} : vector<8x256xf32>, vector<256x256xf32>, vector<8x256xf32> -> vector<8x256xf32>
    %c8_67 = arith.constant 8 : index
    %c0_68 = arith.constant 0 : index
    %c0_69 = arith.constant 0 : index
    %86 = vector.load %arg3[%c8_67, %c0_68, %c0_69] : memref<13x1x256xf32, #tpu.memory_space<vmem>>, vector<1x1x256xf32>
    %87 = vector.shape_cast %86 : vector<1x1x256xf32> to vector<1x256xf32>
    %88 = vector.broadcast %87 : vector<1x256xf32> to vector<8x256xf32>
    %89 = arith.addf %85, %88 : vector<8x256xf32>
    %cst_70 = arith.constant 0.000000e+00 : f32
    %90 = vector.broadcast %cst_70 : f32 to vector<8x256xf32>
    %91 = arith.maximumf %89, %90 : vector<8x256xf32>
    %c9 = arith.constant 9 : index
    %c0_71 = arith.constant 0 : index
    %c0_72 = arith.constant 0 : index
    %92 = vector.load %arg2[%c9, %c0_71, %c0_72] : memref<13x256x256xf32, #tpu.memory_space<vmem>>, vector<1x256x256xf32>
    %93 = vector.shape_cast %92 : vector<1x256x256xf32> to vector<256x256xf32>
    %cst_73 = arith.constant dense<0.000000e+00> : vector<8x256xf32>
    %94 = tpu.matmul %91, %93, %cst_73 {dimension_numbers = #tpu.dot_dimension_numbers<[1], [0], [0], [1], [0, 0, 1, 1], [], []>} : vector<8x256xf32>, vector<256x256xf32>, vector<8x256xf32> -> vector<8x256xf32>
    %c9_74 = arith.constant 9 : index
    %c0_75 = arith.constant 0 : index
    %c0_76 = arith.constant 0 : index
    %95 = vector.load %arg3[%c9_74, %c0_75, %c0_76] : memref<13x1x256xf32, #tpu.memory_space<vmem>>, vector<1x1x256xf32>
    %96 = vector.shape_cast %95 : vector<1x1x256xf32> to vector<1x256xf32>
    %97 = vector.broadcast %96 : vector<1x256xf32> to vector<8x256xf32>
    %98 = arith.addf %94, %97 : vector<8x256xf32>
    %cst_77 = arith.constant 0.000000e+00 : f32
    %99 = vector.broadcast %cst_77 : f32 to vector<8x256xf32>
    %100 = arith.maximumf %98, %99 : vector<8x256xf32>
    %c10 = arith.constant 10 : index
    %c0_78 = arith.constant 0 : index
    %c0_79 = arith.constant 0 : index
    %101 = vector.load %arg2[%c10, %c0_78, %c0_79] : memref<13x256x256xf32, #tpu.memory_space<vmem>>, vector<1x256x256xf32>
    %102 = vector.shape_cast %101 : vector<1x256x256xf32> to vector<256x256xf32>
    %cst_80 = arith.constant dense<0.000000e+00> : vector<8x256xf32>
    %103 = tpu.matmul %100, %102, %cst_80 {dimension_numbers = #tpu.dot_dimension_numbers<[1], [0], [0], [1], [0, 0, 1, 1], [], []>} : vector<8x256xf32>, vector<256x256xf32>, vector<8x256xf32> -> vector<8x256xf32>
    %c10_81 = arith.constant 10 : index
    %c0_82 = arith.constant 0 : index
    %c0_83 = arith.constant 0 : index
    %104 = vector.load %arg3[%c10_81, %c0_82, %c0_83] : memref<13x1x256xf32, #tpu.memory_space<vmem>>, vector<1x1x256xf32>
    %105 = vector.shape_cast %104 : vector<1x1x256xf32> to vector<1x256xf32>
    %106 = vector.broadcast %105 : vector<1x256xf32> to vector<8x256xf32>
    %107 = arith.addf %103, %106 : vector<8x256xf32>
    %cst_84 = arith.constant 0.000000e+00 : f32
    %108 = vector.broadcast %cst_84 : f32 to vector<8x256xf32>
    %109 = arith.maximumf %107, %108 : vector<8x256xf32>
    %c11 = arith.constant 11 : index
    %c0_85 = arith.constant 0 : index
    %c0_86 = arith.constant 0 : index
    %110 = vector.load %arg2[%c11, %c0_85, %c0_86] : memref<13x256x256xf32, #tpu.memory_space<vmem>>, vector<1x256x256xf32>
    %111 = vector.shape_cast %110 : vector<1x256x256xf32> to vector<256x256xf32>
    %cst_87 = arith.constant dense<0.000000e+00> : vector<8x256xf32>
    %112 = tpu.matmul %109, %111, %cst_87 {dimension_numbers = #tpu.dot_dimension_numbers<[1], [0], [0], [1], [0, 0, 1, 1], [], []>} : vector<8x256xf32>, vector<256x256xf32>, vector<8x256xf32> -> vector<8x256xf32>
    %c11_88 = arith.constant 11 : index
    %c0_89 = arith.constant 0 : index
    %c0_90 = arith.constant 0 : index
    %113 = vector.load %arg3[%c11_88, %c0_89, %c0_90] : memref<13x1x256xf32, #tpu.memory_space<vmem>>, vector<1x1x256xf32>
    %114 = vector.shape_cast %113 : vector<1x1x256xf32> to vector<1x256xf32>
    %115 = vector.broadcast %114 : vector<1x256xf32> to vector<8x256xf32>
    %116 = arith.addf %112, %115 : vector<8x256xf32>
    %cst_91 = arith.constant 0.000000e+00 : f32
    %117 = vector.broadcast %cst_91 : f32 to vector<8x256xf32>
    %118 = arith.maximumf %116, %117 : vector<8x256xf32>
    %c12 = arith.constant 12 : index
    %c0_92 = arith.constant 0 : index
    %c0_93 = arith.constant 0 : index
    %119 = vector.load %arg2[%c12, %c0_92, %c0_93] : memref<13x256x256xf32, #tpu.memory_space<vmem>>, vector<1x256x256xf32>
    %120 = vector.shape_cast %119 : vector<1x256x256xf32> to vector<256x256xf32>
    %cst_94 = arith.constant dense<0.000000e+00> : vector<8x256xf32>
    %121 = tpu.matmul %118, %120, %cst_94 {dimension_numbers = #tpu.dot_dimension_numbers<[1], [0], [0], [1], [0, 0, 1, 1], [], []>} : vector<8x256xf32>, vector<256x256xf32>, vector<8x256xf32> -> vector<8x256xf32>
    %c12_95 = arith.constant 12 : index
    %c0_96 = arith.constant 0 : index
    %c0_97 = arith.constant 0 : index
    %122 = vector.load %arg3[%c12_95, %c0_96, %c0_97] : memref<13x1x256xf32, #tpu.memory_space<vmem>>, vector<1x1x256xf32>
    %123 = vector.shape_cast %122 : vector<1x1x256xf32> to vector<1x256xf32>
    %124 = vector.broadcast %123 : vector<1x256xf32> to vector<8x256xf32>
    %125 = arith.addf %121, %124 : vector<8x256xf32>
    %c0_98 = arith.constant 0 : index
    %c0_99 = arith.constant 0 : index
    %126 = vector.load %arg5[%c0_98, %c0_99] : memref<8x256xf32, #tpu.memory_space<vmem>>, vector<8x256xf32>
    tpu.vector_store %arg5[%c0_98, %c0_99], %125 {strides = array<i32>} : memref<8x256xf32, #tpu.memory_space<vmem>>, vector<8x256xf32>,
    return
  }
  func.func @transform_0(%arg0: i32) -> (i32, i32) {
    %c0_i32 = arith.constant 0 : i32
    %c0_i32_0 = arith.constant 0 : i32
    %c0_i32_1 = arith.constant 0 : i32
    return %c0_i32, %c0_i32_0 : i32, i32
  }
  func.func @transform_1(%arg0: i32) -> (i32, i32, i32) {
    %c0_i32 = arith.constant 0 : i32
    %c0_i32_0 = arith.constant 0 : i32
    %c0_i32_1 = arith.constant 0 : i32
    %c0_i32_2 = arith.constant 0 : i32
    return %c0_i32, %c0_i32_0, %c0_i32_1 : i32, i32, i32
  }
  func.func @transform_2(%arg0: i32) -> (i32, i32, i32) {
    %c0_i32 = arith.constant 0 : i32
    %c0_i32_0 = arith.constant 0 : i32
    %c0_i32_1 = arith.constant 0 : i32
    %c0_i32_2 = arith.constant 0 : i32
    return %c0_i32, %c0_i32_0, %c0_i32_1 : i32, i32, i32
  }
  func.func @transform_3(%arg0: i32) -> (i32, i32) {
    %c0_i32 = arith.constant 0 : i32
    %c0_i32_0 = arith.constant 0 : i32
    %c0_i32_1 = arith.constant 0 : i32
    return %c0_i32, %c0_i32_0 : i32, i32
  }
  func.func @transform_4(%arg0: i32) -> (i32, i32) {
    %c0_i32 = arith.constant 0 : i32
    %c0_i32_0 = arith.constant 0 : i32
    %c0_i32_1 = arith.constant 0 : i32
    return %c0_i32, %c0_i32_0 : i32, i32
  }
  func.func @transform_5(%arg0: i32) -> (i32, i32) {
    %c0_i32 = arith.constant 0 : i32
    %c0_i32_0 = arith.constant 0 : i32
    %c0_i32_1 = arith.constant 0 : i32
    return %c0_i32, %c0_i32_0 : i32, i32
  }
  func.func @transform_6(%arg0: i32) -> (i32, i32) {
    %c0_i32 = arith.constant 0 : i32
    %c0_i32_0 = arith.constant 0 : i32
    %c0_i32_1 = arith.constant 0 : i32
    return %c0_i32, %c0_i32_0 : i32, i32
  }
}

</mosaic_0001>

<bundles_post_ra>
// kernel: fwd.1
= control target key start
LH: loop header
LB: loop body
LE: loop exit
PB: predicated region body
PF: predicated region fallthrough
CT: control target
= control target key end

     0   :  { %12 = vsyncpa [#allocation3], 0  ;;  %s3105_s0 = inlined_call_operand.vmem [shape: f32[8,256], index: 0, kind: input, shape index: {}]   ;;  %s3106_s1 = inlined_call_operand.hbm [shape: f32[13,256,256], index: 1, kind: input, shape index: {}]   ;;  %s3107_s2 = inlined_call_operand.hbm [shape: f32[13,1,256], index: 2, kind: input, shape index: {}]   ;;  %s3108_s3 = inlined_call_operand.vmem [shape: f32[8,128], index: 3, kind: input, shape index: {}]   ;;  %s3109_s4 = inlined_call_operand.hbm [shape: f32[8,256], index: 4, kind: output, shape index: {0}]   ;;  %s3110_s5 = inlined_call_operand.hbm [shape: f32[8,128], index: 5, kind: output, shape index: {1}]   ;;  %s3111_s6 = inlined_call_operand.hbm [shape: f32[8,128], index: 6, kind: output, shape index: {2}]  }
   0x1   :  { %13 = vsyncpa [#allocation6], 0 }
   0x2   :  { %14 = vsyncpa [#allocation4], 0 }
   0x3   :  { %15 = vsyncpa [#allocation9], 0  ;;  %s2961_s21 = smov [#allocation2]   ;;  %s2843_s25 = scalar_lea.hbm %s3106_s1, 106496 }
   0x4   :  { %s23_s22 = sshll.u32 %s2961_s21, 4  ;;  %p2844_p0 = scmp.ne.s32.totalorder %s3106_s1, %s2843_s25  ;;  %s24_s22 = int_to_ptr.vmem [resolvable:$true] %s23_s22 }
   0x5   :  { %p2847_p1 = scmp.lt.u32.totalorder %s2843_s25, %s3106_s1 }
   0x7   :  { %p2849_p2 = pnand %p2847_p1, %p2844_p0 }
   0x9   :  { %2852 = shalt.err (!%p2849_p2)
}
   0xa   :  { %s2853_s30 = scalar_lea.vmem %s24_s22, 106496  ;;  %p2858_p4 = scmp.lt.s32.totalorder %s24_s22, %s24_s22 }
   0xb   :  { %p2854_p3 = scmp.ne.s32.totalorder %s24_s22, %s2853_s30  ;;  %p2859_p5 = scmp.lt.s32.totalorder %s2853_s30, %s2853_s30 }
   0xd   :  { %p2860_p6 = por %p2859_p5, %p2858_p4 }
   0xf   :  { %p2861_p7 = pnand %p2860_p6, %p2854_p3 }
  0x11   :  { %2864 = shalt.err (!%p2861_p7)
}
  0x12   :  { %s2962_s7 = smov 256   ;;  %s2963_s8 = smov 16  }
  0x13   :  { %29 = dma.hbm_to_vmem [thread:$0]  %s3106_s1, 106496, %s24_s22, [#allocation3], %s2962_s7, %s2962_s7, %s2963_s8  }
  0x14   :  { %s2964_s11 = smov [#allocation5]   ;;  %s2865_s15 = scalar_lea.hbm %s3107_s2, 416 }
  0x15   :  { %s35_s12 = sshll.u32 %s2964_s11, 4  ;;  %p2866_p8 = scmp.ne.s32.totalorder %s3107_s2, %s2865_s15  ;;  %s36_s12 = int_to_ptr.vmem [resolvable:$true] %s35_s12 }
  0x16   :  { %p2869_p9 = scmp.lt.u32.totalorder %s2865_s15, %s3107_s2 }
  0x18   :  { %p2871_p10 = pnand %p2869_p9, %p2866_p8 }
  0x1a   :  { %2874 = shalt.err (!%p2871_p10)
}
  0x1b   :  { %s2875_s20 = scalar_lea.vmem %s36_s12, 416  ;;  %p2880_p12 = scmp.lt.s32.totalorder %s36_s12, %s36_s12 }
  0x1c   :  { %p2876_p11 = scmp.ne.s32.totalorder %s36_s12, %s2875_s20  ;;  %p2881_p13 = scmp.lt.s32.totalorder %s2875_s20, %s2875_s20 }
  0x1e   :  { %p2882_p0 = por %p2881_p13, %p2880_p12 }
  0x20   :  { %p2883_p1 = pnand %p2882_p0, %p2876_p11 }
  0x22   :  { %2886 = shalt.err (!%p2883_p1)
}
  0x23   :  { %s2965_s1 = smov 32   ;;  %s2966_s21 = smov 2  }
  0x24   :  { %41 = dma.hbm_to_vmem [thread:$0]  %s3107_s2, 416, %s36_s12, [#allocation6], %s2965_s1, %s2965_s1, %s2966_s21  }
  0x25   :  { %2953 = dma.done.wait [#allocation3], 106496  }
  0x26   :  { %2954 = vsyncadd [#allocation3], 4294860800 }
  0x27   :  { %2955 = dma.done.wait [#allocation6], 416  }
  0x28   :  { %2956 = vsyncadd [#allocation6], 4294966880  ;;  %v53_v0 = vld [vmem:[#allocation2 + $0x8] sm:$0xff]  ;;  %v55_v1 = vld [vmem:[#allocation2 + $0x18] sm:$0xff] }
  0x29   :  { %v52_v2 = vld [vmem:[#allocation2] sm:$0xff]  ;;  %v2031_v3 = vpack.c.bf16 %v55_v1, %v53_v0  ;;  %v54_v4 = vld [vmem:[#allocation2 + $0x10] sm:$0xff]  ;;  %v57_v5 = vld [vmem:[#allocation2 + $0x28] sm:$0xff] }
  0x2a   :  { %v59_v6 = vld [vmem:[#allocation2 + $0x38] sm:$0xff]  ;;  %v2033_v7 = vpack.c.bf16 %v54_v4, %v52_v2  ;;  %v56_v9 = vld [vmem:[#allocation2 + $0x20] sm:$0xff]  ;;  %v58_v10 = vld [vmem:[#allocation2 + $0x30] sm:$0xff] }
  0x2b   :  { %v2035_v8 = vpack.c.bf16 %v59_v6, %v57_v5  ;;  %v61_v11 = vld [vmem:[#allocation2 + $0x48] sm:$0xff]  ;;  %2032 = vmatprep.subr.bf16.mxu0 %v2031_v3  ;;  %v63_v12 = vld [vmem:[#allocation2 + $0x58] sm:$0xff]  ;;  %v2037_v13 = vpack.c.bf16 %v58_v10, %v56_v9  ;;  %v60_v15 = vld [vmem:[#allocation2 + $0x40] sm:$0xff] }
  0x2c   :  { %2034 = vmatpush1.bf16.msra.mxu0 %v2033_v7  ;;  %v2039_v14 = vpack.c.bf16 %v63_v12, %v61_v11  ;;  %v62_v16 = vld [vmem:[#allocation2 + $0x50] sm:$0xff]  ;;  %v65_v17 = vld [vmem:[#allocation2 + $0x68] sm:$0xff]  ;;  %v67_v18 = vld [vmem:[#allocation2 + $0x78] sm:$0xff] }
  0x2d   :  { %2036 = vmatprep.subr.bf16.mxu0 %v2035_v8  ;;  %v2041_v19 = vpack.c.bf16 %v62_v16, %v60_v15  ;;  %v2043_v20 = vpack.c.bf16 %v67_v18, %v65_v17  ;;  %v64_v21 = vld [vmem:[#allocation2 + $0x60] sm:$0xff]  ;;  %v66_v22 = vld [vmem:[#allocation2 + $0x70] sm:$0xff]  ;;  %v69_v23 = vld [vmem:[#allocation2 + $0x88] sm:$0xff] }
  0x2e   :  { %v71_v24 = vld [vmem:[#allocation2 + $0x98] sm:$0xff]  ;;  %v2045_v25 = vpack.c.bf16 %v66_v22, %v64_v21  ;;  %v68_v27 = vld [vmem:[#allocation2 + $0x80] sm:$0xff]  ;;  %v70_v28 = vld [vmem:[#allocation2 + $0x90] sm:$0xff] }
  0x2f   :  { %v2047_v26 = vpack.c.bf16 %v71_v24, %v69_v23  ;;  %v73_v29 = vld [vmem:[#allocation2 + $0xa8] sm:$0xff]  ;;  %v75_v30 = vld [vmem:[#allocation2 + $0xb8] sm:$0xff]  ;;  %v2049_v31 = vpack.c.bf16 %v70_v28, %v68_v27  ;;  %v72_v33 = vld [vmem:[#allocation2 + $0xa0] sm:$0xff] }
  0x30   :  { %2038 = vmatpush1.bf16.msra.mxu0 %v2037_v13  ;;  %v2051_v32 = vpack.c.bf16 %v75_v30, %v73_v29  ;;  %v74_v34 = vld [vmem:[#allocation2 + $0xb0] sm:$0xff]  ;;  %v77_v35 = vld [vmem:[#allocation2 + $0xc8] sm:$0xff]  ;;  %v79_v36 = vld [vmem:[#allocation2 + $0xd8] sm:$0xff] }
  0x31   :  { %2040 = vmatprep.subr.bf16.mxu0 %v2039_v14  ;;  %v2053_v37 = vpack.c.bf16 %v74_v34, %v72_v33  ;;  %v76_v38 = vld [vmem:[#allocation2 + $0xc0] sm:$0xff]  ;;  %v78_v39 = vld [vmem:[#allocation2 + $0xd0] sm:$0xff]  ;;  %v2055_v40 = vpack.c.bf16 %v79_v36, %v77_v35  ;;  %v81_v41 = vld [vmem:[#allocation2 + $0xe8] sm:$0xff] }
  0x32   :  { %v83_v42 = vld [vmem:[#allocation2 + $0xf8] sm:$0xff]  ;;  %v51_v43 = vld [vmem:[%s3105_s0 + $0x8] sm:$0xff]  ;;  %v202_v46 = vld [vmem:[#allocation2 + $0x200] sm:$0xff]  ;;  %v2057_v51 = vpack.c.bf16 %v78_v39, %v76_v38 }
  0x33   :  { %192 = vmatprep.mubr.f32.mxu0 %v51_v43  ;;  %v203_v44 = vld [vmem:[#allocation2 + $0x208] sm:$0xff]  ;;  %v205_v45 = vld [vmem:[#allocation2 + $0x218] sm:$0xff]  ;;  %v204_v48 = vld [vmem:[#allocation2 + $0x210] sm:$0xff]  ;;  %v2059_v57 = vpack.c.bf16 %v83_v42, %v81_v41 }
  0x34   :  { %2042 = vmatpush1.bf16.msra.mxu0 %v2041_v19  ;;  %v2095_v47 = vpack.c.bf16 %v205_v45, %v203_v44  ;;  %v207_v49 = vld [vmem:[#allocation2 + $0x228] sm:$0xff]  ;;  %v209_v50 = vld [vmem:[#allocation2 + $0x238] sm:$0xff]  ;;  %v2097_v52 = vpack.c.bf16 %v204_v48, %v202_v46  ;;  %v206_v54 = vld [vmem:[#allocation2 + $0x220] sm:$0xff] }
  0x35   :  { %2044 = vmatprep.subr.bf16.mxu0 %v2043_v20  ;;  %v2099_v53 = vpack.c.bf16 %v209_v50, %v207_v49  ;;  %v208_v55 = vld [vmem:[#allocation2 + $0x230] sm:$0xff]  ;;  %v211_v56 = vld [vmem:[#allocation2 + $0x248] sm:$0xff]  ;;  %v80_v58 = vld [vmem:[#allocation2 + $0xe0] sm:$0xff] }
  0x36   :  { %v82_v59 = vld [vmem:[#allocation2 + $0xf0] sm:$0xff]  ;;  %2096 = vmatprep.subr.bf16.mxu1 %v2095_v47  ;;  %v213_v60 = vld [vmem:[#allocation2 + $0x258] sm:$0xff]  ;;  %v85_v61 = vld [vmem:[#allocation2 + $0x108] sm:$0xff]  ;;  %v2101_v63 = vpack.c.bf16 %v208_v55, %v206_v54 }
  0x37   :  { %v87_v62 = vld [vmem:[#allocation2 + $0x118] sm:$0xff]  ;;  %2098 = vmatpush1.bf16.msra.mxu1 %v2097_v52  ;;  %v2103_v0 = vpack.c.bf16 %v213_v60, %v211_v56  ;;  %v210_v1 = vld [vmem:[#allocation2 + $0x240] sm:$0xff]  ;;  %v212_v2 = vld [vmem:[#allocation2 + $0x250] sm:$0xff]  ;;  %v2061_v3 = vpack.c.bf16 %v82_v59, %v80_v58 }
  0x38   :  { %2046 = vmatpush1.bf16.msra.mxu0 %v2045_v25  ;;  %2100 = vmatprep.subr.bf16.mxu1 %v2099_v53  ;;  %v215_v4 = vld [vmem:[#allocation2 + $0x268] sm:$0xff]  ;;  %v217_v5 = vld [vmem:[#allocation2 + $0x278] sm:$0xff]  ;;  %v2063_v6 = vpack.c.bf16 %v87_v62, %v85_v61  ;;  %v84_v7 = vld [vmem:[#allocation2 + $0x100] sm:$0xff]  ;;  %v2105_v11 = vpack.c.bf16 %v212_v2, %v210_v1 }
  0x39   :  { %2048 = vmatprep.subr.bf16.mxu0 %v2047_v26  ;;  %v86_v8 = vld [vmem:[#allocation2 + $0x110] sm:$0xff]  ;;  %v89_v9 = vld [vmem:[#allocation2 + $0x128] sm:$0xff]  ;;  %v91_v10 = vld [vmem:[#allocation2 + $0x138] sm:$0xff]  ;;  %v2107_v12 = vpack.c.bf16 %v217_v5, %v215_v4 }
  0x3a   :  { %v214_v13 = vld [vmem:[#allocation2 + $0x260] sm:$0xff]  ;;  %v216_v14 = vld [vmem:[#allocation2 + $0x270] sm:$0xff]  ;;  %v2065_v15 = vpack.c.bf16 %v86_v8, %v84_v7  ;;  %v219_v16 = vld [vmem:[#allocation2 + $0x288] sm:$0xff]  ;;  %v2067_v18 = vpack.c.bf16 %v91_v10, %v89_v9 }
  0x3b   :  { %2102 = vmatpush1.bf16.msra.mxu1 %v2101_v63  ;;  %v221_v17 = vld [vmem:[#allocation2 + $0x298] sm:$0xff]  ;;  %v88_v19 = vld [vmem:[#allocation2 + $0x120] sm:$0xff]  ;;  %v90_v20 = vld [vmem:[#allocation2 + $0x130] sm:$0xff]  ;;  %v2109_v23 = vpack.c.bf16 %v216_v14, %v214_v13 }
  0x3c   :  { %2050 = vmatpush1.bf16.msra.mxu0 %v2049_v31  ;;  %2104 = vmatprep.subr.bf16.mxu1 %v2103_v0  ;;  %v93_v21 = vld [vmem:[#allocation2 + $0x148] sm:$0xff]  ;;  %v95_v22 = vld [vmem:[#allocation2 + $0x158] sm:$0xff]  ;;  %v2111_v24 = vpack.c.bf16 %v221_v17, %v219_v16  ;;  %v218_v25 = vld [vmem:[#allocation2 + $0x280] sm:$0xff]  ;;  %v2069_v27 = vpack.c.bf16 %v90_v20, %v88_v19 }
  0x3d   :  { %2052 = vmatprep.subr.bf16.mxu0 %v2051_v32  ;;  %v220_v26 = vld [vmem:[#allocation2 + $0x290] sm:$0xff]  ;;  %v223_v28 = vld [vmem:[#allocation2 + $0x2a8] sm:$0xff]  ;;  %v225_v29 = vld [vmem:[#allocation2 + $0x2b8] sm:$0xff]  ;;  %v2071_v30 = vpack.c.bf16 %v95_v22, %v93_v21 }
  0x3e   :  { %v92_v31 = vld [vmem:[#allocation2 + $0x140] sm:$0xff]  ;;  %v94_v32 = vld [vmem:[#allocation2 + $0x150] sm:$0xff]  ;;  %v97_v33 = vld [vmem:[#allocation2 + $0x168] sm:$0xff]  ;;  %v2113_v35 = vpack.c.bf16 %v220_v26, %v218_v25  ;;  %v2115_v36 = vpack.c.bf16 %v225_v29, %v223_v28 }
  0x3f   :  { %2106 = vmatpush1.bf16.msra.mxu1 %v2105_v11  ;;  %v99_v34 = vld [vmem:[#allocation2 + $0x178] sm:$0xff]  ;;  %v224_v38 = vld [vmem:[#allocation2 + $0x2b0] sm:$0xff]  ;;  %v2073_v39 = vpack.c.bf16 %v94_v32, %v92_v31  ;;  %v96_v43 = vld [vmem:[#allocation2 + $0x160] sm:$0xff] }
  0x40   :  { %2054 = vmatpush1.bf16.msra.mxu0 %v2053_v37  ;;  %2108 = vmatprep.subr.bf16.mxu1 %v2107_v12  ;;  %v222_v37 = vld [vmem:[#allocation2 + $0x2a0] sm:$0xff]  ;;  %v229_v41 = vld [vmem:[#allocation2 + $0x2d8] sm:$0xff]  ;;  %v2075_v42 = vpack.c.bf16 %v99_v34, %v97_v33  ;;  %v98_v44 = vld [vmem:[#allocation2 + $0x170] sm:$0xff] }
  0x41   :  { %2056 = vmatprep.subr.bf16.mxu0 %v2055_v40  ;;  %v227_v40 = vld [vmem:[#allocation2 + $0x2c8] sm:$0xff]  ;;  %v103_v46 = vld [vmem:[#allocation2 + $0x198] sm:$0xff]  ;;  %v2117_v47 = vpack.c.bf16 %v224_v38, %v222_v37  ;;  %v226_v49 = vld [vmem:[#allocation2 + $0x2c0] sm:$0xff] }
  0x42   :  { %v101_v45 = vld [vmem:[#allocation2 + $0x188] sm:$0xff]  ;;  %v2119_v48 = vpack.c.bf16 %v229_v41, %v227_v40  ;;  %v228_v50 = vld [vmem:[#allocation2 + $0x2d0] sm:$0xff]  ;;  %v233_v53 = vld [vmem:[#allocation2 + $0x2f8] sm:$0xff] }
  0x43   :  { %2110 = vmatpush1.bf16.msra.mxu1 %v2109_v23  ;;  %v231_v52 = vld [vmem:[#allocation2 + $0x2e8] sm:$0xff]  ;;  %v2079_v54 = vpack.c.bf16 %v103_v46, %v101_v45  ;;  %v100_v55 = vld [vmem:[#allocation2 + $0x180] sm:$0xff]  ;;  %v102_v56 = vld [vmem:[#allocation2 + $0x190] sm:$0xff]  ;;  %v2121_v59 = vpack.c.bf16 %v228_v50, %v226_v49 }
  0x44   :  { %2058 = vmatpush1.bf16.msra.mxu0 %v2057_v51  ;;  %2112 = vmatprep.subr.bf16.mxu1 %v2111_v24  ;;  %v2077_v51 = vpack.c.bf16 %v98_v44, %v96_v43  ;;  %v107_v58 = vld [vmem:[#allocation2 + $0x1b8] sm:$0xff]  ;;  %v2123_v60 = vpack.c.bf16 %v233_v53, %v231_v52  ;;  %v230_v61 = vld [vmem:[#allocation2 + $0x2e0] sm:$0xff]  ;;  %v232_v62 = vld [vmem:[#allocation2 + $0x2f0] sm:$0xff]  ;;  %v2081_v63 = vpack.c.bf16 %v102_v56, %v100_v55 }
  0x45   :  { %2060 = vmatprep.subr.bf16.mxu0 %v2059_v57  ;;  %v105_v57 = vld [vmem:[#allocation2 + $0x1a8] sm:$0xff]  ;;  %v237_v1 = vld [vmem:[#allocation2 + $0x318] sm:$0xff]  ;;  %v106_v4 = vld [vmem:[#allocation2 + $0x1b0] sm:$0xff]  ;;  %v2125_v7 = vpack.c.bf16 %v232_v62, %v230_v61 }
  0x46   :  { %v235_v0 = vld [vmem:[#allocation2 + $0x308] sm:$0xff]  ;;  %v2083_v2 = vpack.c.bf16 %v107_v58, %v105_v57  ;;  %v234_v9 = vld [vmem:[#allocation2 + $0x300] sm:$0xff]  ;;  %v236_v10 = vld [vmem:[#allocation2 + $0x310] sm:$0xff] }
  0x47   :  { %2114 = vmatpush1.bf16.msra.mxu1 %v2113_v35  ;;  %v109_v5 = vld [vmem:[#allocation2 + $0x1c8] sm:$0xff]  ;;  %v2127_v8 = vpack.c.bf16 %v237_v1, %v235_v0  ;;  %v241_v13 = vld [vmem:[#allocation2 + $0x338] sm:$0xff]  ;;  %v110_v16 = vld [vmem:[#allocation2 + $0x1d0] sm:$0xff]  ;;  %v2129_v19 = vpack.c.bf16 %v236_v10, %v234_v9 }
  0x48   :  { %2062 = vmatpush1.bf16.msra.mxu0 %v2061_v3  ;;  %2116 = vmatprep.subr.bf16.mxu1 %v2115_v36  ;;  %v104_v3 = vld [vmem:[#allocation2 + $0x1a0] sm:$0xff]  ;;  %v239_v12 = vld [vmem:[#allocation2 + $0x328] sm:$0xff]  ;;  %v240_v22 = vld [vmem:[#allocation2 + $0x330] sm:$0xff] }
  0x49   :  { %2064 = vmatprep.subr.bf16.mxu0 %v2063_v6  ;;  %v111_v6 = vld [vmem:[#allocation2 + $0x1d8] sm:$0xff]  ;;  %v2085_v11 = vpack.c.bf16 %v106_v4, %v104_v3  ;;  %v113_v17 = vld [vmem:[#allocation2 + $0x1e8] sm:$0xff]  ;;  %v2131_v20 = vpack.c.bf16 %v241_v13, %v239_v12  ;;  %v238_v21 = vld [vmem:[#allocation2 + $0x320] sm:$0xff] }
  0x4a   :  { %v2087_v14 = vpack.c.bf16 %v111_v6, %v109_v5  ;;  %v243_v24 = vld [vmem:[#allocation2 + $0x348] sm:$0xff]  ;;  %v245_v25 = vld [vmem:[#allocation2 + $0x358] sm:$0xff]  ;;  %v114_v28 = vld [vmem:[#allocation2 + $0x1f0] sm:$0xff]  ;;  %v2133_v29 = vpack.c.bf16 %v240_v22, %v238_v21 }
  0x4b   :  { %2118 = vmatpush1.bf16.msra.mxu1 %v2117_v47  ;;  %v242_v31 = vld [vmem:[#allocation2 + $0x340] sm:$0xff]  ;;  %v244_v32 = vld [vmem:[#allocation2 + $0x350] sm:$0xff]  ;;  %v247_v34 = vld [vmem:[#allocation2 + $0x368] sm:$0xff] }
  0x4c   :  { %2066 = vmatpush1.bf16.msra.mxu0 %v2065_v15  ;;  %2120 = vmatprep.subr.bf16.mxu1 %v2119_v48  ;;  %v108_v15 = vld [vmem:[#allocation2 + $0x1c0] sm:$0xff]  ;;  %v249_v35 = vld [vmem:[#allocation2 + $0x378] sm:$0xff]  ;;  %v2137_v36 = vpack.c.bf16 %v244_v32, %v242_v31  ;;  %v251_v41 = vld [vmem:[#allocation2 + $0x388] sm:$0xff] }
  0x4d   :  { %2068 = vmatprep.subr.bf16.mxu0 %v2067_v18  ;;  %v115_v18 = vld [vmem:[#allocation2 + $0x1f8] sm:$0xff]  ;;  %v2089_v23 = vpack.c.bf16 %v110_v16, %v108_v15  ;;  %v2139_v37 = vpack.c.bf16 %v249_v35, %v247_v34  ;;  %v246_v38 = vld [vmem:[#allocation2 + $0x360] sm:$0xff]  ;;  %v252_v46 = vld [vmem:[#allocation2 + $0x390] sm:$0xff] }
  0x4e   :  { %v2091_v26 = vpack.c.bf16 %v115_v18, %v113_v17  ;;  %v50_v40 = vld [vmem:[%s3105_s0] sm:$0xff]  ;;  %v255_v47 = vld [vmem:[#allocation2 + $0x3a8] sm:$0xff]  ;;  %v257_v48 = vld [vmem:[#allocation2 + $0x3b8] sm:$0xff] }
  0x4f   :  { %2122 = vmatpush1.bf16.msra.mxu1 %v2121_v59  ;;  %v250_v45 = vld [vmem:[#allocation2 + $0x380] sm:$0xff]  ;;  %v2147_v50 = vpack.c.bf16 %v257_v48, %v255_v47  ;;  %v256_v52 = vld [vmem:[#allocation2 + $0x3b0] sm:$0xff]  ;;  %v259_v53 = vld [vmem:[#allocation2 + $0x3c8] sm:$0xff] }
  0x50   :  { %2070 = vmatpush1.bf16.msra.mxu0 %v2069_v27  ;;  %2124 = vmatprep.subr.bf16.mxu1 %v2123_v60  ;;  %v112_v27 = vld [vmem:[#allocation2 + $0x1e0] sm:$0xff]  ;;  %v2145_v49 = vpack.c.bf16 %v252_v46, %v250_v45  ;;  %v260_v58 = vld [vmem:[#allocation2 + $0x3d0] sm:$0xff]  ;;  %v263_v60 = vld [vmem:[#allocation2 + $0x3e8] sm:$0xff] }
  0x51   :  { %2072 = vmatprep.subr.bf16.mxu0 %v2071_v30  ;;  %v2135_v30 = vpack.c.bf16 %v245_v25, %v243_v24  ;;  %v2093_v33 = vpack.c.bf16 %v114_v28, %v112_v27  ;;  %v258_v57 = vld [vmem:[#allocation2 + $0x3c0] sm:$0xff]  ;;  %v265_v61 = vld [vmem:[#allocation2 + $0x3f8] sm:$0xff]  ;;  %v264_v0 = vld [vmem:[#allocation2 + $0x3f0] sm:$0xff] }
  0x52   :  { %v2153_v59 = vpack.c.bf16 %v260_v58, %v258_v57  ;;  %v2155_v62 = vpack.c.bf16 %v265_v61, %v263_v60  ;;  %v356_v3 = vld [vmem:[#allocation2 + $0x418] sm:$0xff]  ;;  %v353_v4 = vld [vmem:[#allocation2 + $0x400] sm:$0xff]  ;;  %v355_v6 = vld [vmem:[#allocation2 + $0x410] sm:$0xff] }
  0x53   :  { %2126 = vmatpush1.bf16.msra.mxu1 %v2125_v7  ;;  %v358_v7 = vld [vmem:[#allocation2 + $0x428] sm:$0xff]  ;;  %v2161_v9 = vpack.c.bf16 %v355_v6, %v353_v4  ;;  %v359_v12 = vld [vmem:[#allocation2 + $0x430] sm:$0xff]  ;;  %v361_v17 = vld [vmem:[#allocation2 + $0x440] sm:$0xff] }
  0x54   :  { %2074 = vmatpush1.bf16.msra.mxu0 %v2073_v39  ;;  %2128 = vmatprep.subr.bf16.mxu1 %v2127_v8  ;;  %v248_v39 = vld [vmem:[#allocation2 + $0x370] sm:$0xff]  ;;  %v360_v8 = vld [vmem:[#allocation2 + $0x438] sm:$0xff]  ;;  %v362_v13 = vld [vmem:[#allocation2 + $0x448] sm:$0xff] }
  0x55   :  { %2076 = vmatprep.subr.bf16.mxu0 %v2075_v42  ;;  %v253_v42 = vld [vmem:[#allocation2 + $0x398] sm:$0xff]  ;;  %v2141_v43 = vpack.c.bf16 %v248_v39, %v246_v38  ;;  %v2163_v10 = vpack.c.bf16 %v360_v8, %v358_v7  ;;  %v363_v18 = vld [vmem:[#allocation2 + $0x450] sm:$0xff]  ;;  %v370_v25 = vld [vmem:[#allocation2 + $0x488] sm:$0xff] }
  0x56   :  { %v2143_v44 = vpack.c.bf16 %v253_v42, %v251_v41  ;;  %v2169_v21 = vpack.c.bf16 %v363_v18, %v361_v17  ;;  %v367_v24 = vld [vmem:[#allocation2 + $0x470] sm:$0xff]  ;;  %v374_v31 = vld [vmem:[#allocation2 + $0x4a8] sm:$0xff]  ;;  %v376_v32 = vld [vmem:[#allocation2 + $0x4b8] sm:$0xff] }
  0x57   :  { %2130 = vmatpush1.bf16.msra.mxu1 %v2129_v19  ;;  %v366_v19 = vld [vmem:[#allocation2 + $0x468] sm:$0xff]  ;;  %v2179_v34 = vpack.c.bf16 %v376_v32, %v374_v31  ;;  %v373_v35 = vld [vmem:[#allocation2 + $0x4a0] sm:$0xff]  ;;  %v380_v38 = vld [vmem:[#allocation2 + $0x4d8] sm:$0xff] }
  0x58   :  { %2078 = vmatpush1.bf16.msra.mxu0 %v2077_v51  ;;  %2132 = vmatprep.subr.bf16.mxu1 %v2131_v20  ;;  %v254_v51 = vld [vmem:[#allocation2 + $0x3a0] sm:$0xff]  ;;  %v368_v20 = vld [vmem:[#allocation2 + $0x478] sm:$0xff]  ;;  %v379_v42 = vld [vmem:[#allocation2 + $0x4d0] sm:$0xff] }
  0x59   :  { %2080 = vmatprep.subr.bf16.mxu0 %v2079_v54  ;;  %v261_v54 = vld [vmem:[#allocation2 + $0x3d8] sm:$0xff]  ;;  %v2149_v55 = vpack.c.bf16 %v256_v52, %v254_v51  ;;  %v2171_v22 = vpack.c.bf16 %v368_v20, %v366_v19  ;;  %v377_v41 = vld [vmem:[#allocation2 + $0x4c0] sm:$0xff]  ;;  %v383_v48 = vld [vmem:[#allocation2 + $0x4f0] sm:$0xff] }
  0x5a   :  { %v2151_v56 = vpack.c.bf16 %v261_v54, %v259_v53  ;;  %v2185_v45 = vpack.c.bf16 %v379_v42, %v377_v41  ;;  %v381_v47 = vld [vmem:[#allocation2 + $0x4e0] sm:$0xff]  ;;  %v387_v54 = vld [vmem:[#allocation2 + $0x510] sm:$0xff]  ;;  %v394_v61 = vld [vmem:[#allocation2 + $0x548] sm:$0xff] }
  0x5b   :  { %2134 = vmatpush1.bf16.msra.mxu1 %v2133_v29  ;;  %v369_v29 = vld [vmem:[#allocation2 + $0x480] sm:$0xff]  ;;  %v2189_v51 = vpack.c.bf16 %v383_v48, %v381_v47  ;;  %v391_v60 = vld [vmem:[#allocation2 + $0x530] sm:$0xff]  ;;  %v400_v4 = vld [vmem:[#allocation2 + $0x578] sm:$0xff] }
  0x5c   :  { %2082 = vmatpush1.bf16.msra.mxu0 %v2081_v63  ;;  %2136 = vmatprep.subr.bf16.mxu1 %v2135_v30  ;;  %v262_v63 = vld [vmem:[#allocation2 + $0x3e0] sm:$0xff]  ;;  %v371_v30 = vld [vmem:[#allocation2 + $0x490] sm:$0xff]  ;;  %v414_v41 = vld [vmem:[#allocation2 + $0x5e8] sm:$0xff] }
  0x5d   :  { %2084 = vmatprep.subr.bf16.mxu0 %v2083_v2  ;;  %v2157_v1 = vpack.c.bf16 %v264_v0, %v262_v63  ;;  %v354_v2 = vld [vmem:[#allocation2 + $0x408] sm:$0xff]  ;;  %v385_v53 = vld [vmem:[#allocation2 + $0x500] sm:$0xff]  ;;  %v399_v8 = vld [vmem:[#allocation2 + $0x570] sm:$0xff] }
  0x5e   :  { %v2159_v5 = vpack.c.bf16 %v356_v3, %v354_v2  ;;  %v2193_v57 = vpack.c.bf16 %v387_v54, %v385_v53  ;;  %v395_v2 = vld [vmem:[#allocation2 + $0x550] sm:$0xff]  ;;  %v398_v3 = vld [vmem:[#allocation2 + $0x568] sm:$0xff]  ;;  %v397_v7 = vld [vmem:[#allocation2 + $0x560] sm:$0xff] }
  0x5f   :  { %2138 = vmatpush1.bf16.msra.mxu1 %v2137_v36  ;;  %v375_v36 = vld [vmem:[#allocation2 + $0x4b0] sm:$0xff]  ;;  %v2203_v6 = vpack.c.bf16 %v400_v4, %v398_v3  ;;  %v405_v19 = vld [vmem:[#allocation2 + $0x5a0] sm:$0xff]  ;;  %v416_v42 = vld [vmem:[#allocation2 + $0x5f8] sm:$0xff] }
  0x60   :  { %2086 = vmatpush1.bf16.msra.mxu0 %v2085_v11  ;;  %2140 = vmatprep.subr.bf16.mxu1 %v2139_v37  ;;  %v357_v11 = vld [vmem:[#allocation2 + $0x420] sm:$0xff]  ;;  %v378_v37 = vld [vmem:[#allocation2 + $0x4c8] sm:$0xff]  ;;  %v2181_v39 = vpack.c.bf16 %v375_v36, %v373_v35  ;;  %v407_v20 = vld [vmem:[#allocation2 + $0x5b0] sm:$0xff] }
  0x61   :  { %2088 = vmatprep.subr.bf16.mxu0 %v2087_v14  ;;  %v364_v14 = vld [vmem:[#allocation2 + $0x458] sm:$0xff]  ;;  %v2165_v15 = vpack.c.bf16 %v359_v12, %v357_v11  ;;  %v2205_v11 = vpack.c.bf16 %v399_v8, %v397_v7  ;;  %v505_v47 = vld [vmem:[#allocation2 + $0x608] sm:$0xff]  ;;  %v516_v4 = vld [vmem:[#allocation2 + $0x660] sm:$0xff] }
  0x62   :  { %v2167_v16 = vpack.c.bf16 %v364_v14, %v362_v13  ;;  %v401_v13 = vld [vmem:[#allocation2 + $0x580] sm:$0xff]  ;;  %v403_v14 = vld [vmem:[#allocation2 + $0x590] sm:$0xff]  ;;  %v507_v48 = vld [vmem:[#allocation2 + $0x618] sm:$0xff] }
  0x63   :  { %2142 = vmatpush1.bf16.msra.mxu1 %v2141_v43  ;;  %v382_v43 = vld [vmem:[#allocation2 + $0x4e8] sm:$0xff]  ;;  %v2209_v17 = vpack.c.bf16 %v403_v14, %v401_v13  ;;  %v511_v53 = vld [vmem:[#allocation2 + $0x638] sm:$0xff] }
  0x64   :  { %2090 = vmatpush1.bf16.msra.mxu0 %v2089_v23  ;;  %2144 = vmatprep.subr.bf16.mxu1 %v2143_v44  ;;  %v365_v23 = vld [vmem:[#allocation2 + $0x460] sm:$0xff]  ;;  %v384_v44 = vld [vmem:[#allocation2 + $0x4f8] sm:$0xff] }
  0x65   :  { %2092 = vmatprep.subr.bf16.mxu0 %v2091_v26  ;;  %v372_v26 = vld [vmem:[#allocation2 + $0x498] sm:$0xff]  ;;  %v2173_v27 = vpack.c.bf16 %v367_v24, %v365_v23  ;;  %v2187_v46 = vpack.c.bf16 %v384_v44, %v382_v43  ;;  %v2213_v23 = vpack.c.bf16 %v407_v20, %v405_v19  ;;  %v2219_v43 = vpack.c.bf16 %v416_v42, %v414_v41  ;;  %v413_v44 = vld [vmem:[#allocation2 + $0x5e0] sm:$0xff] }
  0x66   :  { %v2175_v28 = vpack.c.bf16 %v372_v26, %v370_v25  ;;  %v118_v25 = vlaneseq  ;;  %v523_v7 = vld [vmem:[#allocation2 + $0x698] sm:$0xff]  ;;  %v540_v42 = vld [vmem:[#allocation2 + $0x720] sm:$0xff] }
  0x67   :  { %2146 = vmatpush1.bf16.msra.mxu1 %v2145_v49  ;;  %v386_v49 = vld [vmem:[#allocation2 + $0x508] sm:$0xff]  ;;  %v527_v13 = vld [vmem:[#allocation2 + $0x6b8] sm:$0xff] }
  0x68   :  { %2094 = vmatpush1.bf16.msra.mxu0 %v2093_v33  ;;  %2148 = vmatprep.subr.bf16.mxu1 %v2147_v50  ;;  %v2177_v33 = vpack.c.bf16 %v371_v30, %v369_v29  ;;  %v388_v50 = vld [vmem:[#allocation2 + $0x518] sm:$0xff]  ;;  %v119_v26 = vshrl.u32 %v118_v25, 7 }
  0x69   :  { %2160 = vmatprep.subr.bf16.mxu0 %v2159_v5  ;;  %v2191_v52 = vpack.c.bf16 %v388_v50, %v386_v49  ;;  %v504_v49 = vld [vmem:[#allocation2 + $0x600] sm:$0xff]  ;;  %v2223_v50 = vpack.c.bf16 %v507_v48, %v505_v47  ;;  %v531_v19 = vld [vmem:[#allocation2 + $0x6d8] sm:$0xff] }
  0x6a   :  { %v3038_v29 = vsub.s32 1, %v119_v26  ;;  %v535_v25 = vld [vmem:[#allocation2 + $0x6f8] sm:$0xff]  ;;  %v544_v48 = vld [vmem:[#allocation2 + $0x740] sm:$0xff] }
  0x6b   :  { %193 = vmatmul.mubr.f32.vlgmr.msra.gmra.mrb[0].mxu0 %v50_v40  ;;  %2150 = vmatpush1.bf16.msra.mxu1 %v2149_v55  ;;  %v2183_v40 = vpack.c.bf16 %v380_v38, %v378_v37  ;;  %v390_v55 = vld [vmem:[#allocation2 + $0x528] sm:$0xff]  ;;  %v409_v38 = vld [vmem:[#allocation2 + $0x5c0] sm:$0xff] }
  0x6c   :  { %2152 = vmatprep.subr.bf16.mxu1 %v2151_v56  ;;  %2162 = vmatpush1.bf16.msra.mxu0 %v2161_v9  ;;  %v392_v56 = vld [vmem:[#allocation2 + $0x538] sm:$0xff]  ;;  %v402_v9 = vld [vmem:[#allocation2 + $0x588] sm:$0xff] }
  0x6d   :  { %2164 = vmatprep.subr.bf16.mxu0 %v2163_v10  ;;  %v2195_v58 = vpack.c.bf16 %v392_v56, %v390_v55  ;;  %v404_v10 = vld [vmem:[#allocation2 + $0x598] sm:$0xff]  ;;  %v508_v56 = vld [vmem:[#allocation2 + $0x620] sm:$0xff] }
  0x6e   :  { %v2207_v12 = vpack.c.bf16 %v404_v10, %v402_v9  ;;  %v520_v10 = vld [vmem:[#allocation2 + $0x680] sm:$0xff] }
  0x6f   :  { %2154 = vmatpush1.bf16.msra.mxu1 %v2153_v59  ;;  %v389_v59 = vld [vmem:[#allocation2 + $0x520] sm:$0xff] }
  0x70   :  { %2156 = vmatprep.subr.bf16.mxu1 %v2155_v62  ;;  %2166 = vmatpush1.bf16.msra.mxu0 %v2165_v15  ;;  %v396_v62 = vld [vmem:[#allocation2 + $0x558] sm:$0xff]  ;;  %v2197_v63 = vpack.c.bf16 %v391_v60, %v389_v59  ;;  %v406_v15 = vld [vmem:[#allocation2 + $0x5a8] sm:$0xff] }
  0x71   :  { %2168 = vmatprep.subr.bf16.mxu0 %v2167_v16  ;;  %v2199_v0 = vpack.c.bf16 %v396_v62, %v394_v61  ;;  %v408_v16 = vld [vmem:[#allocation2 + $0x5b8] sm:$0xff]  ;;  %v512_v62 = vld [vmem:[#allocation2 + $0x640] sm:$0xff] }
  0x72   :  { %v2211_v18 = vpack.c.bf16 %v408_v16, %v406_v15  ;;  %v515_v59 = vld [vmem:[#allocation2 + $0x658] sm:$0xff]  ;;  %v524_v16 = vld [vmem:[#allocation2 + $0x6a0] sm:$0xff] }
  0x73   :  { %2158 = vmatpush1.bf16.msra.mxu1 %v2157_v1  ;;  %v393_v1 = vld [vmem:[#allocation2 + $0x540] sm:$0xff] }
  0x74   :  { %2170 = vmatpush1.bf16.msra.mxu0 %v2169_v21  ;;  %v2201_v5 = vpack.c.bf16 %v395_v2, %v393_v1  ;;  %v410_v21 = vld [vmem:[#allocation2 + $0x5c8] sm:$0xff]  ;;  %2224 = vmatprep.subr.bf16.mxu1 %v2223_v50  ;;  %v519_v1 = vld [vmem:[#allocation2 + $0x678] sm:$0xff] }
  0x75   :  { %2172 = vmatprep.subr.bf16.mxu0 %v2171_v22  ;;  %v412_v22 = vld [vmem:[#allocation2 + $0x5d8] sm:$0xff]  ;;  %v549_v50 = vld [vmem:[#allocation2 + $0x768] sm:$0xff] }
  0x76   :  { %v2215_v24 = vpack.c.bf16 %v412_v22, %v410_v21  ;;  %v528_v22 = vld [vmem:[#allocation2 + $0x6c0] sm:$0xff] }
  0x78   :  { %2174 = vmatpush1.bf16.msra.mxu0 %v2173_v27  ;;  %v3036_v27 = vsub.s32 0, %v119_v26 }
  0x79   :  { %2176 = vmatprep.subr.bf16.mxu0 %v2175_v28  ;;  %v116_v28 = vld [vmem:[#allocation5] sm:$0x3] }
  0x7a   :  { %v121_v30 = vrot.slane %v116_v28, %v3036_v27  ;;  %v125_v31 = vrot.slane %v116_v28, %v3038_v29 }
  0x7c   :  { %2178 = vmatpush1.bf16.msra.mxu0 %v2177_v33 }
  0x7d   :  { %2180 = vmatprep.subr.bf16.mxu0 %v2179_v34 }
  0x80   :  { %2182 = vmatpush1.bf16.msra.mxu0 %v2181_v39  ;;  %v411_v39 = vld [vmem:[#allocation2 + $0x5d0] sm:$0xff] }
  0x81   :  { %2184 = vmatprep.subr.bf16.mxu0 %v2183_v40  ;;  %v2217_v40 = vpack.c.bf16 %v411_v39, %v409_v38  ;;  %v541_v38 = vld [vmem:[#allocation2 + $0x728] sm:$0xff]  ;;  %v543_v39 = vld [vmem:[#allocation2 + $0x738] sm:$0xff] }
  0x82   :  { %v2259_v41 = vpack.c.bf16 %v543_v39, %v541_v38  ;;  %v661_v38 = vld [vmem:[#allocation2 + $0x830] sm:$0xff]  ;;  %v664_v39 = vld [vmem:[#allocation2 + $0x848] sm:$0xff] }
  0x84   :  { %2186 = vmatpush1.bf16.msra.mxu0 %v2185_v45  ;;  %v415_v45 = vld [vmem:[#allocation2 + $0x5f0] sm:$0xff] }
  0x85   :  { %2188 = vmatprep.subr.bf16.mxu0 %v2187_v46  ;;  %v2221_v46 = vpack.c.bf16 %v415_v45, %v413_v44  ;;  %v545_v44 = vld [vmem:[#allocation2 + $0x748] sm:$0xff]  ;;  %v547_v45 = vld [vmem:[#allocation2 + $0x758] sm:$0xff] }
  0x86   :  { %v2263_v47 = vpack.c.bf16 %v547_v45, %v545_v44  ;;  %v665_v44 = vld [vmem:[#allocation2 + $0x850] sm:$0xff]  ;;  %v668_v45 = vld [vmem:[#allocation2 + $0x868] sm:$0xff] }
  0x88   :  { %2190 = vmatpush1.bf16.msra.mxu0 %v2189_v51  ;;  %v506_v51 = vld [vmem:[#allocation2 + $0x610] sm:$0xff] }
  0x89   :  { %2192 = vmatprep.subr.bf16.mxu0 %v2191_v52  ;;  %v509_v52 = vld [vmem:[#allocation2 + $0x628] sm:$0xff]  ;;  %v2225_v54 = vpack.c.bf16 %v506_v51, %v504_v49  ;;  %v546_v49 = vld [vmem:[#allocation2 + $0x750] sm:$0xff]  ;;  %v551_v51 = vld [vmem:[#allocation2 + $0x778] sm:$0xff] }
  0x8a   :  { %v2227_v55 = vpack.c.bf16 %v511_v53, %v509_v52  ;;  %v2265_v52 = vpack.c.bf16 %v546_v49, %v544_v48  ;;  %v2267_v53 = vpack.c.bf16 %v551_v51, %v549_v50  ;;  %v667_v49 = vld [vmem:[#allocation2 + $0x860] sm:$0xff]  ;;  %v669_v50 = vld [vmem:[#allocation2 + $0x870] sm:$0xff]  ;;  %v672_v51 = vld [vmem:[#allocation2 + $0x888] sm:$0xff] }
  0x8c   :  { %2194 = vmatpush1.bf16.msra.mxu0 %v2193_v57  ;;  %v510_v57 = vld [vmem:[#allocation2 + $0x630] sm:$0xff] }
  0x8d   :  { %2196 = vmatprep.subr.bf16.mxu0 %v2195_v58  ;;  %v513_v58 = vld [vmem:[#allocation2 + $0x648] sm:$0xff]  ;;  %v2229_v60 = vpack.c.bf16 %v510_v57, %v508_v56  ;;  %v555_v57 = vld [vmem:[#allocation2 + $0x798] sm:$0xff] }
  0x8e   :  { %v2231_v61 = vpack.c.bf16 %v515_v59, %v513_v58  ;;  %v553_v56 = vld [vmem:[#allocation2 + $0x788] sm:$0xff] }
  0x8f   :  { %v2271_v59 = vpack.c.bf16 %v555_v57, %v553_v56  ;;  %v673_v56 = vld [vmem:[#allocation2 + $0x890] sm:$0xff]  ;;  %v676_v57 = vld [vmem:[#allocation2 + $0x8a8] sm:$0xff] }
  0x90   :  { %2198 = vmatpush1.bf16.msra.mxu0 %v2197_v63  ;;  %v514_v63 = vld [vmem:[#allocation2 + $0x650] sm:$0xff] }
  0x91   :  { %2200 = vmatprep.subr.bf16.mxu0 %v2199_v0  ;;  %v517_v0 = vld [vmem:[#allocation2 + $0x668] sm:$0xff]  ;;  %v2233_v2 = vpack.c.bf16 %v514_v63, %v512_v62  ;;  %v559_v63 = vld [vmem:[#allocation2 + $0x7b8] sm:$0xff] }
  0x92   :  { %v2235_v3 = vpack.c.bf16 %v519_v1, %v517_v0  ;;  %v557_v62 = vld [vmem:[#allocation2 + $0x7a8] sm:$0xff] }
  0x93   :  { %v2275_v1 = vpack.c.bf16 %v559_v63, %v557_v62  ;;  %v677_v62 = vld [vmem:[#allocation2 + $0x8b0] sm:$0xff]  ;;  %v680_v63 = vld [vmem:[#allocation2 + $0x8c8] sm:$0xff] }
  0x94   :  { %2202 = vmatpush1.bf16.msra.mxu0 %v2201_v5  ;;  %v518_v5 = vld [vmem:[#allocation2 + $0x670] sm:$0xff] }
  0x95   :  { %2204 = vmatprep.subr.bf16.mxu0 %v2203_v6  ;;  %v521_v6 = vld [vmem:[#allocation2 + $0x688] sm:$0xff]  ;;  %v2237_v8 = vpack.c.bf16 %v518_v5, %v516_v4  ;;  %v563_v5 = vld [vmem:[#allocation2 + $0x7d8] sm:$0xff] }
  0x96   :  { %v2239_v9 = vpack.c.bf16 %v523_v7, %v521_v6  ;;  %v561_v4 = vld [vmem:[#allocation2 + $0x7c8] sm:$0xff] }
  0x97   :  { %v2279_v7 = vpack.c.bf16 %v563_v5, %v561_v4  ;;  %v681_v4 = vld [vmem:[#allocation2 + $0x8d0] sm:$0xff]  ;;  %v684_v5 = vld [vmem:[#allocation2 + $0x8e8] sm:$0xff] }
  0x98   :  { %2206 = vmatpush1.bf16.msra.mxu0 %v2205_v11  ;;  %v522_v11 = vld [vmem:[#allocation2 + $0x690] sm:$0xff] }
  0x99   :  { %2208 = vmatprep.subr.bf16.mxu0 %v2207_v12  ;;  %v525_v12 = vld [vmem:[#allocation2 + $0x6a8] sm:$0xff]  ;;  %v2241_v14 = vpack.c.bf16 %v522_v11, %v520_v10 }
  0x9a   :  { %v2243_v15 = vpack.c.bf16 %v527_v13, %v525_v12 }
  0x9c   :  { %2210 = vmatpush1.bf16.msra.mxu0 %v2209_v17  ;;  %v526_v17 = vld [vmem:[#allocation2 + $0x6b0] sm:$0xff] }
  0x9d   :  { %2212 = vmatprep.subr.bf16.mxu0 %v2211_v18  ;;  %v529_v18 = vld [vmem:[#allocation2 + $0x6c8] sm:$0xff]  ;;  %v2245_v20 = vpack.c.bf16 %v526_v17, %v524_v16  ;;  %v560_v17 = vld [vmem:[#allocation2 + $0x7c0] sm:$0xff] }
  0x9e   :  { %v2247_v21 = vpack.c.bf16 %v531_v19, %v529_v18  ;;  %v562_v18 = vld [vmem:[#allocation2 + $0x7d0] sm:$0xff] }
  0x9f   :  { %v2281_v19 = vpack.c.bf16 %v562_v18, %v560_v17  ;;  %v692_v17 = vld [vmem:[#allocation2 + $0x928] sm:$0xff]  ;;  %v694_v18 = vld [vmem:[#allocation2 + $0x938] sm:$0xff] }
  0xa0   :  { %2214 = vmatpush1.bf16.msra.mxu0 %v2213_v23  ;;  %v530_v23 = vld [vmem:[#allocation2 + $0x6d0] sm:$0xff] }
  0xa1   :  { %2216 = vmatprep.subr.bf16.mxu0 %v2215_v24  ;;  %v533_v24 = vld [vmem:[#allocation2 + $0x6e8] sm:$0xff]  ;;  %v2249_v26 = vpack.c.bf16 %v530_v23, %v528_v22  ;;  %v564_v23 = vld [vmem:[#allocation2 + $0x7e0] sm:$0xff] }
  0xa2   :  { %v2251_v28 = vpack.c.bf16 %v535_v25, %v533_v24  ;;  %v566_v24 = vld [vmem:[#allocation2 + $0x7f0] sm:$0xff] }
  0xa3   :  { %v2285_v25 = vpack.c.bf16 %v566_v24, %v564_v23  ;;  %v696_v23 = vld [vmem:[#allocation2 + $0x948] sm:$0xff]  ;;  %v698_v24 = vld [vmem:[#allocation2 + $0x958] sm:$0xff] }
  0xa4   :  { %2218 = vmatpush1.bf16.msra.mxu0 %v2217_v40 }
  0xa5   :  { %2220 = vmatprep.subr.bf16.mxu0 %v2219_v43  ;;  %v542_v43 = vld [vmem:[#allocation2 + $0x730] sm:$0xff] }
  0xa8   :  { %2222 = vmatpush1.bf16.msra.mxu0 %v2221_v46  ;;  %v2261_v46 = vpack.c.bf16 %v542_v43, %v540_v42  ;;  %v663_v43 = vld [vmem:[#allocation2 + $0x840] sm:$0xff] }
 0x13e   :  { %v194_v32 = vpop.f32.mrb[0].mxu0 }
 0x13f   :  { %v195_v33 = vadd.f32 %v194_v32, %v121_v30  ;;  %v196_v34 = vpop.f32.mrb[1].mxu0  ;;  %v532_v30 = vld [vmem:[#allocation2 + $0x6e0] sm:$0xff]  ;;  %v537_v32 = vld [vmem:[#allocation2 + $0x708] sm:$0xff] }
 0x140   :  { %v197_v35 = vadd.f32 %v196_v34, %v125_v31  ;;  %v534_v31 = vld [vmem:[#allocation2 + $0x6f0] sm:$0xff] }
 0x141   :  { %v199_v37 = vmax.f32 %v195_v33, 0.0  ;;  %v539_v33 = vld [vmem:[#allocation2 + $0x718] sm:$0xff]  ;;  %v2253_v34 = vpack.c.bf16 %v534_v31, %v532_v30  ;;  %v655_v30 = vld [vmem:[#allocation2 + $0x800] sm:$0xff] }
 0x142   :  { %v200_v36 = vmax.f32 %v197_v35, 0.0  ;;  %v2255_v35 = vpack.c.bf16 %v539_v33, %v537_v32  ;;  %v657_v32 = vld [vmem:[#allocation2 + $0x810] sm:$0xff]  ;;  %v660_v33 = vld [vmem:[#allocation2 + $0x828] sm:$0xff] }
 0x144   :  { %343 = vmatprep.mubr.f32.mxu1 %v200_v36  ;;  %v536_v36 = vld [vmem:[#allocation2 + $0x700] sm:$0xff] }
 0x145   :  { %344 = vmatmul.mubr.f32.vlgmr.msra.gmra.mrb[0].mxu1 %v199_v37  ;;  %v538_v37 = vld [vmem:[#allocation2 + $0x710] sm:$0xff] }
 0x146   :  { %2226 = vmatpush1.bf16.msra.mxu1 %v2225_v54  ;;  %v2257_v40 = vpack.c.bf16 %v538_v37, %v536_v36  ;;  %v548_v54 = vld [vmem:[#allocation2 + $0x760] sm:$0xff] }
 0x147   :  { %2228 = vmatprep.subr.bf16.mxu1 %v2227_v55  ;;  %v550_v55 = vld [vmem:[#allocation2 + $0x770] sm:$0xff]  ;;  %v659_v37 = vld [vmem:[#allocation2 + $0x820] sm:$0xff] }
 0x148   :  { %v2269_v58 = vpack.c.bf16 %v550_v55, %v548_v54  ;;  %v671_v55 = vld [vmem:[#allocation2 + $0x880] sm:$0xff] }
 0x14a   :  { %2230 = vmatpush1.bf16.msra.mxu1 %v2229_v60  ;;  %v552_v60 = vld [vmem:[#allocation2 + $0x780] sm:$0xff] }
 0x14b   :  { %2232 = vmatprep.subr.bf16.mxu1 %v2231_v61  ;;  %v554_v61 = vld [vmem:[#allocation2 + $0x790] sm:$0xff] }
 0x14c   :  { %v2273_v0 = vpack.c.bf16 %v554_v61, %v552_v60  ;;  %v675_v61 = vld [vmem:[#allocation2 + $0x8a0] sm:$0xff] }
 0x14e   :  { %2234 = vmatpush1.bf16.msra.mxu1 %v2233_v2  ;;  %v556_v2 = vld [vmem:[#allocation2 + $0x7a0] sm:$0xff] }
 0x14f   :  { %2236 = vmatprep.subr.bf16.mxu1 %v2235_v3  ;;  %v558_v3 = vld [vmem:[#allocation2 + $0x7b0] sm:$0xff] }
 0x150   :  { %v2277_v6 = vpack.c.bf16 %v558_v3, %v556_v2  ;;  %v679_v3 = vld [vmem:[#allocation2 + $0x8c0] sm:$0xff] }
 0x152   :  { %2238 = vmatpush1.bf16.msra.mxu1 %v2237_v8  ;;  %v267_v8 = vld [vmem:[#allocation5 + $0x2] sm:$0x3] }
 0x153   :  { %2240 = vmatprep.subr.bf16.mxu1 %v2239_v9  ;;  %v272_v9 = vrot.slane %v267_v8, %v3036_v27  ;;  %v276_v10 = vrot.slane %v267_v8, %v3038_v29 }
 0x156   :  { %2242 = vmatpush1.bf16.msra.mxu1 %v2241_v14 }
 0x157   :  { %2244 = vmatprep.subr.bf16.mxu1 %v2243_v15 }
 0x15a   :  { %2246 = vmatpush1.bf16.msra.mxu1 %v2245_v20  ;;  %v565_v20 = vld [vmem:[#allocation2 + $0x7e8] sm:$0xff] }
 0x15b   :  { %2248 = vmatprep.subr.bf16.mxu1 %v2247_v21  ;;  %v567_v21 = vld [vmem:[#allocation2 + $0x7f8] sm:$0xff] }
 0x15c   :  { %v2283_v22 = vpack.c.bf16 %v567_v21, %v565_v20  ;;  %v2323_v20 = vpack.c.bf16 %v694_v18, %v692_v17  ;;  %v691_v21 = vld [vmem:[#allocation2 + $0x920] sm:$0xff]  ;;  %v812_v17 = vld [vmem:[#allocation2 + $0xa30] sm:$0xff]  ;;  %v815_v18 = vld [vmem:[#allocation2 + $0xa48] sm:$0xff] }
 0x15e   :  { %2250 = vmatpush1.bf16.msra.mxu1 %v2249_v26  ;;  %v656_v26 = vld [vmem:[#allocation2 + $0x808] sm:$0xff] }
 0x15f   :  { %2252 = vmatprep.subr.bf16.mxu1 %v2251_v28  ;;  %v658_v28 = vld [vmem:[#allocation2 + $0x818] sm:$0xff] }
 0x160   :  { %v2287_v31 = vpack.c.bf16 %v658_v28, %v656_v26  ;;  %v2327_v26 = vpack.c.bf16 %v698_v24, %v696_v23  ;;  %v695_v28 = vld [vmem:[#allocation2 + $0x940] sm:$0xff]  ;;  %v816_v23 = vld [vmem:[#allocation2 + $0xa50] sm:$0xff]  ;;  %v819_v24 = vld [vmem:[#allocation2 + $0xa68] sm:$0xff] }
 0x162   :  { %2254 = vmatpush1.bf16.msra.mxu1 %v2253_v34  ;;  %v662_v34 = vld [vmem:[#allocation2 + $0x838] sm:$0xff]  ;;  %2288 = vmatprep.subr.bf16.mxu0 %v2287_v31  ;;  %v700_v31 = vld [vmem:[#allocation2 + $0x968] sm:$0xff] }
 0x163   :  { %2256 = vmatprep.subr.bf16.mxu1 %v2255_v35  ;;  %v2289_v35 = vpack.c.bf16 %v657_v32, %v655_v30  ;;  %v2291_v36 = vpack.c.bf16 %v662_v34, %v660_v33  ;;  %v697_v30 = vld [vmem:[#allocation2 + $0x950] sm:$0xff]  ;;  %v702_v32 = vld [vmem:[#allocation2 + $0x978] sm:$0xff] }
 0x164   :  { %v2329_v33 = vpack.c.bf16 %v697_v30, %v695_v28  ;;  %v2331_v34 = vpack.c.bf16 %v702_v32, %v700_v31  ;;  %v818_v30 = vld [vmem:[#allocation2 + $0xa60] sm:$0xff]  ;;  %v820_v31 = vld [vmem:[#allocation2 + $0xa70] sm:$0xff]  ;;  %v823_v32 = vld [vmem:[#allocation2 + $0xa88] sm:$0xff] }
 0x166   :  { %2258 = vmatpush1.bf16.msra.mxu1 %v2257_v40  ;;  %v666_v40 = vld [vmem:[#allocation2 + $0x858] sm:$0xff] }
 0x167   :  { %2260 = vmatprep.subr.bf16.mxu1 %v2259_v41  ;;  %v2293_v41 = vpack.c.bf16 %v661_v38, %v659_v37  ;;  %v2295_v42 = vpack.c.bf16 %v666_v40, %v664_v39  ;;  %v704_v37 = vld [vmem:[#allocation2 + $0x988] sm:$0xff]  ;;  %v706_v38 = vld [vmem:[#allocation2 + $0x998] sm:$0xff] }
 0x168   :  { %v2335_v40 = vpack.c.bf16 %v706_v38, %v704_v37  ;;  %v824_v37 = vld [vmem:[#allocation2 + $0xa90] sm:$0xff]  ;;  %v827_v38 = vld [vmem:[#allocation2 + $0xaa8] sm:$0xff] }
 0x16a   :  { %2262 = vmatpush1.bf16.msra.mxu1 %v2261_v46  ;;  %v670_v46 = vld [vmem:[#allocation2 + $0x878] sm:$0xff] }
 0x16b   :  { %2264 = vmatprep.subr.bf16.mxu1 %v2263_v47  ;;  %v2297_v47 = vpack.c.bf16 %v665_v44, %v663_v43  ;;  %v2299_v48 = vpack.c.bf16 %v670_v46, %v668_v45  ;;  %v708_v43 = vld [vmem:[#allocation2 + $0x9a8] sm:$0xff]  ;;  %v710_v44 = vld [vmem:[#allocation2 + $0x9b8] sm:$0xff] }
 0x16c   :  { %v2339_v46 = vpack.c.bf16 %v710_v44, %v708_v43  ;;  %v828_v43 = vld [vmem:[#allocation2 + $0xab0] sm:$0xff]  ;;  %v831_v44 = vld [vmem:[#allocation2 + $0xac8] sm:$0xff] }
 0x16e   :  { %2266 = vmatpush1.bf16.msra.mxu1 %v2265_v52  ;;  %v674_v52 = vld [vmem:[#allocation2 + $0x898] sm:$0xff] }
 0x16f   :  { %2268 = vmatprep.subr.bf16.mxu1 %v2267_v53  ;;  %v2301_v53 = vpack.c.bf16 %v669_v50, %v667_v49  ;;  %v2303_v54 = vpack.c.bf16 %v674_v52, %v672_v51  ;;  %v712_v49 = vld [vmem:[#allocation2 + $0x9c8] sm:$0xff]  ;;  %v714_v50 = vld [vmem:[#allocation2 + $0x9d8] sm:$0xff] }
 0x170   :  { %v2343_v52 = vpack.c.bf16 %v714_v50, %v712_v49  ;;  %v832_v49 = vld [vmem:[#allocation2 + $0xad0] sm:$0xff]  ;;  %v835_v50 = vld [vmem:[#allocation2 + $0xae8] sm:$0xff] }
 0x172   :  { %2270 = vmatpush1.bf16.msra.mxu1 %v2269_v58  ;;  %v678_v58 = vld [vmem:[#allocation2 + $0x8b8] sm:$0xff] }
 0x173   :  { %2272 = vmatprep.subr.bf16.mxu1 %v2271_v59  ;;  %v2305_v59 = vpack.c.bf16 %v673_v56, %v671_v55  ;;  %v2307_v60 = vpack.c.bf16 %v678_v58, %v676_v57 }
 0x176   :  { %2274 = vmatpush1.bf16.msra.mxu1 %v2273_v0  ;;  %v682_v0 = vld [vmem:[#allocation2 + $0x8d8] sm:$0xff] }
 0x177   :  { %2276 = vmatprep.subr.bf16.mxu1 %v2275_v1  ;;  %v2309_v1 = vpack.c.bf16 %v677_v62, %v675_v61  ;;  %v2311_v2 = vpack.c.bf16 %v682_v0, %v680_v63  ;;  %v711_v62 = vld [vmem:[#allocation2 + $0x9c0] sm:$0xff]  ;;  %v713_v63 = vld [vmem:[#allocation2 + $0x9d0] sm:$0xff] }
 0x178   :  { %v2345_v0 = vpack.c.bf16 %v713_v63, %v711_v62  ;;  %v843_v62 = vld [vmem:[#allocation2 + $0xb28] sm:$0xff]  ;;  %v845_v63 = vld [vmem:[#allocation2 + $0xb38] sm:$0xff] }
 0x17a   :  { %2278 = vmatpush1.bf16.msra.mxu1 %v2277_v6  ;;  %v686_v6 = vld [vmem:[#allocation2 + $0x8f8] sm:$0xff] }
 0x17b   :  { %2280 = vmatprep.subr.bf16.mxu1 %v2279_v7  ;;  %v2313_v7 = vpack.c.bf16 %v681_v4, %v679_v3  ;;  %v2315_v8 = vpack.c.bf16 %v686_v6, %v684_v5  ;;  %v715_v4 = vld [vmem:[#allocation2 + $0x9e0] sm:$0xff]  ;;  %v717_v5 = vld [vmem:[#allocation2 + $0x9f0] sm:$0xff] }
 0x17c   :  { %v2349_v6 = vpack.c.bf16 %v717_v5, %v715_v4  ;;  %v847_v4 = vld [vmem:[#allocation2 + $0xb48] sm:$0xff]  ;;  %v849_v5 = vld [vmem:[#allocation2 + $0xb58] sm:$0xff] }
 0x17e   :  { %2282 = vmatpush1.bf16.msra.mxu1 %v2281_v19 }
 0x17f   :  { %2284 = vmatprep.subr.bf16.mxu1 %v2283_v22  ;;  %v693_v22 = vld [vmem:[#allocation2 + $0x930] sm:$0xff] }
 0x182   :  { %2286 = vmatpush1.bf16.msra.mxu1 %v2285_v25  ;;  %v2325_v25 = vpack.c.bf16 %v693_v22, %v691_v21  ;;  %v814_v22 = vld [vmem:[#allocation2 + $0xa40] sm:$0xff] }
 0x218   :  { %v345_v11 = vpop.f32.mrb[0].mxu1 }
 0x219   :  { %v346_v12 = vadd.f32 %v345_v11, %v272_v9  ;;  %v347_v13 = vpop.f32.mrb[1].mxu1  ;;  %v683_v9 = vld [vmem:[#allocation2 + $0x8e0] sm:$0xff]  ;;  %v688_v11 = vld [vmem:[#allocation2 + $0x908] sm:$0xff] }
 0x21a   :  { %v348_v14 = vadd.f32 %v347_v13, %v276_v10  ;;  %v685_v10 = vld [vmem:[#allocation2 + $0x8f0] sm:$0xff] }
 0x21b   :  { %v350_v16 = vmax.f32 %v346_v12, 0.0  ;;  %v690_v12 = vld [vmem:[#allocation2 + $0x918] sm:$0xff]  ;;  %v2317_v13 = vpack.c.bf16 %v685_v10, %v683_v9  ;;  %v806_v9 = vld [vmem:[#allocation2 + $0xa00] sm:$0xff] }
 0x21c   :  { %v351_v15 = vmax.f32 %v348_v14, 0.0  ;;  %v2319_v14 = vpack.c.bf16 %v690_v12, %v688_v11  ;;  %v808_v11 = vld [vmem:[#allocation2 + $0xa10] sm:$0xff]  ;;  %v811_v12 = vld [vmem:[#allocation2 + $0xa28] sm:$0xff] }
 0x21e   :  { %494 = vmatprep.mubr.f32.mxu0 %v351_v15  ;;  %v687_v15 = vld [vmem:[#allocation2 + $0x900] sm:$0xff] }
 0x21f   :  { %495 = vmatmul.mubr.f32.vlgmr.msra.gmra.mrb[2].mxu0 %v350_v16  ;;  %v689_v16 = vld [vmem:[#allocation2 + $0x910] sm:$0xff] }
 0x220   :  { %2290 = vmatpush1.bf16.msra.mxu0 %v2289_v35  ;;  %v2321_v19 = vpack.c.bf16 %v689_v16, %v687_v15  ;;  %v699_v35 = vld [vmem:[#allocation2 + $0x960] sm:$0xff] }
 0x221   :  { %2292 = vmatprep.subr.bf16.mxu0 %v2291_v36  ;;  %v701_v36 = vld [vmem:[#allocation2 + $0x970] sm:$0xff]  ;;  %v810_v16 = vld [vmem:[#allocation2 + $0xa20] sm:$0xff] }
 0x222   :  { %v2333_v39 = vpack.c.bf16 %v701_v36, %v699_v35  ;;  %v822_v36 = vld [vmem:[#allocation2 + $0xa80] sm:$0xff] }
 0x224   :  { %2294 = vmatpush1.bf16.msra.mxu0 %v2293_v41  ;;  %v703_v41 = vld [vmem:[#allocation2 + $0x980] sm:$0xff] }
 0x225   :  { %2296 = vmatprep.subr.bf16.mxu0 %v2295_v42  ;;  %v705_v42 = vld [vmem:[#allocation2 + $0x990] sm:$0xff] }
 0x226   :  { %v2337_v45 = vpack.c.bf16 %v705_v42, %v703_v41  ;;  %v826_v42 = vld [vmem:[#allocation2 + $0xaa0] sm:$0xff] }
 0x228   :  { %2298 = vmatpush1.bf16.msra.mxu0 %v2297_v47  ;;  %v707_v47 = vld [vmem:[#allocation2 + $0x9a0] sm:$0xff] }
 0x229   :  { %2300 = vmatprep.subr.bf16.mxu0 %v2299_v48  ;;  %v709_v48 = vld [vmem:[#allocation2 + $0x9b0] sm:$0xff] }
 0x22a   :  { %v2341_v51 = vpack.c.bf16 %v709_v48, %v707_v47  ;;  %v830_v48 = vld [vmem:[#allocation2 + $0xac0] sm:$0xff] }
 0x22c   :  { %2302 = vmatpush1.bf16.msra.mxu0 %v2301_v53  ;;  %v418_v53 = vld [vmem:[#allocation5 + $0x4] sm:$0x3] }
 0x22d   :  { %2304 = vmatprep.subr.bf16.mxu0 %v2303_v54  ;;  %v423_v54 = vrot.slane %v418_v53, %v3036_v27  ;;  %v427_v55 = vrot.slane %v418_v53, %v3038_v29 }
 0x230   :  { %2306 = vmatpush1.bf16.msra.mxu0 %v2305_v59 }
 0x231   :  { %2308 = vmatprep.subr.bf16.mxu0 %v2307_v60 }
 0x234   :  { %2310 = vmatpush1.bf16.msra.mxu0 %v2309_v1  ;;  %v716_v1 = vld [vmem:[#allocation2 + $0x9e8] sm:$0xff] }
 0x235   :  { %2312 = vmatprep.subr.bf16.mxu0 %v2311_v2  ;;  %v718_v2 = vld [vmem:[#allocation2 + $0x9f8] sm:$0xff] }
 0x236   :  { %v2347_v3 = vpack.c.bf16 %v718_v2, %v716_v1  ;;  %v2387_v1 = vpack.c.bf16 %v845_v63, %v843_v62  ;;  %v842_v2 = vld [vmem:[#allocation2 + $0xb20] sm:$0xff]  ;;  %v961_v62 = vld [vmem:[#allocation2 + $0xc30] sm:$0xff]  ;;  %v964_v63 = vld [vmem:[#allocation2 + $0xc48] sm:$0xff] }
 0x238   :  { %2314 = vmatpush1.bf16.msra.mxu0 %v2313_v7  ;;  %v807_v7 = vld [vmem:[#allocation2 + $0xa08] sm:$0xff] }
 0x239   :  { %2316 = vmatprep.subr.bf16.mxu0 %v2315_v8  ;;  %v809_v8 = vld [vmem:[#allocation2 + $0xa18] sm:$0xff] }
 0x23a   :  { %v2351_v10 = vpack.c.bf16 %v809_v8, %v807_v7  ;;  %v2391_v7 = vpack.c.bf16 %v849_v5, %v847_v4  ;;  %v846_v8 = vld [vmem:[#allocation2 + $0xb40] sm:$0xff]  ;;  %v965_v4 = vld [vmem:[#allocation2 + $0xc50] sm:$0xff]  ;;  %v968_v5 = vld [vmem:[#allocation2 + $0xc68] sm:$0xff] }
 0x23c   :  { %2318 = vmatpush1.bf16.msra.mxu0 %v2317_v13  ;;  %v813_v13 = vld [vmem:[#allocation2 + $0xa38] sm:$0xff]  ;;  %2352 = vmatprep.subr.bf16.mxu1 %v2351_v10  ;;  %v851_v10 = vld [vmem:[#allocation2 + $0xb68] sm:$0xff] }
 0x23d   :  { %2320 = vmatprep.subr.bf16.mxu0 %v2319_v14  ;;  %v2353_v14 = vpack.c.bf16 %v808_v11, %v806_v9  ;;  %v2355_v15 = vpack.c.bf16 %v813_v13, %v811_v12  ;;  %v848_v9 = vld [vmem:[#allocation2 + $0xb50] sm:$0xff]  ;;  %v853_v11 = vld [vmem:[#allocation2 + $0xb78] sm:$0xff] }
 0x23e   :  { %v2393_v12 = vpack.c.bf16 %v848_v9, %v846_v8  ;;  %v2395_v13 = vpack.c.bf16 %v853_v11, %v851_v10  ;;  %v967_v9 = vld [vmem:[#allocation2 + $0xc60] sm:$0xff]  ;;  %v969_v10 = vld [vmem:[#allocation2 + $0xc70] sm:$0xff]  ;;  %v972_v11 = vld [vmem:[#allocation2 + $0xc88] sm:$0xff] }
 0x240   :  { %2322 = vmatpush1.bf16.msra.mxu0 %v2321_v19  ;;  %v817_v19 = vld [vmem:[#allocation2 + $0xa58] sm:$0xff] }
 0x241   :  { %2324 = vmatprep.subr.bf16.mxu0 %v2323_v20  ;;  %v2357_v20 = vpack.c.bf16 %v812_v17, %v810_v16  ;;  %v2359_v21 = vpack.c.bf16 %v817_v19, %v815_v18  ;;  %v855_v16 = vld [vmem:[#allocation2 + $0xb88] sm:$0xff]  ;;  %v857_v17 = vld [vmem:[#allocation2 + $0xb98] sm:$0xff] }
 0x242   :  { %v2399_v19 = vpack.c.bf16 %v857_v17, %v855_v16  ;;  %v973_v16 = vld [vmem:[#allocation2 + $0xc90] sm:$0xff]  ;;  %v976_v17 = vld [vmem:[#allocation2 + $0xca8] sm:$0xff] }
 0x244   :  { %2326 = vmatpush1.bf16.msra.mxu0 %v2325_v25  ;;  %v821_v25 = vld [vmem:[#allocation2 + $0xa78] sm:$0xff] }
 0x245   :  { %2328 = vmatprep.subr.bf16.mxu0 %v2327_v26  ;;  %v2361_v26 = vpack.c.bf16 %v816_v23, %v814_v22  ;;  %v2363_v28 = vpack.c.bf16 %v821_v25, %v819_v24  ;;  %v859_v22 = vld [vmem:[#allocation2 + $0xba8] sm:$0xff]  ;;  %v861_v23 = vld [vmem:[#allocation2 + $0xbb8] sm:$0xff] }
 0x246   :  { %v2403_v25 = vpack.c.bf16 %v861_v23, %v859_v22  ;;  %v977_v22 = vld [vmem:[#allocation2 + $0xcb0] sm:$0xff]  ;;  %v980_v23 = vld [vmem:[#allocation2 + $0xcc8] sm:$0xff] }
 0x248   :  { %2330 = vmatpush1.bf16.msra.mxu0 %v2329_v33  ;;  %v825_v33 = vld [vmem:[#allocation2 + $0xa98] sm:$0xff] }
 0x249   :  { %2332 = vmatprep.subr.bf16.mxu0 %v2331_v34  ;;  %v2365_v34 = vpack.c.bf16 %v820_v31, %v818_v30  ;;  %v2367_v35 = vpack.c.bf16 %v825_v33, %v823_v32  ;;  %v863_v30 = vld [vmem:[#allocation2 + $0xbc8] sm:$0xff]  ;;  %v865_v31 = vld [vmem:[#allocation2 + $0xbd8] sm:$0xff] }
 0x24a   :  { %v2407_v33 = vpack.c.bf16 %v865_v31, %v863_v30  ;;  %v981_v30 = vld [vmem:[#allocation2 + $0xcd0] sm:$0xff]  ;;  %v984_v31 = vld [vmem:[#allocation2 + $0xce8] sm:$0xff] }
 0x24c   :  { %2334 = vmatpush1.bf16.msra.mxu0 %v2333_v39  ;;  %v829_v39 = vld [vmem:[#allocation2 + $0xab8] sm:$0xff] }
 0x24d   :  { %2336 = vmatprep.subr.bf16.mxu0 %v2335_v40  ;;  %v2369_v40 = vpack.c.bf16 %v824_v37, %v822_v36  ;;  %v2371_v41 = vpack.c.bf16 %v829_v39, %v827_v38 }
 0x250   :  { %2338 = vmatpush1.bf16.msra.mxu0 %v2337_v45  ;;  %v833_v45 = vld [vmem:[#allocation2 + $0xad8] sm:$0xff] }
 0x251   :  { %2340 = vmatprep.subr.bf16.mxu0 %v2339_v46  ;;  %v2373_v46 = vpack.c.bf16 %v828_v43, %v826_v42  ;;  %v2375_v47 = vpack.c.bf16 %v833_v45, %v831_v44  ;;  %v862_v43 = vld [vmem:[#allocation2 + $0xbc0] sm:$0xff]  ;;  %v864_v44 = vld [vmem:[#allocation2 + $0xbd0] sm:$0xff] }
 0x252   :  { %v2409_v45 = vpack.c.bf16 %v864_v44, %v862_v43  ;;  %v992_v43 = vld [vmem:[#allocation2 + $0xd28] sm:$0xff]  ;;  %v994_v44 = vld [vmem:[#allocation2 + $0xd38] sm:$0xff] }
 0x254   :  { %2342 = vmatpush1.bf16.msra.mxu0 %v2341_v51  ;;  %v837_v51 = vld [vmem:[#allocation2 + $0xaf8] sm:$0xff] }
 0x255   :  { %2344 = vmatprep.subr.bf16.mxu0 %v2343_v52  ;;  %v2377_v52 = vpack.c.bf16 %v832_v49, %v830_v48  ;;  %v2379_v53 = vpack.c.bf16 %v837_v51, %v835_v50  ;;  %v866_v49 = vld [vmem:[#allocation2 + $0xbe0] sm:$0xff]  ;;  %v868_v50 = vld [vmem:[#allocation2 + $0xbf0] sm:$0xff] }
 0x256   :  { %v2413_v51 = vpack.c.bf16 %v868_v50, %v866_v49  ;;  %v996_v49 = vld [vmem:[#allocation2 + $0xd48] sm:$0xff]  ;;  %v998_v50 = vld [vmem:[#allocation2 + $0xd58] sm:$0xff] }
 0x258   :  { %2346 = vmatpush1.bf16.msra.mxu0 %v2345_v0 }
 0x259   :  { %2348 = vmatprep.subr.bf16.mxu0 %v2347_v3  ;;  %v844_v3 = vld [vmem:[#allocation2 + $0xb30] sm:$0xff] }
 0x25c   :  { %2350 = vmatpush1.bf16.msra.mxu0 %v2349_v6  ;;  %v2389_v6 = vpack.c.bf16 %v844_v3, %v842_v2  ;;  %v963_v3 = vld [vmem:[#allocation2 + $0xc40] sm:$0xff] }
 0x2f2   :  { %v496_v56 = vpop.f32.mrb[2].mxu0 }
 0x2f3   :  { %v497_v57 = vadd.f32 %v496_v56, %v423_v54  ;;  %v498_v58 = vpop.f32.mrb[3].mxu0  ;;  %v834_v54 = vld [vmem:[#allocation2 + $0xae0] sm:$0xff]  ;;  %v839_v56 = vld [vmem:[#allocation2 + $0xb08] sm:$0xff] }
 0x2f4   :  { %v499_v59 = vadd.f32 %v498_v58, %v427_v55  ;;  %v836_v55 = vld [vmem:[#allocation2 + $0xaf0] sm:$0xff] }
 0x2f5   :  { %v501_v61 = vmax.f32 %v497_v57, 0.0  ;;  %v841_v57 = vld [vmem:[#allocation2 + $0xb18] sm:$0xff]  ;;  %v2381_v58 = vpack.c.bf16 %v836_v55, %v834_v54  ;;  %v955_v54 = vld [vmem:[#allocation2 + $0xc00] sm:$0xff] }
 0x2f6   :  { %v502_v60 = vmax.f32 %v499_v59, 0.0  ;;  %v2383_v59 = vpack.c.bf16 %v841_v57, %v839_v56  ;;  %v957_v56 = vld [vmem:[#allocation2 + $0xc10] sm:$0xff]  ;;  %v960_v57 = vld [vmem:[#allocation2 + $0xc28] sm:$0xff] }
 0x2f8   :  { %645 = vmatprep.mubr.f32.mxu1 %v502_v60  ;;  %v838_v60 = vld [vmem:[#allocation2 + $0xb00] sm:$0xff] }
 0x2f9   :  { %646 = vmatmul.mubr.f32.vlgmr.msra.gmra.mrb[2].mxu1 %v501_v61  ;;  %v840_v61 = vld [vmem:[#allocation2 + $0xb10] sm:$0xff] }
 0x2fa   :  { %2354 = vmatpush1.bf16.msra.mxu1 %v2353_v14  ;;  %v2385_v0 = vpack.c.bf16 %v840_v61, %v838_v60  ;;  %v850_v14 = vld [vmem:[#allocation2 + $0xb60] sm:$0xff] }
 0x2fb   :  { %2356 = vmatprep.subr.bf16.mxu1 %v2355_v15  ;;  %v852_v15 = vld [vmem:[#allocation2 + $0xb70] sm:$0xff]  ;;  %v959_v61 = vld [vmem:[#allocation2 + $0xc20] sm:$0xff] }
 0x2fc   :  { %v2397_v18 = vpack.c.bf16 %v852_v15, %v850_v14  ;;  %v971_v15 = vld [vmem:[#allocation2 + $0xc80] sm:$0xff] }
 0x2fe   :  { %2358 = vmatpush1.bf16.msra.mxu1 %v2357_v20  ;;  %v854_v20 = vld [vmem:[#allocation2 + $0xb80] sm:$0xff] }
 0x2ff   :  { %2360 = vmatprep.subr.bf16.mxu1 %v2359_v21  ;;  %v856_v21 = vld [vmem:[#allocation2 + $0xb90] sm:$0xff] }
 0x300   :  { %v2401_v24 = vpack.c.bf16 %v856_v21, %v854_v20  ;;  %v975_v21 = vld [vmem:[#allocation2 + $0xca0] sm:$0xff] }
 0x302   :  { %2362 = vmatpush1.bf16.msra.mxu1 %v2361_v26  ;;  %v858_v26 = vld [vmem:[#allocation2 + $0xba0] sm:$0xff] }
 0x303   :  { %2364 = vmatprep.subr.bf16.mxu1 %v2363_v28  ;;  %v860_v28 = vld [vmem:[#allocation2 + $0xbb0] sm:$0xff] }
 0x304   :  { %v2405_v32 = vpack.c.bf16 %v860_v28, %v858_v26  ;;  %v979_v28 = vld [vmem:[#allocation2 + $0xcc0] sm:$0xff] }
 0x306   :  { %2366 = vmatpush1.bf16.msra.mxu1 %v2365_v34  ;;  %v569_v34 = vld [vmem:[#allocation5 + $0x6] sm:$0x3] }
 0x307   :  { %2368 = vmatprep.subr.bf16.mxu1 %v2367_v35  ;;  %v574_v35 = vrot.slane %v569_v34, %v3036_v27  ;;  %v578_v36 = vrot.slane %v569_v34, %v3038_v29 }
 0x30a   :  { %2370 = vmatpush1.bf16.msra.mxu1 %v2369_v40 }
 0x30b   :  { %2372 = vmatprep.subr.bf16.mxu1 %v2371_v41 }
 0x30e   :  { %2374 = vmatpush1.bf16.msra.mxu1 %v2373_v46  ;;  %v867_v46 = vld [vmem:[#allocation2 + $0xbe8] sm:$0xff] }
 0x30f   :  { %2376 = vmatprep.subr.bf16.mxu1 %v2375_v47  ;;  %v869_v47 = vld [vmem:[#allocation2 + $0xbf8] sm:$0xff] }
 0x310   :  { %v2411_v48 = vpack.c.bf16 %v869_v47, %v867_v46  ;;  %v2451_v46 = vpack.c.bf16 %v994_v44, %v992_v43  ;;  %v991_v47 = vld [vmem:[#allocation2 + $0xd20] sm:$0xff]  ;;  %v1120_v43 = vld [vmem:[#allocation2 + $0xe30] sm:$0xff] }
 0x312   :  { %2378 = vmatpush1.bf16.msra.mxu1 %v2377_v52  ;;  %v956_v52 = vld [vmem:[#allocation2 + $0xc08] sm:$0xff] }
 0x313   :  { %2380 = vmatprep.subr.bf16.mxu1 %v2379_v53  ;;  %v958_v53 = vld [vmem:[#allocation2 + $0xc18] sm:$0xff] }
 0x314   :  { %v2415_v55 = vpack.c.bf16 %v958_v53, %v956_v52  ;;  %v2455_v52 = vpack.c.bf16 %v998_v50, %v996_v49  ;;  %v995_v53 = vld [vmem:[#allocation2 + $0xd40] sm:$0xff] }
 0x316   :  { %2382 = vmatpush1.bf16.msra.mxu1 %v2381_v58  ;;  %v962_v58 = vld [vmem:[#allocation2 + $0xc38] sm:$0xff]  ;;  %2416 = vmatprep.subr.bf16.mxu0 %v2415_v55  ;;  %v1000_v55 = vld [vmem:[#allocation2 + $0xd68] sm:$0xff] }
 0x317   :  { %2384 = vmatprep.subr.bf16.mxu1 %v2383_v59  ;;  %v2417_v59 = vpack.c.bf16 %v957_v56, %v955_v54  ;;  %v2419_v60 = vpack.c.bf16 %v962_v58, %v960_v57  ;;  %v997_v54 = vld [vmem:[#allocation2 + $0xd50] sm:$0xff]  ;;  %v1002_v56 = vld [vmem:[#allocation2 + $0xd78] sm:$0xff] }
 0x318   :  { %v2457_v57 = vpack.c.bf16 %v997_v54, %v995_v53  ;;  %v2459_v58 = vpack.c.bf16 %v1002_v56, %v1000_v55  ;;  %v1125_v53 = vld [vmem:[#allocation2 + $0xe58] sm:$0xff]  ;;  %v1122_v55 = vld [vmem:[#allocation2 + $0xe40] sm:$0xff]  ;;  %v1124_v56 = vld [vmem:[#allocation2 + $0xe50] sm:$0xff] }
 0x31a   :  { %2386 = vmatpush1.bf16.msra.mxu1 %v2385_v0  ;;  %v966_v0 = vld [vmem:[#allocation2 + $0xc58] sm:$0xff] }
 0x31b   :  { %2388 = vmatprep.subr.bf16.mxu1 %v2387_v1  ;;  %v2421_v1 = vpack.c.bf16 %v961_v62, %v959_v61  ;;  %v2423_v2 = vpack.c.bf16 %v966_v0, %v964_v63  ;;  %v1004_v61 = vld [vmem:[#allocation2 + $0xd88] sm:$0xff]  ;;  %v1006_v62 = vld [vmem:[#allocation2 + $0xd98] sm:$0xff] }
 0x31c   :  { %v2463_v0 = vpack.c.bf16 %v1006_v62, %v1004_v61  ;;  %v1126_v61 = vld [vmem:[#allocation2 + $0xe60] sm:$0xff]  ;;  %v1128_v62 = vld [vmem:[#allocation2 + $0xe70] sm:$0xff] }
 0x31e   :  { %2390 = vmatpush1.bf16.msra.mxu1 %v2389_v6  ;;  %v970_v6 = vld [vmem:[#allocation2 + $0xc78] sm:$0xff] }
 0x31f   :  { %2392 = vmatprep.subr.bf16.mxu1 %v2391_v7  ;;  %v2425_v7 = vpack.c.bf16 %v965_v4, %v963_v3  ;;  %v2427_v8 = vpack.c.bf16 %v970_v6, %v968_v5  ;;  %v1008_v3 = vld [vmem:[#allocation2 + $0xda8] sm:$0xff]  ;;  %v1010_v4 = vld [vmem:[#allocation2 + $0xdb8] sm:$0xff] }
 0x320   :  { %v2467_v6 = vpack.c.bf16 %v1010_v4, %v1008_v3  ;;  %v1130_v3 = vld [vmem:[#allocation2 + $0xe80] sm:$0xff]  ;;  %v1132_v4 = vld [vmem:[#allocation2 + $0xe90] sm:$0xff] }
 0x322   :  { %2394 = vmatpush1.bf16.msra.mxu1 %v2393_v12  ;;  %v974_v12 = vld [vmem:[#allocation2 + $0xc98] sm:$0xff] }
 0x323   :  { %2396 = vmatprep.subr.bf16.mxu1 %v2395_v13  ;;  %v2429_v13 = vpack.c.bf16 %v969_v10, %v967_v9  ;;  %v2431_v14 = vpack.c.bf16 %v974_v12, %v972_v11  ;;  %v1012_v9 = vld [vmem:[#allocation2 + $0xdc8] sm:$0xff]  ;;  %v1014_v10 = vld [vmem:[#allocation2 + $0xdd8] sm:$0xff] }
 0x324   :  { %v2471_v12 = vpack.c.bf16 %v1014_v10, %v1012_v9  ;;  %v1136_v10 = vld [vmem:[#allocation2 + $0xeb0] sm:$0xff] }
 0x326   :  { %2398 = vmatpush1.bf16.msra.mxu1 %v2397_v18  ;;  %v978_v18 = vld [vmem:[#allocation2 + $0xcb8] sm:$0xff] }
 0x327   :  { %2400 = vmatprep.subr.bf16.mxu1 %v2399_v19  ;;  %v2433_v19 = vpack.c.bf16 %v973_v16, %v971_v15  ;;  %v2435_v20 = vpack.c.bf16 %v978_v18, %v976_v17  ;;  %v720_v16 = vld [vmem:[#allocation5 + $0x8] sm:$0x3] }
 0x328   :  { %v725_v17 = vrot.slane %v720_v16, %v3036_v27  ;;  %v729_v18 = vrot.slane %v720_v16, %v3038_v29  ;;  %v1138_v16 = vld [vmem:[#allocation2 + $0xec0] sm:$0xff] }
 0x32a   :  { %2402 = vmatpush1.bf16.msra.mxu1 %v2401_v24  ;;  %v982_v24 = vld [vmem:[#allocation2 + $0xcd8] sm:$0xff] }
 0x32b   :  { %2404 = vmatprep.subr.bf16.mxu1 %v2403_v25  ;;  %v2437_v25 = vpack.c.bf16 %v977_v22, %v975_v21  ;;  %v2439_v26 = vpack.c.bf16 %v982_v24, %v980_v23 }
 0x32e   :  { %2406 = vmatpush1.bf16.msra.mxu1 %v2405_v32  ;;  %v986_v32 = vld [vmem:[#allocation2 + $0xcf8] sm:$0xff] }
 0x32f   :  { %2408 = vmatprep.subr.bf16.mxu1 %v2407_v33  ;;  %v2441_v33 = vpack.c.bf16 %v981_v30, %v979_v28  ;;  %v2443_v34 = vpack.c.bf16 %v986_v32, %v984_v31  ;;  %v1015_v30 = vld [vmem:[#allocation2 + $0xde0] sm:$0xff]  ;;  %v1017_v31 = vld [vmem:[#allocation2 + $0xdf0] sm:$0xff] }
 0x330   :  { %v2477_v32 = vpack.c.bf16 %v1017_v31, %v1015_v30  ;;  %v1020_v30 = vld [vmem:[#allocation5 + $0xc] sm:$0x3] }
 0x331   :  { %v1025_v31 = vrot.slane %v1020_v30, %v3036_v27 }
 0x332   :  { %2410 = vmatpush1.bf16.msra.mxu1 %v2409_v45 }
 0x333   :  { %2412 = vmatprep.subr.bf16.mxu1 %v2411_v48  ;;  %v993_v48 = vld [vmem:[#allocation2 + $0xd30] sm:$0xff] }
 0x336   :  { %2414 = vmatpush1.bf16.msra.mxu1 %v2413_v51  ;;  %v2453_v51 = vpack.c.bf16 %v993_v48, %v991_v47 }
 0x3cc   :  { %v647_v37 = vpop.f32.mrb[2].mxu1 }
 0x3cd   :  { %v648_v38 = vadd.f32 %v647_v37, %v574_v35  ;;  %v649_v39 = vpop.f32.mrb[3].mxu1  ;;  %v983_v35 = vld [vmem:[#allocation2 + $0xce0] sm:$0xff]  ;;  %v988_v37 = vld [vmem:[#allocation2 + $0xd08] sm:$0xff] }
 0x3ce   :  { %v650_v40 = vadd.f32 %v649_v39, %v578_v36  ;;  %v985_v36 = vld [vmem:[#allocation2 + $0xcf0] sm:$0xff] }
 0x3cf   :  { %v652_v42 = vmax.f32 %v648_v38, 0.0  ;;  %v990_v38 = vld [vmem:[#allocation2 + $0xd18] sm:$0xff]  ;;  %v2445_v39 = vpack.c.bf16 %v985_v36, %v983_v35  ;;  %v1114_v35 = vld [vmem:[#allocation2 + $0xe00] sm:$0xff] }
 0x3d0   :  { %v653_v41 = vmax.f32 %v650_v40, 0.0  ;;  %v2447_v40 = vpack.c.bf16 %v990_v38, %v988_v37  ;;  %v1116_v37 = vld [vmem:[#allocation2 + $0xe10] sm:$0xff]  ;;  %v1119_v38 = vld [vmem:[#allocation2 + $0xe28] sm:$0xff] }
 0x3d2   :  { %796 = vmatprep.mubr.f32.mxu0 %v653_v41  ;;  %v987_v41 = vld [vmem:[#allocation2 + $0xd00] sm:$0xff] }
 0x3d3   :  { %797 = vmatmul.mubr.f32.vlgmr.msra.gmra.mrb[4].mxu0 %v652_v42  ;;  %v989_v42 = vld [vmem:[#allocation2 + $0xd10] sm:$0xff] }
 0x3d4   :  { %2418 = vmatpush1.bf16.msra.mxu0 %v2417_v59  ;;  %v2449_v45 = vpack.c.bf16 %v989_v42, %v987_v41  ;;  %v999_v59 = vld [vmem:[#allocation2 + $0xd60] sm:$0xff] }
 0x3d5   :  { %2420 = vmatprep.subr.bf16.mxu0 %v2419_v60  ;;  %v1001_v60 = vld [vmem:[#allocation2 + $0xd70] sm:$0xff]  ;;  %v1118_v42 = vld [vmem:[#allocation2 + $0xe20] sm:$0xff] }
 0x3d6   :  { %v2461_v63 = vpack.c.bf16 %v1001_v60, %v999_v59  ;;  %v2485_v44 = vpack.c.bf16 %v1120_v43, %v1118_v42  ;;  %v1129_v59 = vld [vmem:[#allocation2 + $0xe78] sm:$0xff]  ;;  %v1235_v42 = vld [vmem:[#allocation2 + $0x1010] sm:$0xff] }
 0x3d8   :  { %2422 = vmatpush1.bf16.msra.mxu0 %v2421_v1  ;;  %v1003_v1 = vld [vmem:[#allocation2 + $0xd80] sm:$0xff] }
 0x3d9   :  { %2424 = vmatprep.subr.bf16.mxu0 %v2423_v2  ;;  %v1005_v2 = vld [vmem:[#allocation2 + $0xd90] sm:$0xff] }
 0x3da   :  { %v2465_v5 = vpack.c.bf16 %v1005_v2, %v1003_v1  ;;  %v1133_v1 = vld [vmem:[#allocation2 + $0xe98] sm:$0xff] }
 0x3dc   :  { %2426 = vmatpush1.bf16.msra.mxu0 %v2425_v7  ;;  %v1007_v7 = vld [vmem:[#allocation2 + $0xda0] sm:$0xff] }
 0x3dd   :  { %2428 = vmatprep.subr.bf16.mxu0 %v2427_v8  ;;  %v1009_v8 = vld [vmem:[#allocation2 + $0xdb0] sm:$0xff] }
 0x3de   :  { %v2469_v11 = vpack.c.bf16 %v1009_v8, %v1007_v7  ;;  %v1137_v7 = vld [vmem:[#allocation2 + $0xeb8] sm:$0xff]  ;;  %v1134_v8 = vld [vmem:[#allocation2 + $0xea0] sm:$0xff] }
 0x3e0   :  { %2430 = vmatpush1.bf16.msra.mxu0 %v2429_v13  ;;  %v1011_v13 = vld [vmem:[#allocation2 + $0xdc0] sm:$0xff] }
 0x3e1   :  { %2432 = vmatprep.subr.bf16.mxu0 %v2431_v14  ;;  %v1013_v14 = vld [vmem:[#allocation2 + $0xdd0] sm:$0xff] }
 0x3e2   :  { %v2473_v15 = vpack.c.bf16 %v1013_v14, %v1011_v13  ;;  %v2967_v13 = vmov 0.0   ;;  %v2501_v14 = vpack.c.bf16 %v1136_v10, %v1134_v8  ;;  %v1253_v10 = vld [vmem:[#allocation2 + $0x10a0] sm:$0xff] }
 0x3e4   :  { %2434 = vmatpush1.bf16.msra.mxu0 %v2433_v19 }
 0x3e5   :  { %2436 = vmatprep.subr.bf16.mxu0 %v2435_v20 }
 0x3e8   :  { %2438 = vmatpush1.bf16.msra.mxu0 %v2437_v25  ;;  %v1016_v25 = vld [vmem:[#allocation2 + $0xde8] sm:$0xff] }
 0x3e9   :  { %2440 = vmatprep.subr.bf16.mxu0 %v2439_v26  ;;  %v1018_v26 = vld [vmem:[#allocation2 + $0xdf8] sm:$0xff] }
 0x3ea   :  { %v2475_v28 = vpack.c.bf16 %v1018_v26, %v1016_v25  ;;  %v1234_v25 = vld [vmem:[#allocation2 + $0x1008] sm:$0xff]  ;;  %v1236_v26 = vld [vmem:[#allocation2 + $0x1018] sm:$0xff] }
 0x3ec   :  { %2442 = vmatpush1.bf16.msra.mxu0 %v2441_v33  ;;  %v1115_v33 = vld [vmem:[#allocation2 + $0xe08] sm:$0xff] }
 0x3ed   :  { %2444 = vmatprep.subr.bf16.mxu0 %v2443_v34  ;;  %v1117_v34 = vld [vmem:[#allocation2 + $0xe18] sm:$0xff] }
 0x3ee   :  { %v2479_v36 = vpack.c.bf16 %v1117_v34, %v1115_v33 }
 0x3f0   :  { %2446 = vmatpush1.bf16.msra.mxu0 %v2445_v39  ;;  %v1121_v39 = vld [vmem:[#allocation2 + $0xe38] sm:$0xff]  ;;  %2480 = vmatprep.subr.bf16.mxu1 %v2479_v36 }
 0x3f1   :  { %2448 = vmatprep.subr.bf16.mxu0 %v2447_v40  ;;  %v2481_v40 = vpack.c.bf16 %v1116_v37, %v1114_v35  ;;  %v2483_v41 = vpack.c.bf16 %v1121_v39, %v1119_v38 }
 0x3f4   :  { %2450 = vmatpush1.bf16.msra.mxu0 %v2449_v45  ;;  %v871_v45 = vld [vmem:[#allocation5 + $0xa] sm:$0x3] }
 0x3f5   :  { %2452 = vmatprep.subr.bf16.mxu0 %v2451_v46  ;;  %v880_v46 = vrot.slane %v871_v45, %v3038_v29  ;;  %v876_v47 = vrot.slane %v871_v45, %v3036_v27  ;;  %v1240_v45 = vld [vmem:[#allocation2 + $0x1038] sm:$0xff] }
 0x3f8   :  { %2454 = vmatpush1.bf16.msra.mxu0 %v2453_v51 }
 0x3f9   :  { %2456 = vmatprep.subr.bf16.mxu0 %v2455_v52  ;;  %v1123_v52 = vld [vmem:[#allocation2 + $0xe48] sm:$0xff] }
 0x3fa   :  { %v2487_v54 = vpack.c.bf16 %v1125_v53, %v1123_v52  ;;  %v1242_v52 = vld [vmem:[#allocation2 + $0x1048] sm:$0xff]  ;;  %v1244_v53 = vld [vmem:[#allocation2 + $0x1058] sm:$0xff] }
 0x3fc   :  { %2458 = vmatpush1.bf16.msra.mxu0 %v2457_v57  ;;  %v2489_v57 = vpack.c.bf16 %v1124_v56, %v1122_v55  ;;  %v2519_v55 = vpack.c.bf16 %v1244_v53, %v1242_v52  ;;  %v1241_v56 = vld [vmem:[#allocation2 + $0x1040] sm:$0xff] }
 0x3fd   :  { %2460 = vmatprep.subr.bf16.mxu0 %v2459_v58  ;;  %v1127_v58 = vld [vmem:[#allocation2 + $0xe68] sm:$0xff] }
 0x3fe   :  { %v2491_v60 = vpack.c.bf16 %v1129_v59, %v1127_v58  ;;  %v1246_v58 = vld [vmem:[#allocation2 + $0x1068] sm:$0xff]  ;;  %v1248_v59 = vld [vmem:[#allocation2 + $0x1078] sm:$0xff] }
 0x400   :  { %2462 = vmatpush1.bf16.msra.mxu0 %v2461_v63  ;;  %v2493_v63 = vpack.c.bf16 %v1128_v62, %v1126_v61  ;;  %v2523_v61 = vpack.c.bf16 %v1248_v59, %v1246_v58  ;;  %v1245_v62 = vld [vmem:[#allocation2 + $0x1060] sm:$0xff] }
 0x401   :  { %2464 = vmatprep.subr.bf16.mxu0 %v2463_v0  ;;  %v1131_v0 = vld [vmem:[#allocation2 + $0xe88] sm:$0xff] }
 0x402   :  { %v2495_v2 = vpack.c.bf16 %v1133_v1, %v1131_v0  ;;  %v1250_v0 = vld [vmem:[#allocation2 + $0x1088] sm:$0xff]  ;;  %v1252_v1 = vld [vmem:[#allocation2 + $0x1098] sm:$0xff] }
 0x404   :  { %2466 = vmatpush1.bf16.msra.mxu0 %v2465_v5  ;;  %v2497_v5 = vpack.c.bf16 %v1132_v4, %v1130_v3  ;;  %v2527_v3 = vpack.c.bf16 %v1252_v1, %v1250_v0  ;;  %v1249_v4 = vld [vmem:[#allocation2 + $0x1080] sm:$0xff] }
 0x405   :  { %2468 = vmatprep.subr.bf16.mxu0 %v2467_v6  ;;  %v1135_v6 = vld [vmem:[#allocation2 + $0xea8] sm:$0xff] }
 0x406   :  { %v2499_v9 = vpack.c.bf16 %v1137_v7, %v1135_v6  ;;  %v1254_v6 = vld [vmem:[#allocation2 + $0x10a8] sm:$0xff]  ;;  %v1256_v7 = vld [vmem:[#allocation2 + $0x10b8] sm:$0xff] }
 0x408   :  { %2470 = vmatpush1.bf16.msra.mxu0 %v2469_v11  ;;  %v1139_v11 = vld [vmem:[#allocation2 + $0xec8] sm:$0xff] }
 0x409   :  { %2472 = vmatprep.subr.bf16.mxu0 %v2471_v12  ;;  %v1141_v12 = vld [vmem:[#allocation2 + $0xed8] sm:$0xff] }
 0x40c   :  { %2474 = vmatpush1.bf16.msra.mxu0 %v2473_v15  ;;  %v2503_v15 = vpack.c.bf16 %v1141_v12, %v1139_v11  ;;  %v1255_v11 = vld [vmem:[#allocation2 + $0x10b0] sm:$0xff]  ;;  %v1258_v12 = vld [vmem:[#allocation2 + $0x10c8] sm:$0xff] }
 0x40d   :  { %2476 = vmatprep.subr.bf16.mxu0 %v2475_v28  ;;  %v2511_v28 = vpack.c.bf16 %v1236_v26, %v1234_v25  ;;  %v1268_v25 = vld [vmem:[#allocation2 + $0x1118] sm:$0xff] }
 0x410   :  { %2478 = vmatpush1.bf16.msra.mxu0 %v2477_v32  ;;  %v1029_v32 = vrot.slane %v1020_v30, %v3038_v29  ;;  %v1265_v30 = vld [vmem:[#allocation2 + $0x1100] sm:$0xff] }
 0x4a6   :  { %v798_v19 = vpop.f32.mrb[4].mxu0 }
 0x4a7   :  { %v799_v20 = vadd.f32 %v798_v19, %v725_v17  ;;  %v800_v21 = vpop.f32.mrb[5].mxu0  ;;  %v1140_v17 = vld [vmem:[#allocation2 + $0xed0] sm:$0xff]  ;;  %v1145_v19 = vld [vmem:[#allocation2 + $0xef8] sm:$0xff] }
 0x4a8   :  { %v801_v22 = vadd.f32 %v800_v21, %v729_v18  ;;  %v1143_v18 = vld [vmem:[#allocation2 + $0xee8] sm:$0xff] }
 0x4a9   :  { %v803_v24 = vmax.f32 %v799_v20, 0.0  ;;  %v2505_v20 = vpack.c.bf16 %v1140_v17, %v1138_v16  ;;  %v2507_v21 = vpack.c.bf16 %v1145_v19, %v1143_v18  ;;  %v1257_v16 = vld [vmem:[#allocation2 + $0x10c0] sm:$0xff]  ;;  %v1259_v17 = vld [vmem:[#allocation2 + $0x10d0] sm:$0xff]  ;;  %v1262_v18 = vld [vmem:[#allocation2 + $0x10e8] sm:$0xff] }
 0x4aa   :  { %v804_v23 = vmax.f32 %v801_v22, 0.0  ;;  %v1142_v22 = vld [vmem:[#allocation2 + $0xee0] sm:$0xff]  ;;  %v1264_v19 = vld [vmem:[#allocation2 + $0x10f8] sm:$0xff] }
 0x4ac   :  { %947 = vmatprep.mubr.f32.mxu1 %v804_v23  ;;  %v1144_v23 = vld [vmem:[#allocation2 + $0xef0] sm:$0xff] }
 0x4ad   :  { %948 = vmatmul.mubr.f32.vlgmr.msra.gmra.mrb[4].mxu1 %v803_v24  ;;  %v2509_v24 = vpack.c.bf16 %v1144_v23, %v1142_v22  ;;  %v1261_v22 = vld [vmem:[#allocation2 + $0x10e0] sm:$0xff]  ;;  %v1263_v23 = vld [vmem:[#allocation2 + $0x10f0] sm:$0xff] }
 0x4ae   :  { %2482 = vmatpush1.bf16.msra.mxu1 %v2481_v40  ;;  %1223 = vmatprep.mubr.f32.mxu1 %v2967_v13  ;;  %v1110_v40 = vld [vmem:[%s3108_s3] sm:$0xff]  ;;  %v1260_v13 = vld [vmem:[#allocation2 + $0x10d8] sm:$0xff]  ;;  %v2541_v26 = vpack.c.bf16 %v1263_v23, %v1261_v22  ;;  %v1393_v22 = vld [vmem:[#allocation2 + $0x1248] sm:$0xff]  ;;  %s2968_s3 = smov [#allocation8]  }
 0x4af   :  { %2484 = vmatprep.subr.bf16.mxu1 %v2483_v41  ;;  %v1233_v41 = vld [vmem:[#allocation2 + $0x1000] sm:$0xff]  ;;  %v1395_v23 = vld [vmem:[#allocation2 + $0x1258] sm:$0xff]  ;;  %s2003_s28 = sshll.u32 %s2968_s3, 4  ;;  %s2004_s28 = int_to_ptr.vmem [resolvable:$true] %s2003_s28 }
 0x4b0   :  { %s2887_s29 = scalar_lea.vmem %s2004_s28, 128  ;;  %p2892_p3 = scmp.lt.s32.totalorder %s2004_s28, %s2004_s28 }
 0x4b1   :  { %p2888_p2 = scmp.ne.s32.totalorder %s2004_s28, %s2887_s29  ;;  %p2893_p4 = scmp.lt.s32.totalorder %s2887_s29, %s2887_s29 }
 0x4b2   :  { %2486 = vmatpush1.bf16.msra.mxu1 %v2485_v44  ;;  %v1238_v44 = vld [vmem:[#allocation2 + $0x1028] sm:$0xff] }
 0x4b3   :  { %2488 = vmatprep.subr.bf16.mxu1 %v2487_v54  ;;  %p2894_p5 = por %p2893_p4, %p2892_p3 }
 0x4b5   :  { %p2895_p6 = pnand %p2894_p5, %p2888_p2 }
 0x4b6   :  { %2490 = vmatpush1.bf16.msra.mxu1 %v2489_v57  ;;  %v1243_v57 = vld [vmem:[#allocation2 + $0x1050] sm:$0xff] }
 0x4b7   :  { %2492 = vmatprep.subr.bf16.mxu1 %v2491_v60  ;;  %v2521_v60 = vpack.c.bf16 %v1243_v57, %v1241_v56  ;;  %v1286_v56 = vld [vmem:[#allocation2 + $0x11a8] sm:$0xff]  ;;  %v1288_v57 = vld [vmem:[#allocation2 + $0x11b8] sm:$0xff] }
 0x4b8   :  { %v2563_v59 = vpack.c.bf16 %v1288_v57, %v1286_v56 }
 0x4ba   :  { %2494 = vmatpush1.bf16.msra.mxu1 %v2493_v63  ;;  %v1247_v63 = vld [vmem:[#allocation2 + $0x1070] sm:$0xff] }
 0x4bb   :  { %2496 = vmatprep.subr.bf16.mxu1 %v2495_v2  ;;  %v2525_v2 = vpack.c.bf16 %v1247_v63, %v1245_v62  ;;  %v1290_v62 = vld [vmem:[#allocation2 + $0x11c8] sm:$0xff]  ;;  %v1292_v63 = vld [vmem:[#allocation2 + $0x11d8] sm:$0xff] }
 0x4bc   :  { %v2567_v1 = vpack.c.bf16 %v1292_v63, %v1290_v62 }
 0x4be   :  { %2498 = vmatpush1.bf16.msra.mxu1 %v2497_v5  ;;  %v1251_v5 = vld [vmem:[#allocation2 + $0x1090] sm:$0xff] }
 0x4bf   :  { %2500 = vmatprep.subr.bf16.mxu1 %v2499_v9  ;;  %v2529_v8 = vpack.c.bf16 %v1251_v5, %v1249_v4  ;;  %v2531_v9 = vpack.c.bf16 %v1256_v7, %v1254_v6  ;;  %v1294_v5 = vld [vmem:[#allocation2 + $0x11e8] sm:$0xff]  ;;  %v1296_v6 = vld [vmem:[#allocation2 + $0x11f8] sm:$0xff] }
 0x4c0   :  { %v2571_v7 = vpack.c.bf16 %v1296_v6, %v1294_v5  ;;  %v1420_v6 = vld [vmem:[#allocation2 + $0x1320] sm:$0xff] }
 0x4c2   :  { %2502 = vmatpush1.bf16.msra.mxu1 %v2501_v14  ;;  %v2533_v14 = vpack.c.bf16 %v1255_v11, %v1253_v10  ;;  %v1385_v11 = vld [vmem:[#allocation2 + $0x1208] sm:$0xff] }
 0x4c3   :  { %2504 = vmatprep.subr.bf16.mxu1 %v2503_v15  ;;  %v2535_v15 = vpack.c.bf16 %v1260_v13, %v1258_v12  ;;  %v1387_v12 = vld [vmem:[#allocation2 + $0x1218] sm:$0xff]  ;;  %v1384_v13 = vld [vmem:[#allocation2 + $0x1200] sm:$0xff] }
 0x4c6   :  { %2506 = vmatpush1.bf16.msra.mxu1 %v2505_v20  ;;  %v2537_v20 = vpack.c.bf16 %v1259_v17, %v1257_v16  ;;  %v1389_v16 = vld [vmem:[#allocation2 + $0x1228] sm:$0xff]  ;;  %v1391_v17 = vld [vmem:[#allocation2 + $0x1238] sm:$0xff] }
 0x4c7   :  { %2508 = vmatprep.subr.bf16.mxu1 %v2507_v21  ;;  %v2539_v21 = vpack.c.bf16 %v1264_v19, %v1262_v18  ;;  %v2579_v19 = vpack.c.bf16 %v1391_v17, %v1389_v16 }
 0x4ca   :  { %2510 = vmatpush1.bf16.msra.mxu1 %v2509_v24  ;;  %v1266_v24 = vld [vmem:[#allocation2 + $0x1108] sm:$0xff] }
 0x4cb   :  { %2512 = vmatprep.subr.bf16.mxu1 %v2511_v28  ;;  %v2543_v28 = vpack.c.bf16 %v1268_v25, %v1266_v24  ;;  %v2583_v25 = vpack.c.bf16 %v1395_v23, %v1393_v22 }
 0x580   :  { %v949_v48 = vpop.f32.mrb[4].mxu1 }
 0x581   :  { %v951_v49 = vpop.f32.mrb[5].mxu1  ;;  %v950_v51 = vadd.f32 %v949_v48, %v876_v47  ;;  %v2513_v47 = vpack.c.bf16 %v1235_v42, %v1233_v41  ;;  %v1273_v42 = vld [vmem:[#allocation2 + $0x1140] sm:$0xff] }
 0x582   :  { %v952_v50 = vadd.f32 %v951_v49, %v880_v46  ;;  %v2515_v49 = vpack.c.bf16 %v1240_v45, %v1238_v44  ;;  %v1278_v44 = vld [vmem:[#allocation2 + $0x1168] sm:$0xff]  ;;  %v1280_v45 = vld [vmem:[#allocation2 + $0x1178] sm:$0xff] }
 0x584   :  { %1096 = vmatprep.mubr.f32.mxu0 %v952_v50  ;;  %v1237_v50 = vld [vmem:[#allocation2 + $0x1020] sm:$0xff] }
 0x585   :  { %1097 = vmatmul.mubr.f32.vlgmr.msra.gmra.mrb[6].mxu0 %v950_v51  ;;  %v1239_v51 = vld [vmem:[#allocation2 + $0x1030] sm:$0xff] }
 0x586   :  { %v2517_v54 = vpack.c.bf16 %v1239_v51, %v1237_v50  ;;  %v1282_v50 = vld [vmem:[#allocation2 + $0x1188] sm:$0xff]  ;;  %v1284_v51 = vld [vmem:[#allocation2 + $0x1198] sm:$0xff] }
 0x587   :  { %v2559_v53 = vpack.c.bf16 %v1284_v51, %v1282_v50 }
 0x658   :  { %v1098_v33 = vpop.f32.mrb[6].mxu0 }
 0x659   :  { %v1099_v34 = vadd.f32 %v1098_v33, %v1025_v31  ;;  %v1100_v35 = vpop.f32.mrb[7].mxu0  ;;  %v1267_v31 = vld [vmem:[#allocation2 + $0x1110] sm:$0xff]  ;;  %v1272_v33 = vld [vmem:[#allocation2 + $0x1138] sm:$0xff] }
 0x65a   :  { %v1101_v36 = vadd.f32 %v1100_v35, %v1029_v32  ;;  %v1270_v32 = vld [vmem:[#allocation2 + $0x1128] sm:$0xff] }
 0x65b   :  { %1103 = vst [vmem:[#allocation8] sm:$0xff] %v1099_v34  ;;  %v2547_v35 = vpack.c.bf16 %v1272_v33, %v1270_v32 }
 0x65c   :  { %1104 = vst [vmem:[#allocation10] sm:$0xff] %v1101_v36  ;;  %v2030_v37 = vclamps-f32 %v1101_v36, 30.0  ;;  %v1269_v36 = vld [vmem:[#allocation2 + $0x1120] sm:$0xff] }
 0x65e   :  { %v1107_v38 = vmul.f32 0.5, %v2030_v37  ;;  %v1271_v37 = vld [vmem:[#allocation2 + $0x1130] sm:$0xff] }
 0x660   :  { %v1108_v39 = vmul.f32 1.442695, %v1107_v38  ;;  %v1274_v38 = vld [vmem:[#allocation2 + $0x1148] sm:$0xff] }
 0x662   :  { %2841 = vpow2.f32 %v1108_v39  ;;  %v1276_v39 = vld [vmem:[#allocation2 + $0x1158] sm:$0xff] }
 0x663   :  { %v2551_v41 = vpack.c.bf16 %v1276_v39, %v1274_v38 }
 0x66c   :  { %v2842_v43 = vpop.eup %2841 }
 0x66d   :  { %v1111_v46 = vmul.f32 %v2842_v43, %v1110_v40  ;;  %v2549_v40 = vpack.c.bf16 %v1271_v37, %v1269_v36  ;;  %v1275_v43 = vld [vmem:[#allocation2 + $0x1150] sm:$0xff]  ;;  %v1401_v36 = vld [vmem:[#allocation2 + $0x1288] sm:$0xff]  ;;  %v1403_v37 = vld [vmem:[#allocation2 + $0x1298] sm:$0xff] }
 0x66e   :  { %v2591_v39 = vpack.c.bf16 %v1403_v37, %v1401_v36 }
 0x66f   :  { %v1112_v48 = vadd.f32 %v1111_v46, %v1099_v34  ;;  %v2545_v34 = vpack.c.bf16 %v1267_v31, %v1265_v30  ;;  %v2553_v46 = vpack.c.bf16 %v1275_v43, %v1273_v42  ;;  %v1397_v30 = vld [vmem:[#allocation2 + $0x1268] sm:$0xff]  ;;  %v1399_v31 = vld [vmem:[#allocation2 + $0x1278] sm:$0xff] }
 0x670   :  { %v2587_v33 = vpack.c.bf16 %v1399_v31, %v1397_v30  ;;  %v1405_v42 = vld [vmem:[#allocation2 + $0x12a8] sm:$0xff]  ;;  %v1407_v43 = vld [vmem:[#allocation2 + $0x12b8] sm:$0xff] }
 0x671   :  { %1224 = vmatmul.mubr.f32.vlgmr.msra.gmra.mrb[6].mxu1 %v1112_v48  ;;  %v1277_v48 = vld [vmem:[#allocation2 + $0x1160] sm:$0xff] }
 0x672   :  { %2514 = vmatpush1.bf16.msra.mxu1 %v2513_v47  ;;  %v2555_v47 = vpack.c.bf16 %v1280_v45, %v1278_v44  ;;  %v2595_v45 = vpack.c.bf16 %v1407_v43, %v1405_v42 }
 0x673   :  { %2516 = vmatprep.subr.bf16.mxu1 %v2515_v49  ;;  %v1279_v49 = vld [vmem:[#allocation2 + $0x1170] sm:$0xff] }
 0x674   :  { %v2557_v52 = vpack.c.bf16 %v1279_v49, %v1277_v48  ;;  %v1409_v48 = vld [vmem:[#allocation2 + $0x12c8] sm:$0xff]  ;;  %v1411_v49 = vld [vmem:[#allocation2 + $0x12d8] sm:$0xff] }
 0x675   :  { %v2599_v51 = vpack.c.bf16 %v1411_v49, %v1409_v48  ;;  %v1442_v48 = vld [vmem:[#allocation2 + $0x13d0] sm:$0xff] }
 0x676   :  { %2518 = vmatpush1.bf16.msra.mxu1 %v2517_v54  ;;  %v1281_v54 = vld [vmem:[#allocation2 + $0x1180] sm:$0xff] }
 0x677   :  { %2520 = vmatprep.subr.bf16.mxu1 %v2519_v55  ;;  %v1283_v55 = vld [vmem:[#allocation2 + $0x1190] sm:$0xff] }
 0x678   :  { %v2561_v58 = vpack.c.bf16 %v1283_v55, %v1281_v54  ;;  %v1413_v54 = vld [vmem:[#allocation2 + $0x12e8] sm:$0xff]  ;;  %v1415_v55 = vld [vmem:[#allocation2 + $0x12f8] sm:$0xff] }
 0x679   :  { %v2603_v57 = vpack.c.bf16 %v1415_v55, %v1413_v54  ;;  %v1446_v54 = vld [vmem:[#allocation2 + $0x13f0] sm:$0xff] }
 0x67a   :  { %2522 = vmatpush1.bf16.msra.mxu1 %v2521_v60  ;;  %v1285_v60 = vld [vmem:[#allocation2 + $0x11a0] sm:$0xff] }
 0x67b   :  { %2524 = vmatprep.subr.bf16.mxu1 %v2523_v61  ;;  %v1287_v61 = vld [vmem:[#allocation2 + $0x11b0] sm:$0xff] }
 0x67c   :  { %v2565_v0 = vpack.c.bf16 %v1287_v61, %v1285_v60  ;;  %v1417_v60 = vld [vmem:[#allocation2 + $0x1308] sm:$0xff]  ;;  %v1419_v61 = vld [vmem:[#allocation2 + $0x1318] sm:$0xff] }
 0x67d   :  { %v2607_v63 = vpack.c.bf16 %v1419_v61, %v1417_v60  ;;  %v1537_v60 = vld [vmem:[#allocation2 + $0x1410] sm:$0xff]  ;;  %v1540_v61 = vld [vmem:[#allocation2 + $0x1428] sm:$0xff] }
 0x67e   :  { %2526 = vmatpush1.bf16.msra.mxu1 %v2525_v2  ;;  %v1289_v2 = vld [vmem:[#allocation2 + $0x11c0] sm:$0xff] }
 0x67f   :  { %2528 = vmatprep.subr.bf16.mxu1 %v2527_v3  ;;  %v1291_v3 = vld [vmem:[#allocation2 + $0x11d0] sm:$0xff] }
 0x680   :  { %v2569_v4 = vpack.c.bf16 %v1291_v3, %v1289_v2  ;;  %v1421_v2 = vld [vmem:[#allocation2 + $0x1328] sm:$0xff]  ;;  %v1423_v3 = vld [vmem:[#allocation2 + $0x1338] sm:$0xff] }
 0x681   :  { %v2611_v5 = vpack.c.bf16 %v1423_v3, %v1421_v2  ;;  %v1541_v2 = vld [vmem:[#allocation2 + $0x1430] sm:$0xff]  ;;  %v1544_v3 = vld [vmem:[#allocation2 + $0x1448] sm:$0xff] }
 0x682   :  { %2530 = vmatpush1.bf16.msra.mxu1 %v2529_v8  ;;  %v1293_v8 = vld [vmem:[#allocation2 + $0x11e0] sm:$0xff] }
 0x683   :  { %2532 = vmatprep.subr.bf16.mxu1 %v2531_v9  ;;  %v1295_v9 = vld [vmem:[#allocation2 + $0x11f0] sm:$0xff] }
 0x684   :  { %v2573_v10 = vpack.c.bf16 %v1295_v9, %v1293_v8  ;;  %v1425_v8 = vld [vmem:[#allocation2 + $0x1348] sm:$0xff]  ;;  %v1427_v9 = vld [vmem:[#allocation2 + $0x1358] sm:$0xff] }
 0x686   :  { %2534 = vmatpush1.bf16.msra.mxu1 %v2533_v14  ;;  %v2575_v14 = vpack.c.bf16 %v1387_v12, %v1385_v11  ;;  %v2615_v11 = vpack.c.bf16 %v1427_v9, %v1425_v8  ;;  %v1424_v12 = vld [vmem:[#allocation2 + $0x1340] sm:$0xff]  ;;  %v1545_v8 = vld [vmem:[#allocation2 + $0x1450] sm:$0xff]  ;;  %v1548_v9 = vld [vmem:[#allocation2 + $0x1468] sm:$0xff] }
 0x687   :  { %2536 = vmatprep.subr.bf16.mxu1 %v2535_v15  ;;  %v1386_v15 = vld [vmem:[#allocation2 + $0x1210] sm:$0xff] }
 0x688   :  { %v2577_v18 = vpack.c.bf16 %v1386_v15, %v1384_v13  ;;  %2576 = vmatprep.subr.bf16.mxu0 %v2575_v14  ;;  %v1426_v13 = vld [vmem:[#allocation2 + $0x1350] sm:$0xff]  ;;  %v1429_v14 = vld [vmem:[#allocation2 + $0x1368] sm:$0xff]  ;;  %v1431_v15 = vld [vmem:[#allocation2 + $0x1378] sm:$0xff] }
 0x689   :  { %v2617_v16 = vpack.c.bf16 %v1426_v13, %v1424_v12  ;;  %v2619_v17 = vpack.c.bf16 %v1431_v15, %v1429_v14  ;;  %v1547_v13 = vld [vmem:[#allocation2 + $0x1460] sm:$0xff]  ;;  %v1549_v14 = vld [vmem:[#allocation2 + $0x1470] sm:$0xff]  ;;  %v1552_v15 = vld [vmem:[#allocation2 + $0x1488] sm:$0xff] }
 0x68a   :  { %2538 = vmatpush1.bf16.msra.mxu1 %v2537_v20  ;;  %v1388_v20 = vld [vmem:[#allocation2 + $0x1220] sm:$0xff]  ;;  %2578 = vmatpush1.bf16.msra.mxu0 %v2577_v18 }
 0x68b   :  { %2540 = vmatprep.subr.bf16.mxu1 %v2539_v21  ;;  %v1390_v21 = vld [vmem:[#allocation2 + $0x1230] sm:$0xff]  ;;  %2580 = vmatprep.subr.bf16.mxu0 %v2579_v19  ;;  %v1428_v18 = vld [vmem:[#allocation2 + $0x1360] sm:$0xff] }
 0x68c   :  { %v2581_v24 = vpack.c.bf16 %v1390_v21, %v1388_v20  ;;  %v1430_v19 = vld [vmem:[#allocation2 + $0x1370] sm:$0xff]  ;;  %v1433_v20 = vld [vmem:[#allocation2 + $0x1388] sm:$0xff]  ;;  %v1435_v21 = vld [vmem:[#allocation2 + $0x1398] sm:$0xff] }
 0x68d   :  { %v2621_v22 = vpack.c.bf16 %v1430_v19, %v1428_v18  ;;  %v2623_v23 = vpack.c.bf16 %v1435_v21, %v1433_v20  ;;  %v1551_v19 = vld [vmem:[#allocation2 + $0x1480] sm:$0xff]  ;;  %v1553_v20 = vld [vmem:[#allocation2 + $0x1490] sm:$0xff]  ;;  %v1556_v21 = vld [vmem:[#allocation2 + $0x14a8] sm:$0xff] }
 0x68e   :  { %2542 = vmatpush1.bf16.msra.mxu1 %v2541_v26  ;;  %v1392_v26 = vld [vmem:[#allocation2 + $0x1240] sm:$0xff]  ;;  %2582 = vmatpush1.bf16.msra.mxu0 %v2581_v24 }
 0x68f   :  { %2544 = vmatprep.subr.bf16.mxu1 %v2543_v28  ;;  %v1394_v28 = vld [vmem:[#allocation2 + $0x1250] sm:$0xff]  ;;  %2584 = vmatprep.subr.bf16.mxu0 %v2583_v25  ;;  %v1432_v24 = vld [vmem:[#allocation2 + $0x1380] sm:$0xff] }
 0x690   :  { %v2585_v32 = vpack.c.bf16 %v1394_v28, %v1392_v26  ;;  %v1434_v25 = vld [vmem:[#allocation2 + $0x1390] sm:$0xff]  ;;  %v1437_v26 = vld [vmem:[#allocation2 + $0x13a8] sm:$0xff]  ;;  %v1439_v28 = vld [vmem:[#allocation2 + $0x13b8] sm:$0xff] }
 0x691   :  { %v2625_v30 = vpack.c.bf16 %v1434_v25, %v1432_v24  ;;  %v2627_v31 = vpack.c.bf16 %v1439_v28, %v1437_v26  ;;  %v1555_v25 = vld [vmem:[#allocation2 + $0x14a0] sm:$0xff]  ;;  %v1557_v26 = vld [vmem:[#allocation2 + $0x14b0] sm:$0xff]  ;;  %v1560_v28 = vld [vmem:[#allocation2 + $0x14c8] sm:$0xff] }
 0x692   :  { %2546 = vmatpush1.bf16.msra.mxu1 %v2545_v34  ;;  %v1396_v34 = vld [vmem:[#allocation2 + $0x1260] sm:$0xff]  ;;  %2586 = vmatpush1.bf16.msra.mxu0 %v2585_v32 }
 0x693   :  { %2548 = vmatprep.subr.bf16.mxu1 %v2547_v35  ;;  %v1398_v35 = vld [vmem:[#allocation2 + $0x1270] sm:$0xff]  ;;  %2588 = vmatprep.subr.bf16.mxu0 %v2587_v33  ;;  %v1436_v32 = vld [vmem:[#allocation2 + $0x13a0] sm:$0xff] }
 0x694   :  { %v2589_v38 = vpack.c.bf16 %v1398_v35, %v1396_v34  ;;  %v1438_v33 = vld [vmem:[#allocation2 + $0x13b0] sm:$0xff]  ;;  %v1441_v34 = vld [vmem:[#allocation2 + $0x13c8] sm:$0xff]  ;;  %v1443_v35 = vld [vmem:[#allocation2 + $0x13d8] sm:$0xff] }
 0x695   :  { %v2629_v36 = vpack.c.bf16 %v1438_v33, %v1436_v32  ;;  %v2631_v37 = vpack.c.bf16 %v1443_v35, %v1441_v34  ;;  %v1559_v33 = vld [vmem:[#allocation2 + $0x14c0] sm:$0xff]  ;;  %v1561_v34 = vld [vmem:[#allocation2 + $0x14d0] sm:$0xff]  ;;  %v1564_v35 = vld [vmem:[#allocation2 + $0x14e8] sm:$0xff] }
 0x696   :  { %2550 = vmatpush1.bf16.msra.mxu1 %v2549_v40  ;;  %v1400_v40 = vld [vmem:[#allocation2 + $0x1280] sm:$0xff]  ;;  %2590 = vmatpush1.bf16.msra.mxu0 %v2589_v38  ;;  %v1147_v38 = vld [vmem:[#allocation5 + $0xe] sm:$0x3] }
 0x697   :  { %2552 = vmatprep.subr.bf16.mxu1 %v2551_v41  ;;  %v1402_v41 = vld [vmem:[#allocation2 + $0x1290] sm:$0xff]  ;;  %2592 = vmatprep.subr.bf16.mxu0 %v2591_v39  ;;  %v1152_v39 = vrot.slane %v1147_v38, %v3036_v27 }
 0x698   :  { %v2593_v44 = vpack.c.bf16 %v1402_v41, %v1400_v40  ;;  %v1156_v40 = vrot.slane %v1147_v38, %v3038_v29 }
 0x69a   :  { %2554 = vmatpush1.bf16.msra.mxu1 %v2553_v46  ;;  %v1404_v46 = vld [vmem:[#allocation2 + $0x12a0] sm:$0xff]  ;;  %2594 = vmatpush1.bf16.msra.mxu0 %v2593_v44 }
 0x69b   :  { %2556 = vmatprep.subr.bf16.mxu1 %v2555_v47  ;;  %v1406_v47 = vld [vmem:[#allocation2 + $0x12b0] sm:$0xff]  ;;  %2596 = vmatprep.subr.bf16.mxu0 %v2595_v45 }
 0x69c   :  { %v2597_v50 = vpack.c.bf16 %v1406_v47, %v1404_v46  ;;  %v1440_v47 = vld [vmem:[#allocation2 + $0x13c0] sm:$0xff] }
 0x69d   :  { %v2633_v49 = vpack.c.bf16 %v1442_v48, %v1440_v47  ;;  %v1572_v47 = vld [vmem:[#allocation2 + $0x1528] sm:$0xff]  ;;  %v1574_v48 = vld [vmem:[#allocation2 + $0x1538] sm:$0xff] }
 0x69e   :  { %2558 = vmatpush1.bf16.msra.mxu1 %v2557_v52  ;;  %v1408_v52 = vld [vmem:[#allocation2 + $0x12c0] sm:$0xff]  ;;  %2598 = vmatpush1.bf16.msra.mxu0 %v2597_v50  ;;  %v1445_v50 = vld [vmem:[#allocation2 + $0x13e8] sm:$0xff] }
 0x69f   :  { %2560 = vmatprep.subr.bf16.mxu1 %v2559_v53  ;;  %v1410_v53 = vld [vmem:[#allocation2 + $0x12d0] sm:$0xff]  ;;  %2600 = vmatprep.subr.bf16.mxu0 %v2599_v51  ;;  %v1447_v51 = vld [vmem:[#allocation2 + $0x13f8] sm:$0xff] }
 0x6a0   :  { %v2601_v56 = vpack.c.bf16 %v1410_v53, %v1408_v52  ;;  %v2635_v52 = vpack.c.bf16 %v1447_v51, %v1445_v50  ;;  %v1444_v53 = vld [vmem:[#allocation2 + $0x13e0] sm:$0xff]  ;;  %v2675_v50 = vpack.c.bf16 %v1574_v48, %v1572_v47  ;;  %v1692_v47 = vld [vmem:[#allocation2 + $0x1630] sm:$0xff]  ;;  %v1695_v48 = vld [vmem:[#allocation2 + $0x1648] sm:$0xff] }
 0x6a1   :  { %v2637_v55 = vpack.c.bf16 %v1446_v54, %v1444_v53  ;;  %v1571_v51 = vld [vmem:[#allocation2 + $0x1520] sm:$0xff]  ;;  %v1576_v53 = vld [vmem:[#allocation2 + $0x1548] sm:$0xff]  ;;  %v1578_v54 = vld [vmem:[#allocation2 + $0x1558] sm:$0xff] }
 0x6a2   :  { %2562 = vmatpush1.bf16.msra.mxu1 %v2561_v58  ;;  %v1412_v58 = vld [vmem:[#allocation2 + $0x12e0] sm:$0xff]  ;;  %2602 = vmatpush1.bf16.msra.mxu0 %v2601_v56  ;;  %v1536_v56 = vld [vmem:[#allocation2 + $0x1408] sm:$0xff] }
 0x6a3   :  { %2564 = vmatprep.subr.bf16.mxu1 %v2563_v59  ;;  %v1414_v59 = vld [vmem:[#allocation2 + $0x12f0] sm:$0xff]  ;;  %2604 = vmatprep.subr.bf16.mxu0 %v2603_v57  ;;  %v1538_v57 = vld [vmem:[#allocation2 + $0x1418] sm:$0xff] }
 0x6a4   :  { %v2605_v62 = vpack.c.bf16 %v1414_v59, %v1412_v58  ;;  %v1535_v58 = vld [vmem:[#allocation2 + $0x1400] sm:$0xff]  ;;  %v2639_v59 = vpack.c.bf16 %v1538_v57, %v1536_v56  ;;  %v2679_v56 = vpack.c.bf16 %v1578_v54, %v1576_v53  ;;  %v1696_v53 = vld [vmem:[#allocation2 + $0x1650] sm:$0xff]  ;;  %v1699_v54 = vld [vmem:[#allocation2 + $0x1668] sm:$0xff] }
 0x6a5   :  { %v1575_v57 = vld [vmem:[#allocation2 + $0x1540] sm:$0xff] }
 0x6a6   :  { %2566 = vmatpush1.bf16.msra.mxu1 %v2565_v0  ;;  %v1416_v0 = vld [vmem:[#allocation2 + $0x1300] sm:$0xff]  ;;  %2606 = vmatpush1.bf16.msra.mxu0 %v2605_v62  ;;  %v1542_v62 = vld [vmem:[#allocation2 + $0x1438] sm:$0xff] }
 0x6a7   :  { %2568 = vmatprep.subr.bf16.mxu1 %v2567_v1  ;;  %v1418_v1 = vld [vmem:[#allocation2 + $0x1310] sm:$0xff]  ;;  %2608 = vmatprep.subr.bf16.mxu0 %v2607_v63  ;;  %v2641_v63 = vpack.c.bf16 %v1537_v60, %v1535_v58  ;;  %v1582_v60 = vld [vmem:[#allocation2 + $0x1578] sm:$0xff] }
 0x6a8   :  { %v1577_v58 = vld [vmem:[#allocation2 + $0x1550] sm:$0xff] }
 0x6aa   :  { %2570 = vmatpush1.bf16.msra.mxu1 %v2569_v4  ;;  %v2609_v4 = vpack.c.bf16 %v1418_v1, %v1416_v0  ;;  %v2643_v0 = vpack.c.bf16 %v1542_v62, %v1540_v61  ;;  %v1539_v1 = vld [vmem:[#allocation2 + $0x1420] sm:$0xff]  ;;  %v2681_v61 = vpack.c.bf16 %v1577_v58, %v1575_v57 }
 0x6ab   :  { %2572 = vmatprep.subr.bf16.mxu1 %v2571_v7  ;;  %v1422_v7 = vld [vmem:[#allocation2 + $0x1330] sm:$0xff]  ;;  %v1698_v58 = vld [vmem:[#allocation2 + $0x1660] sm:$0xff] }
 0x6ac   :  { %2610 = vmatpush1.bf16.msra.mxu0 %v2609_v4  ;;  %v1546_v4 = vld [vmem:[#allocation2 + $0x1458] sm:$0xff] }
 0x6ad   :  { %2612 = vmatprep.subr.bf16.mxu0 %v2611_v5  ;;  %v2645_v5 = vpack.c.bf16 %v1541_v2, %v1539_v1  ;;  %v1584_v1 = vld [vmem:[#allocation2 + $0x1588] sm:$0xff]  ;;  %v1586_v2 = vld [vmem:[#allocation2 + $0x1598] sm:$0xff] }
 0x6ae   :  { %2574 = vmatpush1.bf16.msra.mxu1 %v2573_v10  ;;  %v2613_v10 = vpack.c.bf16 %v1422_v7, %v1420_v6  ;;  %v2647_v6 = vpack.c.bf16 %v1546_v4, %v1544_v3  ;;  %v1543_v7 = vld [vmem:[#allocation2 + $0x1440] sm:$0xff]  ;;  %v2687_v4 = vpack.c.bf16 %v1586_v2, %v1584_v1  ;;  %v1704_v1 = vld [vmem:[#allocation2 + $0x1690] sm:$0xff]  ;;  %v1707_v2 = vld [vmem:[#allocation2 + $0x16a8] sm:$0xff] }
 0x6af   :  { %2640 = vmatprep.subr.bf16.mxu1 %v2639_v59  ;;  %v1580_v59 = vld [vmem:[#allocation2 + $0x1568] sm:$0xff] }
 0x6b0   :  { %2614 = vmatpush1.bf16.msra.mxu0 %v2613_v10  ;;  %v1550_v10 = vld [vmem:[#allocation2 + $0x1478] sm:$0xff]  ;;  %v2683_v62 = vpack.c.bf16 %v1582_v60, %v1580_v59  ;;  %v1700_v59 = vld [vmem:[#allocation2 + $0x1670] sm:$0xff]  ;;  %v1703_v60 = vld [vmem:[#allocation2 + $0x1688] sm:$0xff] }
 0x6b1   :  { %2616 = vmatprep.subr.bf16.mxu0 %v2615_v11  ;;  %v2649_v11 = vpack.c.bf16 %v1545_v8, %v1543_v7  ;;  %v2651_v12 = vpack.c.bf16 %v1550_v10, %v1548_v9  ;;  %v1588_v7 = vld [vmem:[#allocation2 + $0x15a8] sm:$0xff]  ;;  %v1590_v8 = vld [vmem:[#allocation2 + $0x15b8] sm:$0xff] }
 0x6b2   :  { %v2691_v10 = vpack.c.bf16 %v1590_v8, %v1588_v7  ;;  %v1708_v7 = vld [vmem:[#allocation2 + $0x16b0] sm:$0xff]  ;;  %v1711_v8 = vld [vmem:[#allocation2 + $0x16c8] sm:$0xff] }
 0x6b4   :  { %2618 = vmatpush1.bf16.msra.mxu0 %v2617_v16  ;;  %v1554_v16 = vld [vmem:[#allocation2 + $0x1498] sm:$0xff] }
 0x6b5   :  { %2620 = vmatprep.subr.bf16.mxu0 %v2619_v17  ;;  %v2653_v17 = vpack.c.bf16 %v1549_v14, %v1547_v13  ;;  %v2655_v18 = vpack.c.bf16 %v1554_v16, %v1552_v15  ;;  %v1592_v13 = vld [vmem:[#allocation2 + $0x15c8] sm:$0xff]  ;;  %v1594_v14 = vld [vmem:[#allocation2 + $0x15d8] sm:$0xff] }
 0x6b6   :  { %v2695_v16 = vpack.c.bf16 %v1594_v14, %v1592_v13  ;;  %v1712_v13 = vld [vmem:[#allocation2 + $0x16d0] sm:$0xff]  ;;  %v1715_v14 = vld [vmem:[#allocation2 + $0x16e8] sm:$0xff] }
 0x6b8   :  { %2622 = vmatpush1.bf16.msra.mxu0 %v2621_v22  ;;  %v1558_v22 = vld [vmem:[#allocation2 + $0x14b8] sm:$0xff] }
 0x6b9   :  { %2624 = vmatprep.subr.bf16.mxu0 %v2623_v23  ;;  %v2657_v23 = vpack.c.bf16 %v1553_v20, %v1551_v19  ;;  %v2659_v24 = vpack.c.bf16 %v1558_v22, %v1556_v21 }
 0x6bc   :  { %2626 = vmatpush1.bf16.msra.mxu0 %v2625_v30  ;;  %v1562_v30 = vld [vmem:[#allocation2 + $0x14d8] sm:$0xff] }
 0x6bd   :  { %2628 = vmatprep.subr.bf16.mxu0 %v2627_v31  ;;  %v2661_v31 = vpack.c.bf16 %v1557_v26, %v1555_v25  ;;  %v2663_v32 = vpack.c.bf16 %v1562_v30, %v1560_v28  ;;  %v1591_v26 = vld [vmem:[#allocation2 + $0x15c0] sm:$0xff]  ;;  %v1593_v28 = vld [vmem:[#allocation2 + $0x15d0] sm:$0xff] }
 0x6be   :  { %v2697_v30 = vpack.c.bf16 %v1593_v28, %v1591_v26  ;;  %v1723_v26 = vld [vmem:[#allocation2 + $0x1728] sm:$0xff]  ;;  %v1725_v28 = vld [vmem:[#allocation2 + $0x1738] sm:$0xff] }
 0x6c0   :  { %2630 = vmatpush1.bf16.msra.mxu0 %v2629_v36  ;;  %v1566_v36 = vld [vmem:[#allocation2 + $0x14f8] sm:$0xff] }
 0x6c1   :  { %2632 = vmatprep.subr.bf16.mxu0 %v2631_v37  ;;  %v2665_v37 = vpack.c.bf16 %v1561_v34, %v1559_v33  ;;  %v2667_v38 = vpack.c.bf16 %v1566_v36, %v1564_v35  ;;  %v1595_v34 = vld [vmem:[#allocation2 + $0x15e0] sm:$0xff]  ;;  %v1597_v35 = vld [vmem:[#allocation2 + $0x15f0] sm:$0xff] }
 0x6c2   :  { %v2701_v36 = vpack.c.bf16 %v1597_v35, %v1595_v34  ;;  %v1727_v34 = vld [vmem:[#allocation2 + $0x1748] sm:$0xff]  ;;  %v1729_v35 = vld [vmem:[#allocation2 + $0x1758] sm:$0xff] }
 0x6c4   :  { %2634 = vmatpush1.bf16.msra.mxu0 %v2633_v49 }
 0x6c5   :  { %2636 = vmatprep.subr.bf16.mxu0 %v2635_v52  ;;  %v1573_v52 = vld [vmem:[#allocation2 + $0x1530] sm:$0xff] }
 0x6c8   :  { %2638 = vmatpush1.bf16.msra.mxu0 %v2637_v55  ;;  %v2677_v55 = vpack.c.bf16 %v1573_v52, %v1571_v51  ;;  %v1694_v52 = vld [vmem:[#allocation2 + $0x1640] sm:$0xff] }
 0x744   :  { %v1225_v41 = vpop.f32.mrb[6].mxu1 }
 0x745   :  { %v1226_v42 = vadd.f32 %v1225_v41, %v1152_v39  ;;  %v1227_v43 = vpop.f32.mrb[7].mxu1  ;;  %v1563_v39 = vld [vmem:[#allocation2 + $0x14e0] sm:$0xff]  ;;  %v1568_v41 = vld [vmem:[#allocation2 + $0x1508] sm:$0xff] }
 0x746   :  { %v1228_v44 = vadd.f32 %v1227_v43, %v1156_v40  ;;  %v1565_v40 = vld [vmem:[#allocation2 + $0x14f0] sm:$0xff] }
 0x747   :  { %v1230_v46 = vmax.f32 %v1226_v42, 0.0  ;;  %v1570_v42 = vld [vmem:[#allocation2 + $0x1518] sm:$0xff]  ;;  %v2669_v43 = vpack.c.bf16 %v1565_v40, %v1563_v39  ;;  %v1686_v39 = vld [vmem:[#allocation2 + $0x1600] sm:$0xff] }
 0x748   :  { %v1231_v45 = vmax.f32 %v1228_v44, 0.0  ;;  %v2671_v44 = vpack.c.bf16 %v1570_v42, %v1568_v41  ;;  %v1688_v41 = vld [vmem:[#allocation2 + $0x1610] sm:$0xff]  ;;  %v1691_v42 = vld [vmem:[#allocation2 + $0x1628] sm:$0xff] }
 0x74a   :  { %1374 = vmatprep.mubr.f32.mxu1 %v1231_v45  ;;  %v1567_v45 = vld [vmem:[#allocation2 + $0x1500] sm:$0xff] }
 0x74b   :  { %1375 = vmatmul.mubr.f32.vlgmr.msra.gmra.mrb[8].mxu1 %v1230_v46  ;;  %v1569_v46 = vld [vmem:[#allocation2 + $0x1510] sm:$0xff] }
 0x74c   :  { %2642 = vmatpush1.bf16.msra.mxu1 %v2641_v63  ;;  %v2673_v49 = vpack.c.bf16 %v1569_v46, %v1567_v45  ;;  %v1579_v63 = vld [vmem:[#allocation2 + $0x1560] sm:$0xff] }
 0x74d   :  { %2644 = vmatprep.subr.bf16.mxu1 %v2643_v0  ;;  %v1581_v0 = vld [vmem:[#allocation2 + $0x1570] sm:$0xff]  ;;  %v1690_v46 = vld [vmem:[#allocation2 + $0x1620] sm:$0xff] }
 0x74e   :  { %v2685_v3 = vpack.c.bf16 %v1581_v0, %v1579_v63  ;;  %v1702_v0 = vld [vmem:[#allocation2 + $0x1680] sm:$0xff] }
 0x750   :  { %2646 = vmatpush1.bf16.msra.mxu1 %v2645_v5  ;;  %v1583_v5 = vld [vmem:[#allocation2 + $0x1580] sm:$0xff] }
 0x751   :  { %2648 = vmatprep.subr.bf16.mxu1 %v2647_v6  ;;  %v1585_v6 = vld [vmem:[#allocation2 + $0x1590] sm:$0xff] }
 0x752   :  { %v2689_v9 = vpack.c.bf16 %v1585_v6, %v1583_v5  ;;  %v1706_v6 = vld [vmem:[#allocation2 + $0x16a0] sm:$0xff] }
 0x754   :  { %2650 = vmatpush1.bf16.msra.mxu1 %v2649_v11  ;;  %v1587_v11 = vld [vmem:[#allocation2 + $0x15a0] sm:$0xff] }
 0x755   :  { %2652 = vmatprep.subr.bf16.mxu1 %v2651_v12  ;;  %v1589_v12 = vld [vmem:[#allocation2 + $0x15b0] sm:$0xff] }
 0x756   :  { %v2693_v15 = vpack.c.bf16 %v1589_v12, %v1587_v11  ;;  %v1710_v12 = vld [vmem:[#allocation2 + $0x16c0] sm:$0xff] }
 0x758   :  { %2654 = vmatpush1.bf16.msra.mxu1 %v2653_v17  ;;  %v1298_v17 = vld [vmem:[#allocation5 + $0x10] sm:$0x3] }
 0x759   :  { %2656 = vmatprep.subr.bf16.mxu1 %v2655_v18  ;;  %v1303_v18 = vrot.slane %v1298_v17, %v3036_v27  ;;  %v1307_v19 = vrot.slane %v1298_v17, %v3038_v29 }
 0x75c   :  { %2658 = vmatpush1.bf16.msra.mxu1 %v2657_v23 }
 0x75d   :  { %2660 = vmatprep.subr.bf16.mxu1 %v2659_v24 }
 0x760   :  { %2662 = vmatpush1.bf16.msra.mxu1 %v2661_v31  ;;  %v1596_v31 = vld [vmem:[#allocation2 + $0x15e8] sm:$0xff] }
 0x761   :  { %2664 = vmatprep.subr.bf16.mxu1 %v2663_v32  ;;  %v1598_v32 = vld [vmem:[#allocation2 + $0x15f8] sm:$0xff] }
 0x762   :  { %v2699_v33 = vpack.c.bf16 %v1598_v32, %v1596_v31  ;;  %v2739_v31 = vpack.c.bf16 %v1725_v28, %v1723_v26  ;;  %v1722_v32 = vld [vmem:[#allocation2 + $0x1720] sm:$0xff]  ;;  %v1843_v26 = vld [vmem:[#allocation2 + $0x1830] sm:$0xff]  ;;  %v1846_v28 = vld [vmem:[#allocation2 + $0x1848] sm:$0xff] }
 0x764   :  { %2666 = vmatpush1.bf16.msra.mxu1 %v2665_v37  ;;  %v1687_v37 = vld [vmem:[#allocation2 + $0x1608] sm:$0xff] }
 0x765   :  { %2668 = vmatprep.subr.bf16.mxu1 %v2667_v38  ;;  %v1689_v38 = vld [vmem:[#allocation2 + $0x1618] sm:$0xff] }
 0x766   :  { %v2703_v40 = vpack.c.bf16 %v1689_v38, %v1687_v37  ;;  %v2743_v37 = vpack.c.bf16 %v1729_v35, %v1727_v34  ;;  %v1726_v38 = vld [vmem:[#allocation2 + $0x1740] sm:$0xff]  ;;  %v1847_v34 = vld [vmem:[#allocation2 + $0x1850] sm:$0xff]  ;;  %v1850_v35 = vld [vmem:[#allocation2 + $0x1868] sm:$0xff] }
 0x768   :  { %2670 = vmatpush1.bf16.msra.mxu1 %v2669_v43  ;;  %v1693_v43 = vld [vmem:[#allocation2 + $0x1638] sm:$0xff]  ;;  %2704 = vmatprep.subr.bf16.mxu0 %v2703_v40  ;;  %v1731_v40 = vld [vmem:[#allocation2 + $0x1768] sm:$0xff] }
 0x769   :  { %2672 = vmatprep.subr.bf16.mxu1 %v2671_v44  ;;  %v2705_v44 = vpack.c.bf16 %v1688_v41, %v1686_v39  ;;  %v2707_v45 = vpack.c.bf16 %v1693_v43, %v1691_v42  ;;  %v1728_v39 = vld [vmem:[#allocation2 + $0x1750] sm:$0xff]  ;;  %v1733_v41 = vld [vmem:[#allocation2 + $0x1778] sm:$0xff] }
 0x76a   :  { %v2745_v42 = vpack.c.bf16 %v1728_v39, %v1726_v38  ;;  %v2747_v43 = vpack.c.bf16 %v1733_v41, %v1731_v40  ;;  %v1849_v39 = vld [vmem:[#allocation2 + $0x1860] sm:$0xff]  ;;  %v1851_v40 = vld [vmem:[#allocation2 + $0x1870] sm:$0xff]  ;;  %v1854_v41 = vld [vmem:[#allocation2 + $0x1888] sm:$0xff] }
 0x76c   :  { %2674 = vmatpush1.bf16.msra.mxu1 %v2673_v49  ;;  %v1697_v49 = vld [vmem:[#allocation2 + $0x1658] sm:$0xff] }
 0x76d   :  { %2676 = vmatprep.subr.bf16.mxu1 %v2675_v50  ;;  %v2709_v50 = vpack.c.bf16 %v1692_v47, %v1690_v46  ;;  %v2711_v51 = vpack.c.bf16 %v1697_v49, %v1695_v48  ;;  %v1735_v46 = vld [vmem:[#allocation2 + $0x1788] sm:$0xff]  ;;  %v1737_v47 = vld [vmem:[#allocation2 + $0x1798] sm:$0xff] }
 0x76e   :  { %v2751_v49 = vpack.c.bf16 %v1737_v47, %v1735_v46  ;;  %v1855_v46 = vld [vmem:[#allocation2 + $0x1890] sm:$0xff]  ;;  %v1858_v47 = vld [vmem:[#allocation2 + $0x18a8] sm:$0xff] }
 0x770   :  { %2678 = vmatpush1.bf16.msra.mxu1 %v2677_v55  ;;  %v1701_v55 = vld [vmem:[#allocation2 + $0x1678] sm:$0xff] }
 0x771   :  { %2680 = vmatprep.subr.bf16.mxu1 %v2679_v56  ;;  %v2713_v56 = vpack.c.bf16 %v1696_v53, %v1694_v52  ;;  %v2715_v57 = vpack.c.bf16 %v1701_v55, %v1699_v54  ;;  %v1739_v52 = vld [vmem:[#allocation2 + $0x17a8] sm:$0xff]  ;;  %v1741_v53 = vld [vmem:[#allocation2 + $0x17b8] sm:$0xff] }
 0x772   :  { %v2755_v55 = vpack.c.bf16 %v1741_v53, %v1739_v52  ;;  %v1859_v52 = vld [vmem:[#allocation2 + $0x18b0] sm:$0xff]  ;;  %v1862_v53 = vld [vmem:[#allocation2 + $0x18c8] sm:$0xff] }
 0x774   :  { %2682 = vmatpush1.bf16.msra.mxu1 %v2681_v61  ;;  %v1705_v61 = vld [vmem:[#allocation2 + $0x1698] sm:$0xff] }
 0x775   :  { %2684 = vmatprep.subr.bf16.mxu1 %v2683_v62  ;;  %v2717_v62 = vpack.c.bf16 %v1700_v59, %v1698_v58  ;;  %v2719_v63 = vpack.c.bf16 %v1705_v61, %v1703_v60  ;;  %v1743_v58 = vld [vmem:[#allocation2 + $0x17c8] sm:$0xff]  ;;  %v1745_v59 = vld [vmem:[#allocation2 + $0x17d8] sm:$0xff] }
 0x776   :  { %v2759_v61 = vpack.c.bf16 %v1745_v59, %v1743_v58  ;;  %v1863_v58 = vld [vmem:[#allocation2 + $0x18d0] sm:$0xff]  ;;  %v1866_v59 = vld [vmem:[#allocation2 + $0x18e8] sm:$0xff] }
 0x778   :  { %2686 = vmatpush1.bf16.msra.mxu1 %v2685_v3  ;;  %v1709_v3 = vld [vmem:[#allocation2 + $0x16b8] sm:$0xff] }
 0x779   :  { %2688 = vmatprep.subr.bf16.mxu1 %v2687_v4  ;;  %v2721_v4 = vpack.c.bf16 %v1704_v1, %v1702_v0  ;;  %v2723_v5 = vpack.c.bf16 %v1709_v3, %v1707_v2 }
 0x77c   :  { %2690 = vmatpush1.bf16.msra.mxu1 %v2689_v9  ;;  %v1713_v9 = vld [vmem:[#allocation2 + $0x16d8] sm:$0xff] }
 0x77d   :  { %2692 = vmatprep.subr.bf16.mxu1 %v2691_v10  ;;  %v2725_v10 = vpack.c.bf16 %v1708_v7, %v1706_v6  ;;  %v2727_v11 = vpack.c.bf16 %v1713_v9, %v1711_v8  ;;  %v1742_v7 = vld [vmem:[#allocation2 + $0x17c0] sm:$0xff]  ;;  %v1744_v8 = vld [vmem:[#allocation2 + $0x17d0] sm:$0xff] }
 0x77e   :  { %v2761_v9 = vpack.c.bf16 %v1744_v8, %v1742_v7  ;;  %v1874_v7 = vld [vmem:[#allocation2 + $0x1928] sm:$0xff]  ;;  %v1876_v8 = vld [vmem:[#allocation2 + $0x1938] sm:$0xff] }
 0x780   :  { %2694 = vmatpush1.bf16.msra.mxu1 %v2693_v15  ;;  %v1717_v15 = vld [vmem:[#allocation2 + $0x16f8] sm:$0xff] }
 0x781   :  { %2696 = vmatprep.subr.bf16.mxu1 %v2695_v16  ;;  %v2729_v16 = vpack.c.bf16 %v1712_v13, %v1710_v12  ;;  %v2731_v17 = vpack.c.bf16 %v1717_v15, %v1715_v14  ;;  %v1746_v13 = vld [vmem:[#allocation2 + $0x17e0] sm:$0xff]  ;;  %v1748_v14 = vld [vmem:[#allocation2 + $0x17f0] sm:$0xff] }
 0x782   :  { %v2765_v15 = vpack.c.bf16 %v1748_v14, %v1746_v13  ;;  %v1878_v13 = vld [vmem:[#allocation2 + $0x1948] sm:$0xff]  ;;  %v1880_v14 = vld [vmem:[#allocation2 + $0x1958] sm:$0xff] }
 0x784   :  { %2698 = vmatpush1.bf16.msra.mxu1 %v2697_v30 }
 0x785   :  { %2700 = vmatprep.subr.bf16.mxu1 %v2699_v33  ;;  %v1724_v33 = vld [vmem:[#allocation2 + $0x1730] sm:$0xff] }
 0x788   :  { %2702 = vmatpush1.bf16.msra.mxu1 %v2701_v36  ;;  %v2741_v36 = vpack.c.bf16 %v1724_v33, %v1722_v32  ;;  %v1845_v33 = vld [vmem:[#allocation2 + $0x1840] sm:$0xff] }
 0x81e   :  { %v1376_v20 = vpop.f32.mrb[8].mxu1 }
 0x81f   :  { %v1377_v21 = vadd.f32 %v1376_v20, %v1303_v18  ;;  %v1378_v22 = vpop.f32.mrb[9].mxu1  ;;  %v1714_v18 = vld [vmem:[#allocation2 + $0x16e0] sm:$0xff]  ;;  %v1719_v20 = vld [vmem:[#allocation2 + $0x1708] sm:$0xff] }
 0x820   :  { %v1379_v23 = vadd.f32 %v1378_v22, %v1307_v19  ;;  %v1716_v19 = vld [vmem:[#allocation2 + $0x16f0] sm:$0xff] }
 0x821   :  { %v1381_v25 = vmax.f32 %v1377_v21, 0.0  ;;  %v1721_v21 = vld [vmem:[#allocation2 + $0x1718] sm:$0xff]  ;;  %v2733_v22 = vpack.c.bf16 %v1716_v19, %v1714_v18  ;;  %v1837_v18 = vld [vmem:[#allocation2 + $0x1800] sm:$0xff] }
 0x822   :  { %v1382_v24 = vmax.f32 %v1379_v23, 0.0  ;;  %v2735_v23 = vpack.c.bf16 %v1721_v21, %v1719_v20  ;;  %v1839_v20 = vld [vmem:[#allocation2 + $0x1810] sm:$0xff]  ;;  %v1842_v21 = vld [vmem:[#allocation2 + $0x1828] sm:$0xff] }
 0x824   :  { %1525 = vmatprep.mubr.f32.mxu0 %v1382_v24  ;;  %v1718_v24 = vld [vmem:[#allocation2 + $0x1700] sm:$0xff] }
 0x825   :  { %1526 = vmatmul.mubr.f32.vlgmr.msra.gmra.mrb[8].mxu0 %v1381_v25  ;;  %v1720_v25 = vld [vmem:[#allocation2 + $0x1710] sm:$0xff] }
 0x826   :  { %2706 = vmatpush1.bf16.msra.mxu0 %v2705_v44  ;;  %v2737_v30 = vpack.c.bf16 %v1720_v25, %v1718_v24  ;;  %v1730_v44 = vld [vmem:[#allocation2 + $0x1760] sm:$0xff] }
 0x827   :  { %2708 = vmatprep.subr.bf16.mxu0 %v2707_v45  ;;  %v1732_v45 = vld [vmem:[#allocation2 + $0x1770] sm:$0xff]  ;;  %v1841_v25 = vld [vmem:[#allocation2 + $0x1820] sm:$0xff] }
 0x828   :  { %v2749_v48 = vpack.c.bf16 %v1732_v45, %v1730_v44  ;;  %v1853_v45 = vld [vmem:[#allocation2 + $0x1880] sm:$0xff] }
 0x82a   :  { %2710 = vmatpush1.bf16.msra.mxu0 %v2709_v50  ;;  %v1734_v50 = vld [vmem:[#allocation2 + $0x1780] sm:$0xff] }
 0x82b   :  { %2712 = vmatprep.subr.bf16.mxu0 %v2711_v51  ;;  %v1736_v51 = vld [vmem:[#allocation2 + $0x1790] sm:$0xff] }
 0x82c   :  { %v2753_v54 = vpack.c.bf16 %v1736_v51, %v1734_v50  ;;  %v1857_v51 = vld [vmem:[#allocation2 + $0x18a0] sm:$0xff] }
 0x82e   :  { %2714 = vmatpush1.bf16.msra.mxu0 %v2713_v56  ;;  %v1738_v56 = vld [vmem:[#allocation2 + $0x17a0] sm:$0xff] }
 0x82f   :  { %2716 = vmatprep.subr.bf16.mxu0 %v2715_v57  ;;  %v1740_v57 = vld [vmem:[#allocation2 + $0x17b0] sm:$0xff] }
 0x830   :  { %v2757_v60 = vpack.c.bf16 %v1740_v57, %v1738_v56  ;;  %v1861_v57 = vld [vmem:[#allocation2 + $0x18c0] sm:$0xff] }
 0x832   :  { %2718 = vmatpush1.bf16.msra.mxu0 %v2717_v62  ;;  %v1449_v62 = vld [vmem:[#allocation5 + $0x12] sm:$0x3] }
 0x833   :  { %2720 = vmatprep.subr.bf16.mxu0 %v2719_v63  ;;  %v1454_v63 = vrot.slane %v1449_v62, %v3036_v27  ;;  %v1458_v0 = vrot.slane %v1449_v62, %v3038_v29 }
 0x836   :  { %2722 = vmatpush1.bf16.msra.mxu0 %v2721_v4 }
 0x837   :  { %2724 = vmatprep.subr.bf16.mxu0 %v2723_v5 }
 0x83a   :  { %2726 = vmatpush1.bf16.msra.mxu0 %v2725_v10  ;;  %v1747_v10 = vld [vmem:[#allocation2 + $0x17e8] sm:$0xff] }
 0x83b   :  { %2728 = vmatprep.subr.bf16.mxu0 %v2727_v11  ;;  %v1749_v11 = vld [vmem:[#allocation2 + $0x17f8] sm:$0xff] }
 0x83c   :  { %v2763_v12 = vpack.c.bf16 %v1749_v11, %v1747_v10  ;;  %v2803_v10 = vpack.c.bf16 %v1876_v8, %v1874_v7  ;;  %v1873_v11 = vld [vmem:[#allocation2 + $0x1920] sm:$0xff] }
 0x83e   :  { %2730 = vmatpush1.bf16.msra.mxu0 %v2729_v16  ;;  %v1838_v16 = vld [vmem:[#allocation2 + $0x1808] sm:$0xff] }
 0x83f   :  { %2732 = vmatprep.subr.bf16.mxu0 %v2731_v17  ;;  %v1840_v17 = vld [vmem:[#allocation2 + $0x1818] sm:$0xff] }
 0x840   :  { %v2767_v19 = vpack.c.bf16 %v1840_v17, %v1838_v16  ;;  %v2807_v16 = vpack.c.bf16 %v1880_v14, %v1878_v13  ;;  %v1877_v17 = vld [vmem:[#allocation2 + $0x1940] sm:$0xff] }
 0x842   :  { %2734 = vmatpush1.bf16.msra.mxu0 %v2733_v22  ;;  %v1844_v22 = vld [vmem:[#allocation2 + $0x1838] sm:$0xff]  ;;  %2768 = vmatprep.subr.bf16.mxu1 %v2767_v19  ;;  %v1882_v19 = vld [vmem:[#allocation2 + $0x1968] sm:$0xff] }
 0x843   :  { %2736 = vmatprep.subr.bf16.mxu0 %v2735_v23  ;;  %v2769_v23 = vpack.c.bf16 %v1839_v20, %v1837_v18  ;;  %v2771_v24 = vpack.c.bf16 %v1844_v22, %v1842_v21  ;;  %v1879_v18 = vld [vmem:[#allocation2 + $0x1950] sm:$0xff]  ;;  %v1884_v20 = vld [vmem:[#allocation2 + $0x1978] sm:$0xff] }
 0x844   :  { %v2809_v21 = vpack.c.bf16 %v1879_v18, %v1877_v17  ;;  %v2811_v22 = vpack.c.bf16 %v1884_v20, %v1882_v19 }
 0x846   :  { %2738 = vmatpush1.bf16.msra.mxu0 %v2737_v30  ;;  %v1848_v30 = vld [vmem:[#allocation2 + $0x1858] sm:$0xff] }
 0x847   :  { %2740 = vmatprep.subr.bf16.mxu0 %v2739_v31  ;;  %v2773_v31 = vpack.c.bf16 %v1843_v26, %v1841_v25  ;;  %v2775_v32 = vpack.c.bf16 %v1848_v30, %v1846_v28  ;;  %v1886_v25 = vld [vmem:[#allocation2 + $0x1988] sm:$0xff]  ;;  %v1888_v26 = vld [vmem:[#allocation2 + $0x1998] sm:$0xff] }
 0x848   :  { %v2815_v30 = vpack.c.bf16 %v1888_v26, %v1886_v25 }
 0x84a   :  { %2742 = vmatpush1.bf16.msra.mxu0 %v2741_v36  ;;  %v1852_v36 = vld [vmem:[#allocation2 + $0x1878] sm:$0xff] }
 0x84b   :  { %2744 = vmatprep.subr.bf16.mxu0 %v2743_v37  ;;  %v2777_v37 = vpack.c.bf16 %v1847_v34, %v1845_v33  ;;  %v2779_v38 = vpack.c.bf16 %v1852_v36, %v1850_v35  ;;  %v1890_v33 = vld [vmem:[#allocation2 + $0x19a8] sm:$0xff]  ;;  %v1892_v34 = vld [vmem:[#allocation2 + $0x19b8] sm:$0xff] }
 0x84c   :  { %v2819_v36 = vpack.c.bf16 %v1892_v34, %v1890_v33 }
 0x84e   :  { %2746 = vmatpush1.bf16.msra.mxu0 %v2745_v42  ;;  %v1856_v42 = vld [vmem:[#allocation2 + $0x1898] sm:$0xff] }
 0x84f   :  { %2748 = vmatprep.subr.bf16.mxu0 %v2747_v43  ;;  %v2781_v43 = vpack.c.bf16 %v1851_v40, %v1849_v39  ;;  %v2783_v44 = vpack.c.bf16 %v1856_v42, %v1854_v41  ;;  %v1894_v39 = vld [vmem:[#allocation2 + $0x19c8] sm:$0xff]  ;;  %v1896_v40 = vld [vmem:[#allocation2 + $0x19d8] sm:$0xff] }
 0x850   :  { %v2823_v42 = vpack.c.bf16 %v1896_v40, %v1894_v39 }
 0x852   :  { %2750 = vmatpush1.bf16.msra.mxu0 %v2749_v48  ;;  %v1860_v48 = vld [vmem:[#allocation2 + $0x18b8] sm:$0xff] }
 0x853   :  { %2752 = vmatprep.subr.bf16.mxu0 %v2751_v49  ;;  %v2785_v49 = vpack.c.bf16 %v1855_v46, %v1853_v45  ;;  %v2787_v50 = vpack.c.bf16 %v1860_v48, %v1858_v47 }
 0x856   :  { %2754 = vmatpush1.bf16.msra.mxu0 %v2753_v54  ;;  %v1864_v54 = vld [vmem:[#allocation2 + $0x18d8] sm:$0xff] }
 0x857   :  { %2756 = vmatprep.subr.bf16.mxu0 %v2755_v55  ;;  %v2789_v55 = vpack.c.bf16 %v1859_v52, %v1857_v51  ;;  %v2791_v56 = vpack.c.bf16 %v1864_v54, %v1862_v53  ;;  %v1893_v52 = vld [vmem:[#allocation2 + $0x19c0] sm:$0xff]  ;;  %v1895_v53 = vld [vmem:[#allocation2 + $0x19d0] sm:$0xff] }
 0x858   :  { %v2825_v54 = vpack.c.bf16 %v1895_v53, %v1893_v52 }
 0x85a   :  { %2758 = vmatpush1.bf16.msra.mxu0 %v2757_v60  ;;  %v1868_v60 = vld [vmem:[#allocation2 + $0x18f8] sm:$0xff] }
 0x85b   :  { %2760 = vmatprep.subr.bf16.mxu0 %v2759_v61  ;;  %v2793_v61 = vpack.c.bf16 %v1863_v58, %v1861_v57  ;;  %v2795_v62 = vpack.c.bf16 %v1868_v60, %v1866_v59  ;;  %v1897_v58 = vld [vmem:[#allocation2 + $0x19e0] sm:$0xff]  ;;  %v1899_v59 = vld [vmem:[#allocation2 + $0x19f0] sm:$0xff] }
 0x85c   :  { %v2829_v60 = vpack.c.bf16 %v1899_v59, %v1897_v58 }
 0x85e   :  { %2762 = vmatpush1.bf16.msra.mxu0 %v2761_v9 }
 0x85f   :  { %2764 = vmatprep.subr.bf16.mxu0 %v2763_v12  ;;  %v1875_v12 = vld [vmem:[#allocation2 + $0x1930] sm:$0xff] }
 0x862   :  { %2766 = vmatpush1.bf16.msra.mxu0 %v2765_v15  ;;  %v2805_v15 = vpack.c.bf16 %v1875_v12, %v1873_v11 }
 0x8f8   :  { %v1527_v1 = vpop.f32.mrb[8].mxu0 }
 0x8f9   :  { %v1528_v2 = vadd.f32 %v1527_v1, %v1454_v63  ;;  %v1529_v3 = vpop.f32.mrb[9].mxu0  ;;  %v1865_v63 = vld [vmem:[#allocation2 + $0x18e0] sm:$0xff]  ;;  %v1870_v1 = vld [vmem:[#allocation2 + $0x1908] sm:$0xff] }
 0x8fa   :  { %v1530_v4 = vadd.f32 %v1529_v3, %v1458_v0  ;;  %v1867_v0 = vld [vmem:[#allocation2 + $0x18f0] sm:$0xff] }
 0x8fb   :  { %v1532_v6 = vmax.f32 %v1528_v2, 0.0  ;;  %v1872_v2 = vld [vmem:[#allocation2 + $0x1918] sm:$0xff]  ;;  %v2797_v3 = vpack.c.bf16 %v1867_v0, %v1865_v63 }
 0x8fc   :  { %v1533_v5 = vmax.f32 %v1530_v4, 0.0  ;;  %v2799_v4 = vpack.c.bf16 %v1872_v2, %v1870_v1 }
 0x8fe   :  { %1676 = vmatprep.mubr.f32.mxu1 %v1533_v5  ;;  %v1869_v5 = vld [vmem:[#allocation2 + $0x1900] sm:$0xff] }
 0x8ff   :  { %1677 = vmatmul.mubr.f32.vlgmr.msra.gmra.mrb[10].mxu1 %v1532_v6  ;;  %v1871_v6 = vld [vmem:[#allocation2 + $0x1910] sm:$0xff] }
 0x900   :  { %2770 = vmatpush1.bf16.msra.mxu1 %v2769_v23  ;;  %v2801_v9 = vpack.c.bf16 %v1871_v6, %v1869_v5  ;;  %v1881_v23 = vld [vmem:[#allocation2 + $0x1960] sm:$0xff] }
 0x901   :  { %2772 = vmatprep.subr.bf16.mxu1 %v2771_v24  ;;  %v1883_v24 = vld [vmem:[#allocation2 + $0x1970] sm:$0xff] }
 0x902   :  { %v2813_v28 = vpack.c.bf16 %v1883_v24, %v1881_v23 }
 0x904   :  { %2774 = vmatpush1.bf16.msra.mxu1 %v2773_v31  ;;  %v1885_v31 = vld [vmem:[#allocation2 + $0x1980] sm:$0xff] }
 0x905   :  { %2776 = vmatprep.subr.bf16.mxu1 %v2775_v32  ;;  %v1887_v32 = vld [vmem:[#allocation2 + $0x1990] sm:$0xff] }
 0x906   :  { %v2817_v35 = vpack.c.bf16 %v1887_v32, %v1885_v31 }
 0x908   :  { %2778 = vmatpush1.bf16.msra.mxu1 %v2777_v37  ;;  %v1889_v37 = vld [vmem:[#allocation2 + $0x19a0] sm:$0xff] }
 0x909   :  { %2780 = vmatprep.subr.bf16.mxu1 %v2779_v38  ;;  %v1891_v38 = vld [vmem:[#allocation2 + $0x19b0] sm:$0xff] }
 0x90a   :  { %v2821_v41 = vpack.c.bf16 %v1891_v38, %v1889_v37 }
 0x90c   :  { %2782 = vmatpush1.bf16.msra.mxu1 %v2781_v43  ;;  %v1600_v43 = vld [vmem:[#allocation5 + $0x14] sm:$0x3] }
 0x90d   :  { %2784 = vmatprep.subr.bf16.mxu1 %v2783_v44  ;;  %v1605_v44 = vrot.slane %v1600_v43, %v3036_v27  ;;  %v1609_v45 = vrot.slane %v1600_v43, %v3038_v29 }
 0x910   :  { %2786 = vmatpush1.bf16.msra.mxu1 %v2785_v49 }
 0x911   :  { %2788 = vmatprep.subr.bf16.mxu1 %v2787_v50 }
 0x914   :  { %2790 = vmatpush1.bf16.msra.mxu1 %v2789_v55  ;;  %v1898_v55 = vld [vmem:[#allocation2 + $0x19e8] sm:$0xff] }
 0x915   :  { %2792 = vmatprep.subr.bf16.mxu1 %v2791_v56  ;;  %v1900_v56 = vld [vmem:[#allocation2 + $0x19f8] sm:$0xff] }
 0x916   :  { %v2827_v57 = vpack.c.bf16 %v1900_v56, %v1898_v55 }
 0x918   :  { %2794 = vmatpush1.bf16.msra.mxu1 %v2793_v61  ;;  %v1751_v61 = vld [vmem:[#allocation5 + $0x16] sm:$0x3] }
 0x919   :  { %2796 = vmatprep.subr.bf16.mxu1 %v2795_v62  ;;  %v1756_v62 = vrot.slane %v1751_v61, %v3036_v27  ;;  %v1760_v63 = vrot.slane %v1751_v61, %v3038_v29 }
 0x91c   :  { %2798 = vmatpush1.bf16.msra.mxu1 %v2797_v3 }
 0x91d   :  { %2800 = vmatprep.subr.bf16.mxu1 %v2799_v4 }
 0x920   :  { %2802 = vmatpush1.bf16.msra.mxu1 %v2801_v9 }
 0x921   :  { %2804 = vmatprep.subr.bf16.mxu1 %v2803_v10 }
 0x924   :  { %2806 = vmatpush1.bf16.msra.mxu1 %v2805_v15 }
 0x925   :  { %2808 = vmatprep.subr.bf16.mxu1 %v2807_v16 }
 0x928   :  { %2810 = vmatpush1.bf16.msra.mxu1 %v2809_v21 }
 0x929   :  { %2812 = vmatprep.subr.bf16.mxu1 %v2811_v22 }
 0x92c   :  { %2814 = vmatpush1.bf16.msra.mxu1 %v2813_v28 }
 0x92d   :  { %2816 = vmatprep.subr.bf16.mxu1 %v2815_v30 }
 0x930   :  { %2818 = vmatpush1.bf16.msra.mxu1 %v2817_v35 }
 0x931   :  { %2820 = vmatprep.subr.bf16.mxu1 %v2819_v36 }
 0x934   :  { %2822 = vmatpush1.bf16.msra.mxu1 %v2821_v41 }
 0x935   :  { %2824 = vmatprep.subr.bf16.mxu1 %v2823_v42 }
 0x938   :  { %2826 = vmatpush1.bf16.msra.mxu1 %v2825_v54 }
 0x939   :  { %2828 = vmatprep.subr.bf16.mxu1 %v2827_v57 }
 0x93c   :  { %2830 = vmatpush1.bf16.msra.mxu1 %v2829_v60 }
 0x9d2   :  { %v1678_v46 = vpop.f32.mrb[10].mxu1 }
 0x9d3   :  { %v1679_v47 = vadd.f32 %v1678_v46, %v1605_v44  ;;  %v1680_v48 = vpop.f32.mrb[11].mxu1 }
 0x9d4   :  { %v1681_v49 = vadd.f32 %v1680_v48, %v1609_v45 }
 0x9d5   :  { %v1683_v51 = vmax.f32 %v1679_v47, 0.0 }
 0x9d6   :  { %v1684_v50 = vmax.f32 %v1681_v49, 0.0 }
 0x9d8   :  { %1827 = vmatprep.mubr.f32.mxu0 %v1684_v50 }
 0x9d9   :  { %1828 = vmatmul.mubr.f32.vlgmr.msra.gmra.mrb[10].mxu0 %v1683_v51 }
 0xaac   :  { %v1829_v0 = vpop.f32.mrb[10].mxu0 }
 0xaad   :  { %v1830_v1 = vadd.f32 %v1829_v0, %v1756_v62  ;;  %v1831_v2 = vpop.f32.mrb[11].mxu0 }
 0xaae   :  { %v1832_v3 = vadd.f32 %v1831_v2, %v1760_v63 }
 0xaaf   :  { %v1834_v5 = vmax.f32 %v1830_v1, 0.0 }
 0xab0   :  { %v1835_v4 = vmax.f32 %v1832_v3, 0.0 }
 0xab2   :  { %1978 = vmatprep.mubr.f32.mxu1 %v1835_v4 }
 0xab3   :  { %1979 = vmatmul.mubr.f32.vlgmr.msra.gmra.mrb[12].mxu1 %v1834_v5 }
 0xab4   :  { %2898 = shalt.err (!%p2895_p6)
}
 0xab5   :  { %s2899_s8 = scalar_lea.hbm %s3110_s5, 128 }
 0xab6   :  { %p2900_p7 = scmp.ne.s32.totalorder %s3110_s5, %s2899_s8  ;;  %p2903_p8 = scmp.lt.u32.totalorder %s2899_s8, %s3110_s5 }
 0xab8   :  { %p2905_p9 = pnand %p2903_p8, %p2900_p7 }
 0xaba   :  { %2908 = shalt.err (!%p2905_p9)
}
 0xabb   :  { %2006 = dma.vmem_to_hbm [thread:$0]  %s2004_s28, 128, %s3110_s5, [#allocation9]  }
 0xabc   :  { %s2969_s15 = smov [#allocation10]  }
 0xabd   :  { %s2013_s16 = sshll.u32 %s2969_s15, 4  ;;  %s2014_s16 = int_to_ptr.vmem [resolvable:$true] %s2013_s16 }
 0xabe   :  { %s2909_s17 = scalar_lea.vmem %s2014_s16, 128  ;;  %p2914_p11 = scmp.lt.s32.totalorder %s2014_s16, %s2014_s16 }
 0xabf   :  { %p2910_p10 = scmp.ne.s32.totalorder %s2014_s16, %s2909_s17  ;;  %p2915_p12 = scmp.lt.s32.totalorder %s2909_s17, %s2909_s17 }
 0xac1   :  { %p2916_p13 = por %p2915_p12, %p2914_p11 }
 0xac3   :  { %p2917_p0 = pnand %p2916_p13, %p2910_p10 }
 0xac5   :  { %2920 = shalt.err (!%p2917_p0)
}
 0xac6   :  { %s2921_s20 = scalar_lea.hbm %s3111_s6, 128 }
 0xac7   :  { %p2922_p1 = scmp.ne.s32.totalorder %s3111_s6, %s2921_s20  ;;  %p2925_p2 = scmp.lt.u32.totalorder %s2921_s20, %s3111_s6 }
 0xac9   :  { %p2927_p3 = pnand %p2925_p2, %p2922_p1 }
 0xacb   :  { %2930 = shalt.err (!%p2927_p3)
}
 0xacc   :  { %2016 = dma.vmem_to_hbm [thread:$0]  %s2014_s16, 128, %s3111_s6, [#allocation9]   ;;  %v1902_v6 = vld [vmem:[#allocation5 + $0x18] sm:$0x3] }
 0xacd   :  { %v1907_v7 = vrot.slane %v1902_v6, %v3036_v27  ;;  %v1911_v8 = vrot.slane %v1902_v6, %v3038_v29  ;;  %s2970_s24 = smov [#allocation7]  }
 0xace   :  { %s1993_s25 = sshll.u32 %s2970_s24, 4  ;;  %s1994_s25 = int_to_ptr.vmem [resolvable:$true] %s1993_s25 }
 0xacf   :  { %s2931_s26 = scalar_lea.vmem %s1994_s25, 256  ;;  %p2936_p5 = scmp.lt.s32.totalorder %s1994_s25, %s1994_s25 }
 0xad0   :  { %p2932_p4 = scmp.ne.s32.totalorder %s1994_s25, %s2931_s26  ;;  %p2937_p6 = scmp.lt.s32.totalorder %s2931_s26, %s2931_s26 }
 0xad2   :  { %p2938_p7 = por %p2937_p6, %p2936_p5 }
 0xad4   :  { %p2939_p8 = pnand %p2938_p7, %p2932_p4 }
 0xb86   :  { %v1980_v9 = vpop.f32.mrb[12].mxu1 }
 0xb87   :  { %v1981_v10 = vadd.f32 %v1980_v9, %v1907_v7  ;;  %v1982_v11 = vpop.f32.mrb[13].mxu1 }
 0xb88   :  { %v1983_v12 = vadd.f32 %v1982_v11, %v1911_v8 }
 0xb89   :  { %1985 = vst [vmem:[#allocation7] sm:$0xff] %v1981_v10 }
 0xb8a   :  { %1986 = vst [vmem:[#allocation7 + $0x8] sm:$0xff] %v1983_v12 }
 0xb8b   :  { %2942 = shalt.err (!%p2939_p8)
}
 0xb8c   :  { %s2943_s27 = scalar_lea.hbm %s3109_s4, 256 }
 0xb8d   :  { %p2944_p9 = scmp.ne.s32.totalorder %s3109_s4, %s2943_s27  ;;  %p2947_p10 = scmp.lt.u32.totalorder %s2943_s27, %s3109_s4 }
 0xb8f   :  { %p2949_p11 = pnand %p2947_p10, %p2944_p9 }
 0xb91   :  { %2952 = shalt.err (!%p2949_p11)
}
 0xb92   :  { %1996 = dma.vmem_to_hbm [thread:$0]  %s1994_s25, 256, %s3109_s4, [#allocation4]  }
 0xb93   :  { %2957 = dma.done.wait [#allocation4], 256  }
 0xb94   :  { %2958 = vsyncadd [#allocation4], 4294967040 }
 0xb95   :  { %2959 = dma.done.wait [#allocation9], 256  }
 0xb96   :  { %2960 = vsyncadd [#allocation9], 4294967040 }
 0xb97   :  { %2026 = vsyncpa [#allocation3], 1 }
 0xb98   :  { %2027 = vsyncpa [#allocation6], 1 }
 0xb99   :  { %2028 = vsyncpa [#allocation4], 1 }
 0xb9a   :  { %2029 = vsyncpa [#allocation9], 1 }

</bundles_post_ra>
